<compile_context>
chip_gen: v7x
topology: tpu7x:2x2x1
jax: 0.10.0
libtpu: 0.0.40
codegen_flags: <defaults>
</compile_context>

<pallas_src>
import functools

import jax
import jax.numpy as jnp
from jax.experimental import pallas as pl
from jax.experimental.pallas import tpu as pltpu

# Static per-stage configuration (mirrors a 2-block encoder config).
STAGE_CONFIGS = (
    dict(cin=4, cout=8, stride=1, pad=1, ksize=3, hidden=8, hw=16),
    dict(cin=8, cout=16, stride=2, pad=1, ksize=3, hidden=16, hw=8),
)

_TAPS = tuple((di, dj) for di in (-1, 0, 1) for dj in (-1, 0, 1))
_MARGIN = 128  # lane margin of the recurrent state scratch -> aligned stores


def _round_up(x, m):
    return (x + m - 1) // m * m


# ---------------------------------------------------------------------------
# Pallas kernel 1: lane-dense matmul + LeakyReLU (bias folded via ones row).
#   out(Cout, M) = leakyrelu(W_aug(Cout, K+1) @ X_aug(K+1, M)),  M % 128 == 0.
# M is tiled ("parallel") so megacore can shard it on v7x.
# ---------------------------------------------------------------------------
def _conv_act_kernel(w_ref, x_ref, o_ref, *, neg_slope):
    acc = jnp.dot(w_ref[...], x_ref[...], preferred_element_type=jnp.float32)
    if neg_slope is not None:
        acc = jnp.where(acc >= 0.0, acc, acc * neg_slope)
    o_ref[...] = acc.astype(o_ref.dtype)


def conv_matmul(w_aug, x_aug, *, out_dtype, neg_slope=None, tile_m=512):
    cout, k = w_aug.shape
    m = x_aug.shape[1]
    tm = tile_m if m % tile_m == 0 else m
    return pl.pallas_call(
        functools.partial(_conv_act_kernel, neg_slope=neg_slope),
        out_shape=jax.ShapeDtypeStruct((cout, m), out_dtype),
        grid_spec=pltpu.PrefetchScalarGridSpec(
            num_scalar_prefetch=0,
            grid=(m // tm,),
            in_specs=[pl.BlockSpec((cout, k), lambda i: (0, 0)),
                      pl.BlockSpec((k, tm), lambda i: (0, i))],
            out_specs=pl.BlockSpec((cout, tm), lambda i: (0, i)),
        ),
        compiler_params=pltpu.CompilerParams(dimension_semantics=("parallel",)),
    )(w_aug.astype(jnp.bfloat16), x_aug.astype(jnp.bfloat16))


def im2col_t(x_cf, ksize, stride, pad):
    """Transposed im2col: (C, N, H, W) -> (ksize*ksize*C, N*Ho*Wo)  [XLA glue]."""
    c, n, h, w = x_cf.shape
    xp = jnp.pad(x_cf, ((0, 0), (0, 0), (pad, pad), (pad, pad)))
    ho = (h + 2 * pad - ksize) // stride + 1
    wo = (w + 2 * pad - ksize) // stride + 1
    cols = []
    for i in range(ksize):
        for j in range(ksize):
            cols.append(
                xp[:, :, i:i + (ho - 1) * stride + 1:stride,
                      j:j + (wo - 1) * stride + 1:stride].reshape(c, n * ho * wo))
    return jnp.concatenate(cols, axis=0), ho, wo


def _flatten_conv_w(w_oihw):
    """(O, I, kh, kw) -> (O, kh*kw*I), tap-major / channel-minor (matches im2col_t)."""
    o, i, kh, kw = w_oihw.shape
    return jnp.transpose(w_oihw, (0, 2, 3, 1)).reshape(o, kh * kw * i)


# ---------------------------------------------------------------------------
# Pallas kernel 2: fused ConvLSTM recurrence, grid=(S,), state in VMEM scratch.
# Layout: padded-flat (channels, B*(H+2)*(W+2)) with the lane axis rounded up
# to a multiple of 128 and a 128-lane margin around the state scratch; interior
# positions compute the exact zero-padded 3x3 conv, ring / dead-tail positions
# are garbage and are masked on h (and never read for the returned c / h).
# Both the x->gates and h->gates 3x3 convs are evaluated as ONE bf16 matmul per
# step over 18 statically shifted slices.
# ---------------------------------------------------------------------------
def _convlstm_seq_kernel(y_ref, w_ref, inv_ref, h_seq_ref, h_fin_ref, c_fin_ref,
                         h_ext, c_st, *, feat, wp, mp, margin):
    t = pl.program_id(0)

    @pl.when(t == 0)
    def _():
        h_ext[...] = jnp.zeros_like(h_ext)
        c_st[...] = jnp.zeros_like(c_st)

    # gates(4f, Mp) = W(4f, 9*(cin+f)) @ [9 x-taps ; 9 h-taps](9*(cin+f), Mp) + b
    y_full = y_ref[0].astype(jnp.float32)          # (cin, Mp + 2*margin)
    h_full = h_ext[...]                            # (f,   Mp + 2*margin)
    offs = [margin + di * wp + dj for di, dj in _TAPS]
    taps = ([y_full[:, o:o + mp] for o in offs] +
            [h_full[:, o:o + mp] for o in offs])
    stack = jnp.concatenate(taps, axis=0).astype(jnp.bfloat16)
    gates = jnp.dot(w_ref[...], stack, preferred_element_type=jnp.float32)
    gates = gates + inv_ref[0:4 * feat]            # bias (f32, exact)

    c = c_st[...]
    # gate order [i, f, c, o]; 8-aligned sublane slices of the 4f axis.
    gi = gates[0 * feat:1 * feat]
    gf = gates[1 * feat:2 * feat]
    gc = gates[2 * feat:3 * feat]
    go = gates[3 * feat:4 * feat]
    wci = inv_ref[4 * feat:5 * feat]
    wcf = inv_ref[5 * feat:6 * feat]
    wco = inv_ref[6 * feat:7 * feat]
    mask = inv_ref[7 * feat:7 * feat + 1]

    i_gate = jax.nn.sigmoid(gi + wci * c)
    f_gate = jax.nn.sigmoid(gf + wcf * c)
    c_new = f_gate * c + i_gate * jnp.tanh(gc)
    o_gate = jax.nn.sigmoid(go + wco * c_new)
    h_new = o_gate * jnp.tanh(c_new) * mask        # keep ring + dead lanes at 0

    h_ext[:, margin:margin + mp] = h_new           # lane-aligned state store
    c_st[...] = c_new
    h_seq_ref[0] = h_new.astype(jnp.bfloat16)      # lane-dense per-step output

    @pl.when(t == pl.num_programs(0) - 1)          # resident outs written once
    def _():
        h_fin_ref[...] = h_new
        c_fin_ref[...] = c_new


def convlstm_recurrence(y_pf, w_comb, inv, *, feat, wp, margin):
    s, cin, mpe = y_pf.shape
    mp = inv.shape[1]
    kern = functools.partial(_convlstm_seq_kernel, feat=feat, wp=wp, mp=mp,
                             margin=margin)
    return pl.pallas_call(
        kern,
        out_shape=(jax.ShapeDtypeStruct((s, feat, mp), jnp.bfloat16),   # h seq
                   jax.ShapeDtypeStruct((feat, mp), jnp.float32),       # final h
                   jax.ShapeDtypeStruct((feat, mp), jnp.float32)),      # final c
        grid_spec=pltpu.PrefetchScalarGridSpec(
            num_scalar_prefetch=0,
            grid=(s,),
            in_specs=[
                pl.BlockSpec((1, cin, mpe), lambda t: (t, 0, 0)),   # x_t padded-flat
                pl.BlockSpec(w_comb.shape, lambda t: (0, 0)),       # W [x|h] invariant
                pl.BlockSpec(inv.shape, lambda t: (0, 0)),          # bias/peep/mask
            ],
            out_specs=[
                pl.BlockSpec((1, feat, mp), lambda t: (t, 0, 0)),
                pl.BlockSpec((feat, mp), lambda t: (0, 0)),
                pl.BlockSpec((feat, mp), lambda t: (0, 0)),
            ],
            scratch_shapes=[
                pltpu.VMEM((feat, mpe), jnp.float32),               # h + margins
                pltpu.VMEM((feat, mp), jnp.float32),                # c
            ],
        ),
        compiler_params=pltpu.CompilerParams(dimension_semantics=("arbitrary",)),
    )(y_pf, w_comb, inv)


# ---------------------------------------------------------------------------
# Encoder forward (XLA glue between the two Pallas kernels per stage)
# ---------------------------------------------------------------------------
def encoder_forward(inputs, params):
    batch, seq, chan, height, width = inputs.shape
    # (B,S,C,H,W) -> channel-major frames (C, S*B, H, W), frames in (s, b) order
    # (matches PyTorch permute(1,0,2,3,4) + reshape(-1, C, H, W)).
    x_cf = jnp.transpose(inputs, (2, 1, 0, 3, 4)).reshape(
        chan, seq * batch, height, width)
    hidden_states = []
    for cfg, p in zip(STAGE_CONFIGS, params):
        feat, cout = cfg["hidden"], cfg["cout"]

        # ---- stage subnet: Conv2d + LeakyReLU over all S*B frames at once ----
        cols, ho, wo = im2col_t(x_cf, cfg["ksize"], cfg["stride"], cfg["pad"])
        x_aug = jnp.concatenate(
            [cols, jnp.ones((1, cols.shape[1]), cols.dtype)], axis=0)
        w_aug = jnp.concatenate(
            [_flatten_conv_w(p["conv_w"]), p["conv_b"][:, None]], axis=1)
        y = conv_matmul(w_aug, x_aug, out_dtype=jnp.bfloat16, neg_slope=0.2)

        # ---- per-timestep padded-flat layout with 128-lane margins -----------
        hp, wp = ho + 2, wo + 2
        mp_raw = batch * hp * wp
        mp = _round_up(mp_raw, 128)
        y5 = jnp.transpose(y.reshape(cout, seq, batch, ho, wo), (1, 0, 2, 3, 4))
        y5 = jnp.pad(y5, ((0, 0), (0, 0), (0, 0), (1, 1), (1, 1)))
        y_pf = jnp.pad(y5.reshape(seq, cout, mp_raw),
                       ((0, 0), (0, 0), (_MARGIN, _MARGIN + mp - mp_raw)))

        # combined [x | h] gate conv weight, tap-major / channel-minor, bf16
        w_comb = jnp.concatenate(
            [_flatten_conv_w(p["rnn_wx"]), _flatten_conv_w(p["rnn_wh"])],
            axis=1).astype(jnp.bfloat16)

        # loop-invariant pack [bias ; Wci ; Wcf ; Wco ; interior mask]  (f32)
        def pad_flat(a, rows):        # (rows, ho, wo) -> (rows, mp)
            a = jnp.pad(a.astype(jnp.float32), ((0, 0), (1, 1), (1, 1)))
            a = jnp.broadcast_to(a[:, None], (rows, batch, hp, wp))
            return jnp.pad(a.reshape(rows, mp_raw), ((0, 0), (0, mp - mp_raw)))

        inv = jnp.concatenate([
            jnp.broadcast_to(p["rnn_b"].astype(jnp.float32)[:, None],
                             (4 * feat, mp)),
            pad_flat(p["wci"], feat),
            pad_flat(p["wcf"], feat),
            pad_flat(p["wco"], feat),
            pad_flat(jnp.ones((1, ho, wo), jnp.float32), 1),
        ], axis=0)

        h_seq, h_fin, c_fin = convlstm_recurrence(
            y_pf, w_comb, inv, feat=feat, wp=wp, margin=_MARGIN)

        # ---- final stage state back to the PyTorch (B, C, H, W) convention ---
        def unflat(a):                # (feat, mp) -> (B, feat, ho, wo)
            a = a[:, :mp_raw].reshape(feat, batch, hp, wp)[:, :, 1:ho + 1, 1:wo + 1]
            return jnp.transpose(a, (1, 0, 2, 3))

        hidden_states.append((unflat(h_fin), unflat(c_fin)))

        # ---- output sequence feeds the next stage (channel-major frames) -----
        h_int = h_seq[:, :, :mp_raw].reshape(seq, feat, batch, hp, wp)
        h_int = h_int[:, :, :, 1:ho + 1, 1:wo + 1]
        x_cf = jnp.transpose(h_int, (1, 0, 2, 3, 4)).reshape(
            feat, seq * batch, ho, wo)
    return tuple(hidden_states)


# ---------------------------------------------------------------------------
# Pure-JAX f32 reference of the PyTorch module (for the runtime cross-check)
# ---------------------------------------------------------------------------
def _leaky_relu(x):
    return jnp.where(x >= 0.0, x, 0.2 * x)


def _conv2d_ref(x_nchw, w_oihw, b, stride, pad):
    y = jax.lax.conv_general_dilated(
        x_nchw, w_oihw, (stride, stride), ((pad, pad), (pad, pad)),
        dimension_numbers=("NCHW", "OIHW", "NCHW"))
    return y + b[None, :, None, None]


def encoder_reference(inputs, params):
    x = jnp.transpose(inputs, (1, 0, 2, 3, 4))                  # (S,B,C,H,W)
    states = []
    for cfg, p in zip(STAGE_CONFIGS, params):
        s, b, c, h, w = x.shape
        y = _leaky_relu(_conv2d_ref(x.reshape(s * b, c, h, w), p["conv_w"],
                                    p["conv_b"], cfg["stride"], cfg["pad"]))
        cout, ho, wo = y.shape[1], y.shape[2], y.shape[3]
        y = y.reshape(s, b, cout, ho, wo)
        feat = cfg["hidden"]
        rnn_w = jnp.concatenate([p["rnn_wx"], p["rnn_wh"]], axis=1)
        h_t = jnp.zeros((b, feat, ho, wo), jnp.float32)
        c_t = jnp.zeros((b, feat, ho, wo), jnp.float32)
        outs = []
        for t in range(s):
            cat = jnp.concatenate([y[t], h_t], axis=1)
            g = _conv2d_ref(cat, rnn_w, p["rnn_b"], 1, 1)
            gi, gf, gc, go = jnp.split(g, 4, axis=1)
            i_gate = jax.nn.sigmoid(gi + p["wci"][None] * c_t)
            f_gate = jax.nn.sigmoid(gf + p["wcf"][None] * c_t)
            c_t = f_gate * c_t + i_gate * jnp.tanh(gc)
            o_gate = jax.nn.sigmoid(go + p["wco"][None] * c_t)
            h_t = o_gate * jnp.tanh(c_t)
            outs.append(h_t)
        x = jnp.stack(outs, axis=0)
        states.append((h_t, c_t))
    return tuple(states)


def init_params(key):
    # NOTE: gate order [i, f, c, o] and the [x | h] split of the rnn conv weight
    # must match the source ConvLSTM when porting real checkpoints.
    dtype = jnp.float32
    params = []
    for cfg in STAGE_CONFIGS:
        key, k1, k2, k3, k4, k5, k6, k7, k8 = jax.random.split(key, 9)
        ks, feat, hw = cfg["ksize"], cfg["hidden"], cfg["hw"]
        params.append(dict(
            conv_w=0.1 * jax.random.normal(k1, (cfg["cout"], cfg["cin"], ks, ks), dtype),
            conv_b=0.1 * jax.random.normal(k2, (cfg["cout"],), dtype),
            rnn_wx=0.1 * jax.random.normal(k3, (4 * feat, cfg["cout"], 3, 3), dtype),
            rnn_wh=0.1 * jax.random.normal(k4, (4 * feat, feat, 3, 3), dtype),
            rnn_b=0.1 * jax.random.normal(k5, (4 * feat,), dtype),
            wci=0.1 * jax.random.normal(k6, (feat, hw, hw), dtype),
            wcf=0.1 * jax.random.normal(k7, (feat, hw, hw), dtype),
            wco=0.1 * jax.random.normal(k8, (feat, hw, hw), dtype),
        ))
    return params


if __name__ == "__main__":
    key = jax.random.PRNGKey(0)
    pkey, xkey = jax.random.split(key)
    params = init_params(pkey)

    B, S, C, H, W = 2, 8, 4, 16, 16
    x = jax.random.normal(xkey, (B, S, C, H, W), jnp.float32)

    hidden_states = jax.jit(encoder_forward)(x, params)
    jax.block_until_ready(hidden_states)

    # shape sanity (PyTorch states are (B, C, H, W))
    assert hidden_states[0][0].shape == (B, 8, 16, 16)
    assert hidden_states[0][1].shape == (B, 8, 16, 16)
    assert hidden_states[1][0].shape == (B, 16, 8, 8)
    assert hidden_states[1][1].shape == (B, 16, 8, 8)

    # end-to-end cross-check against the pure-JAX f32 reference of the module
    # (the Pallas path uses bf16 matmul operands / bf16 inter-stage activations
    #  -> loosened tolerance).
    ref_states = jax.jit(encoder_reference)(x, params)
    for (h_p, c_p), (h_r, c_r) in zip(hidden_states, ref_states):
        err_h = float(jnp.max(jnp.abs(h_p - h_r)))
        err_c = float(jnp.max(jnp.abs(c_p - c_r)))
        assert err_h < 7.5e-2 and err_c < 7.5e-2, (err_h, err_c)

    print("KERNEL_OK")
</pallas_src>

<mosaic_0001>
module attributes {stable_mosaic.version = 11 : i64} {
  func.func @_conv_act_kernel(%arg0: i32, %arg1: memref<8x37xbf16, #tpu.memory_space<vmem>>, %arg2: memref<37x512xbf16, #tpu.memory_space<vmem>>, %arg3: memref<8x512xbf16, #tpu.memory_space<vmem>>) attributes {dimension_semantics = [#tpu.dimension_semantics<parallel>], iteration_bounds = array<i64: 8>, scalar_prefetch = 0 : i64, scratch_operands = 0 : i64, tpu.core_type = #tpu.core_type<tc>, window_params = [{pipeline_mode = #tpu.pipeline_mode<synchronous>, transform_indices = @transform_0, window_bounds = array<i64: 8, 37>}, {transform_indices = @transform_1, window_bounds = array<i64: 37, 512>}, {transform_indices = @transform_2, window_bounds = array<i64: 8, 512>}]} {
    %c0 = arith.constant 0 : index
    %c0_0 = arith.constant 0 : index
    %0 = vector.load %arg1[%c0, %c0_0] : memref<8x37xbf16, #tpu.memory_space<vmem>>, vector<8x37xbf16>
    %c0_1 = arith.constant 0 : index
    %c0_2 = arith.constant 0 : index
    %1 = vector.load %arg2[%c0_1, %c0_2] : memref<37x512xbf16, #tpu.memory_space<vmem>>, vector<37x512xbf16>
    %cst = arith.constant dense<0.000000e+00> : vector<8x512xf32>
    %2 = tpu.matmul %0, %1, %cst {dimension_numbers = #tpu.dot_dimension_numbers<[1], [0], [0], [1], [0, 0, 1, 1], [], []>} : vector<8x37xbf16>, vector<37x512xbf16>, vector<8x512xf32> -> vector<8x512xf32>
    %cst_3 = arith.constant 0.000000e+00 : f32
    %3 = vector.broadcast %cst_3 : f32 to vector<8x512xf32>
    %4 = arith.cmpf oge, %2, %3 : vector<8x512xf32>
    %cst_4 = arith.constant 2.000000e-01 : f32
    %5 = vector.broadcast %cst_4 : f32 to vector<8x512xf32>
    %6 = arith.mulf %2, %5 : vector<8x512xf32>
    %7 = arith.select %4, %2, %6 : vector<8x512xi1>, vector<8x512xf32>
    %8 = arith.truncf %7 : vector<8x512xf32> to vector<8x512xbf16>
    %c0_5 = arith.constant 0 : index
    %c0_6 = arith.constant 0 : index
    %9 = vector.load %arg3[%c0_5, %c0_6] : memref<8x512xbf16, #tpu.memory_space<vmem>>, vector<8x512xbf16>
    tpu.vector_store %arg3[%c0_5, %c0_6], %8 {strides = array<i32>} : memref<8x512xbf16, #tpu.memory_space<vmem>>, vector<8x512xbf16>,
    return
  }
  func.func @transform_0(%arg0: i32) -> (i32, i32) {
    %c0_i32 = arith.constant 0 : i32
    %c0_i32_0 = arith.constant 0 : i32
    %c0_i32_1 = arith.constant 0 : i32
    return %c0_i32, %c0_i32_0 : i32, i32
  }
  func.func @transform_1(%arg0: i32) -> (i32, i32) {
    %c0_i32 = arith.constant 0 : i32
    %c0_i32_0 = arith.constant 0 : i32
    return %c0_i32, %arg0 : i32, i32
  }
  func.func @transform_2(%arg0: i32) -> (i32, i32) {
    %c0_i32 = arith.constant 0 : i32
    %c0_i32_0 = arith.constant 0 : i32
    return %c0_i32, %arg0 : i32, i32
  }
}

module attributes {stable_mosaic.version = 11 : i64} {
  func.func @_convlstm_seq_kernel(%arg0: i32, %arg1: memref<1x8x1024xbf16, #tpu.memory_space<vmem>>, %arg2: memref<32x144xbf16, #tpu.memory_space<vmem>>, %arg3: memref<57x768xf32, #tpu.memory_space<vmem>>, %arg4: memref<1x8x768xbf16, #tpu.memory_space<vmem>>, %arg5: memref<8x768xf32, #tpu.memory_space<vmem>>, %arg6: memref<8x768xf32, #tpu.memory_space<vmem>>, %arg7: memref<8x1024xf32, #tpu.memory_space<vmem>>, %arg8: memref<8x768xf32, #tpu.memory_space<vmem>>) attributes {dimension_semantics = [#tpu.dimension_semantics<arbitrary>], iteration_bounds = array<i64: 8>, scalar_prefetch = 0 : i64, scratch_operands = 2 : i64, tpu.core_type = #tpu.core_type<tc>, window_params = [{transform_indices = @transform_0, window_bounds = array<i64: 1, 8, 1024>}, {pipeline_mode = #tpu.pipeline_mode<synchronous>, transform_indices = @transform_1, window_bounds = array<i64: 32, 144>}, {pipeline_mode = #tpu.pipeline_mode<synchronous>, transform_indices = @transform_2, window_bounds = array<i64: 57, 768>}, {transform_indices = @transform_3, window_bounds = array<i64: 1, 8, 768>}, {pipeline_mode = #tpu.pipeline_mode<synchronous>, transform_indices = @transform_4, window_bounds = array<i64: 8, 768>}, {pipeline_mode = #tpu.pipeline_mode<synchronous>, transform_indices = @transform_5, window_bounds = array<i64: 8, 768>}]} {
    %c0_i32 = arith.constant 0 : i32
    %0 = arith.cmpi eq, %arg0, %c0_i32 : i32
    %1 = arith.extui %0 : i1 to i32
    %c0_i32_0 = arith.constant 0 : i32
    %2 = arith.cmpi ne, %1, %c0_i32_0 : i32
    scf.if %2 {
      %cst_25 = arith.constant 0.000000e+00 : f32
      %80 = vector.broadcast %cst_25 : f32 to vector<8x1024xf32>
      %c0_26 = arith.constant 0 : index
      %c0_27 = arith.constant 0 : index
      %81 = vector.load %arg7[%c0_26, %c0_27] : memref<8x1024xf32, #tpu.memory_space<vmem>>, vector<8x1024xf32>
      tpu.vector_store %arg7[%c0_26, %c0_27], %80 {strides = array<i32>} : memref<8x1024xf32, #tpu.memory_space<vmem>>, vector<8x1024xf32>,
      %cst_28 = arith.constant 0.000000e+00 : f32
      %82 = vector.broadcast %cst_28 : f32 to vector<8x768xf32>
      %c0_29 = arith.constant 0 : index
      %c0_30 = arith.constant 0 : index
      %83 = vector.load %arg8[%c0_29, %c0_30] : memref<8x768xf32, #tpu.memory_space<vmem>>, vector<8x768xf32>
      tpu.vector_store %arg8[%c0_29, %c0_30], %82 {strides = array<i32>} : memref<8x768xf32, #tpu.memory_space<vmem>>, vector<8x768xf32>,
    } else {
    }
    %c0 = arith.constant 0 : index
    %c0_1 = arith.constant 0 : index
    %c0_2 = arith.constant 0 : index
    %3 = vector.load %arg1[%c0, %c0_1, %c0_2] : memref<1x8x1024xbf16, #tpu.memory_space<vmem>>, vector<1x8x1024xbf16>
    %4 = vector.shape_cast %3 : vector<1x8x1024xbf16> to vector<8x1024xbf16>
    %5 = arith.extf %4 : vector<8x1024xbf16> to vector<8x1024xf32>
    %c0_3 = arith.constant 0 : index
    %c0_4 = arith.constant 0 : index
    %6 = vector.load %arg7[%c0_3, %c0_4] : memref<8x1024xf32, #tpu.memory_space<vmem>>, vector<8x1024xf32>
    %7 = vector.extract_strided_slice %5 {offsets = [0, 109], sizes = [8, 768], strides = [1, 1]} : vector<8x1024xf32> to vector<8x768xf32>
    %8 = vector.extract_strided_slice %5 {offsets = [0, 110], sizes = [8, 768], strides = [1, 1]} : vector<8x1024xf32> to vector<8x768xf32>
    %9 = vector.extract_strided_slice %5 {offsets = [0, 111], sizes = [8, 768], strides = [1, 1]} : vector<8x1024xf32> to vector<8x768xf32>
    %10 = vector.extract_strided_slice %5 {offsets = [0, 127], sizes = [8, 768], strides = [1, 1]} : vector<8x1024xf32> to vector<8x768xf32>
    %11 = vector.extract_strided_slice %5 {offsets = [0, 128], sizes = [8, 768], strides = [1, 1]} : vector<8x1024xf32> to vector<8x768xf32>
    %12 = vector.extract_strided_slice %5 {offsets = [0, 129], sizes = [8, 768], strides = [1, 1]} : vector<8x1024xf32> to vector<8x768xf32>
    %13 = vector.extract_strided_slice %5 {offsets = [0, 145], sizes = [8, 768], strides = [1, 1]} : vector<8x1024xf32> to vector<8x768xf32>
    %14 = vector.extract_strided_slice %5 {offsets = [0, 146], sizes = [8, 768], strides = [1, 1]} : vector<8x1024xf32> to vector<8x768xf32>
    %15 = vector.extract_strided_slice %5 {offsets = [0, 147], sizes = [8, 768], strides = [1, 1]} : vector<8x1024xf32> to vector<8x768xf32>
    %16 = vector.extract_strided_slice %6 {offsets = [0, 109], sizes = [8, 768], strides = [1, 1]} : vector<8x1024xf32> to vector<8x768xf32>
    %17 = vector.extract_strided_slice %6 {offsets = [0, 110], sizes = [8, 768], strides = [1, 1]} : vector<8x1024xf32> to vector<8x768xf32>
    %18 = vector.extract_strided_slice %6 {offsets = [0, 111], sizes = [8, 768], strides = [1, 1]} : vector<8x1024xf32> to vector<8x768xf32>
    %19 = vector.extract_strided_slice %6 {offsets = [0, 127], sizes = [8, 768], strides = [1, 1]} : vector<8x1024xf32> to vector<8x768xf32>
    %20 = vector.extract_strided_slice %6 {offsets = [0, 128], sizes = [8, 768], strides = [1, 1]} : vector<8x1024xf32> to vector<8x768xf32>
    %21 = vector.extract_strided_slice %6 {offsets = [0, 129], sizes = [8, 768], strides = [1, 1]} : vector<8x1024xf32> to vector<8x768xf32>
    %22 = vector.extract_strided_slice %6 {offsets = [0, 145], sizes = [8, 768], strides = [1, 1]} : vector<8x1024xf32> to vector<8x768xf32>
    %23 = vector.extract_strided_slice %6 {offsets = [0, 146], sizes = [8, 768], strides = [1, 1]} : vector<8x1024xf32> to vector<8x768xf32>
    %24 = vector.extract_strided_slice %6 {offsets = [0, 147], sizes = [8, 768], strides = [1, 1]} : vector<8x1024xf32> to vector<8x768xf32>
    %25 = tpu.concatenate %7, %8, %9, %10, %11, %12, %13, %14, %15, %16, %17, %18, %19, %20, %21, %22 in 0 : vector<8x768xf32>, vector<8x768xf32>, vector<8x768xf32>, vector<8x768xf32>, vector<8x768xf32>, vector<8x768xf32>, vector<8x768xf32>, vector<8x768xf32>, vector<8x768xf32>, vector<8x768xf32>, vector<8x768xf32>, vector<8x768xf32>, vector<8x768xf32>, vector<8x768xf32>, vector<8x768xf32>, vector<8x768xf32> -> vector<128x768xf32>
    %26 = tpu.concatenate %23, %24 in 0 : vector<8x768xf32>, vector<8x768xf32> -> vector<16x768xf32>
    %27 = tpu.concatenate %25, %26 in 0 : vector<128x768xf32>, vector<16x768xf32> -> vector<144x768xf32>
    %28 = arith.truncf %27 : vector<144x768xf32> to vector<144x768xbf16>
    %c0_5 = arith.constant 0 : index
    %c0_6 = arith.constant 0 : index
    %29 = vector.load %arg2[%c0_5, %c0_6] : memref<32x144xbf16, #tpu.memory_space<vmem>>, vector<32x144xbf16>
    %cst = arith.constant dense<0.000000e+00> : vector<32x768xf32>
    %30 = tpu.matmul %29, %28, %cst {dimension_numbers = #tpu.dot_dimension_numbers<[1], [0], [0], [1], [0, 0, 1, 1], [], []>} : vector<32x144xbf16>, vector<144x768xbf16>, vector<32x768xf32> -> vector<32x768xf32>
    %c0_7 = arith.constant 0 : index
    %c0_8 = arith.constant 0 : index
    %31 = vector.load %arg3[%c0_7, %c0_8] : memref<57x768xf32, #tpu.memory_space<vmem>>, vector<32x768xf32>
    %32 = arith.addf %30, %31 : vector<32x768xf32>
    %c0_9 = arith.constant 0 : index
    %c0_10 = arith.constant 0 : index
    %33 = vector.load %arg8[%c0_9, %c0_10] : memref<8x768xf32, #tpu.memory_space<vmem>>, vector<8x768xf32>
    %34 = vector.extract_strided_slice %32 {offsets = [0, 0], sizes = [8, 768], strides = [1, 1]} : vector<32x768xf32> to vector<8x768xf32>
    %35 = vector.extract_strided_slice %32 {offsets = [8, 0], sizes = [8, 768], strides = [1, 1]} : vector<32x768xf32> to vector<8x768xf32>
    %36 = vector.extract_strided_slice %32 {offsets = [16, 0], sizes = [8, 768], strides = [1, 1]} : vector<32x768xf32> to vector<8x768xf32>
    %37 = vector.extract_strided_slice %32 {offsets = [24, 0], sizes = [8, 768], strides = [1, 1]} : vector<32x768xf32> to vector<8x768xf32>
    %c32 = arith.constant 32 : index
    %c0_11 = arith.constant 0 : index
    %38 = vector.load %arg3[%c32, %c0_11] : memref<57x768xf32, #tpu.memory_space<vmem>>, vector<8x768xf32>
    %c40 = arith.constant 40 : index
    %c0_12 = arith.constant 0 : index
    %39 = vector.load %arg3[%c40, %c0_12] : memref<57x768xf32, #tpu.memory_space<vmem>>, vector<8x768xf32>
    %c48 = arith.constant 48 : index
    %c0_13 = arith.constant 0 : index
    %40 = vector.load %arg3[%c48, %c0_13] : memref<57x768xf32, #tpu.memory_space<vmem>>, vector<8x768xf32>
    %c56 = arith.constant 56 : index
    %c0_14 = arith.constant 0 : index
    %41 = vector.load %arg3[%c56, %c0_14] : memref<57x768xf32, #tpu.memory_space<vmem>>, vector<1x768xf32>
    %42 = arith.mulf %38, %33 : vector<8x768xf32>
    %43 = arith.addf %34, %42 : vector<8x768xf32>
    %44 = arith.negf %43 : vector<8x768xf32>
    %45 = math.exp %44 : vector<8x768xf32>
    %cst_15 = arith.constant 1.000000e+00 : f32
    %46 = vector.broadcast %cst_15 : f32 to vector<8x768xf32>
    %47 = arith.addf %46, %45 : vector<8x768xf32>
    %48 = arith.divf %46, %47 : vector<8x768xf32>
    %49 = arith.mulf %39, %33 : vector<8x768xf32>
    %50 = arith.addf %35, %49 : vector<8x768xf32>
    %51 = arith.negf %50 : vector<8x768xf32>
    %52 = math.exp %51 : vector<8x768xf32>
    %cst_16 = arith.constant 1.000000e+00 : f32
    %53 = vector.broadcast %cst_16 : f32 to vector<8x768xf32>
    %54 = arith.addf %53, %52 : vector<8x768xf32>
    %55 = arith.divf %53, %54 : vector<8x768xf32>
    %56 = arith.mulf %55, %33 : vector<8x768xf32>
    %57 = math.tanh %36 : vector<8x768xf32>
    %58 = arith.mulf %48, %57 : vector<8x768xf32>
    %59 = arith.addf %56, %58 : vector<8x768xf32>
    %60 = arith.mulf %40, %59 : vector<8x768xf32>
    %61 = arith.addf %37, %60 : vector<8x768xf32>
    %62 = arith.negf %61 : vector<8x768xf32>
    %63 = math.exp %62 : vector<8x768xf32>
    %cst_17 = arith.constant 1.000000e+00 : f32
    %64 = vector.broadcast %cst_17 : f32 to vector<8x768xf32>
    %65 = arith.addf %64, %63 : vector<8x768xf32>
    %66 = arith.divf %64, %65 : vector<8x768xf32>
    %67 = math.tanh %59 : vector<8x768xf32>
    %68 = arith.mulf %66, %67 : vector<8x768xf32>
    %69 = vector.broadcast %41 : vector<1x768xf32> to vector<8x768xf32>
    %70 = arith.mulf %68, %69 : vector<8x768xf32>
    %c0_18 = arith.constant 0 : index
    %c128 = arith.constant 128 : index
    %71 = vector.load %arg7[%c0_18, %c128] : memref<8x1024xf32, #tpu.memory_space<vmem>>, vector<8x768xf32>
    tpu.vector_store %arg7[%c0_18, %c128], %70 {strides = array<i32>} : memref<8x1024xf32, #tpu.memory_space<vmem>>, vector<8x768xf32>,
    %c0_19 = arith.constant 0 : index
    %c0_20 = arith.constant 0 : index
    %72 = vector.load %arg8[%c0_19, %c0_20] : memref<8x768xf32, #tpu.memory_space<vmem>>, vector<8x768xf32>
    tpu.vector_store %arg8[%c0_19, %c0_20], %59 {strides = array<i32>} : memref<8x768xf32, #tpu.memory_space<vmem>>, vector<8x768xf32>,
    %73 = arith.truncf %70 : vector<8x768xf32> to vector<8x768xbf16>
    %c0_21 = arith.constant 0 : index
    %c0_22 = arith.constant 0 : index
    %c0_23 = arith.constant 0 : index
    %74 = vector.load %arg4[%c0_21, %c0_22, %c0_23] : memref<1x8x768xbf16, #tpu.memory_space<vmem>>, vector<1x8x768xbf16>
    %75 = vector.shape_cast %74 : vector<1x8x768xbf16> to vector<8x768xbf16>
    %76 = vector.shape_cast %73 : vector<8x768xbf16> to vector<1x8x768xbf16>
    tpu.vector_store %arg4[%c0_21, %c0_22, %c0_23], %76 {strides = array<i32>} : memref<1x8x768xbf16, #tpu.memory_space<vmem>>, vector<1x8x768xbf16>,
    %c7_i32 = arith.constant 7 : i32
    %77 = arith.cmpi eq, %arg0, %c7_i32 : i32
    %78 = arith.extui %77 : i1 to i32
    %c0_i32_24 = arith.constant 0 : i32
    %79 = arith.cmpi ne, %78, %c0_i32_24 : i32
    scf.if %79 {
      %c0_25 = arith.constant 0 : index
      %c0_26 = arith.constant 0 : index
      %80 = vector.load %arg5[%c0_25, %c0_26] : memref<8x768xf32, #tpu.memory_space<vmem>>, vector<8x768xf32>
      tpu.vector_store %arg5[%c0_25, %c0_26], %70 {strides = array<i32>} : memref<8x768xf32, #tpu.memory_space<vmem>>, vector<8x768xf32>,
      %c0_27 = arith.constant 0 : index
      %c0_28 = arith.constant 0 : index
      %81 = vector.load %arg6[%c0_27, %c0_28] : memref<8x768xf32, #tpu.memory_space<vmem>>, vector<8x768xf32>
      tpu.vector_store %arg6[%c0_27, %c0_28], %59 {strides = array<i32>} : memref<8x768xf32, #tpu.memory_space<vmem>>, vector<8x768xf32>,
    } else {
    }
    return
  }
  func.func @transform_0(%arg0: i32) -> (i32, i32, i32) {
    %c0_i32 = arith.constant 0 : i32
    %c0_i32_0 = arith.constant 0 : i32
    %c0_i32_1 = arith.constant 0 : i32
    return %arg0, %c0_i32, %c0_i32_0 : i32, i32, i32
  }
  func.func @transform_1(%arg0: i32) -> (i32, i32) {
    %c0_i32 = arith.constant 0 : i32
    %c0_i32_0 = arith.constant 0 : i32
    %c0_i32_1 = arith.constant 0 : i32
    return %c0_i32, %c0_i32_0 : i32, i32
  }
  func.func @transform_2(%arg0: i32) -> (i32, i32) {
    %c0_i32 = arith.constant 0 : i32
    %c0_i32_0 = arith.constant 0 : i32
    %c0_i32_1 = arith.constant 0 : i32
    return %c0_i32, %c0_i32_0 : i32, i32
  }
  func.func @transform_3(%arg0: i32) -> (i32, i32, i32) {
    %c0_i32 = arith.constant 0 : i32
    %c0_i32_0 = arith.constant 0 : i32
    %c0_i32_1 = arith.constant 0 : i32
    return %arg0, %c0_i32, %c0_i32_0 : i32, i32, i32
  }
  func.func @transform_4(%arg0: i32) -> (i32, i32) {
    %c0_i32 = arith.constant 0 : i32
    %c0_i32_0 = arith.constant 0 : i32
    %c0_i32_1 = arith.constant 0 : i32
    return %c0_i32, %c0_i32_0 : i32, i32
  }
  func.func @transform_5(%arg0: i32) -> (i32, i32) {
    %c0_i32 = arith.constant 0 : i32
    %c0_i32_0 = arith.constant 0 : i32
    %c0_i32_1 = arith.constant 0 : i32
    return %c0_i32, %c0_i32_0 : i32, i32
  }
}

module attributes {stable_mosaic.version = 11 : i64} {
  func.func @_conv_act_kernel(%arg0: i32, %arg1: memref<16x73xbf16, #tpu.memory_space<vmem>>, %arg2: memref<73x512xbf16, #tpu.memory_space<vmem>>, %arg3: memref<16x512xbf16, #tpu.memory_space<vmem>>) attributes {dimension_semantics = [#tpu.dimension_semantics<parallel>], iteration_bounds = array<i64: 2>, scalar_prefetch = 0 : i64, scratch_operands = 0 : i64, tpu.core_type = #tpu.core_type<tc>, window_params = [{pipeline_mode = #tpu.pipeline_mode<synchronous>, transform_indices = @transform_0, window_bounds = array<i64: 16, 73>}, {transform_indices = @transform_1, window_bounds = array<i64: 73, 512>}, {transform_indices = @transform_2, window_bounds = array<i64: 16, 512>}]} {
    %c0 = arith.constant 0 : index
    %c0_0 = arith.constant 0 : index
    %0 = vector.load %arg1[%c0, %c0_0] : memref<16x73xbf16, #tpu.memory_space<vmem>>, vector<16x73xbf16>
    %c0_1 = arith.constant 0 : index
    %c0_2 = arith.constant 0 : index
    %1 = vector.load %arg2[%c0_1, %c0_2] : memref<73x512xbf16, #tpu.memory_space<vmem>>, vector<73x512xbf16>
    %cst = arith.constant dense<0.000000e+00> : vector<16x512xf32>
    %2 = tpu.matmul %0, %1, %cst {dimension_numbers = #tpu.dot_dimension_numbers<[1], [0], [0], [1], [0, 0, 1, 1], [], []>} : vector<16x73xbf16>, vector<73x512xbf16>, vector<16x512xf32> -> vector<16x512xf32>
    %cst_3 = arith.constant 0.000000e+00 : f32
    %3 = vector.broadcast %cst_3 : f32 to vector<16x512xf32>
    %4 = arith.cmpf oge, %2, %3 : vector<16x512xf32>
    %cst_4 = arith.constant 2.000000e-01 : f32
    %5 = vector.broadcast %cst_4 : f32 to vector<16x512xf32>
    %6 = arith.mulf %2, %5 : vector<16x512xf32>
    %7 = arith.select %4, %2, %6 : vector<16x512xi1>, vector<16x512xf32>
    %8 = arith.truncf %7 : vector<16x512xf32> to vector<16x512xbf16>
    %c0_5 = arith.constant 0 : index
    %c0_6 = arith.constant 0 : index
    %9 = vector.load %arg3[%c0_5, %c0_6] : memref<16x512xbf16, #tpu.memory_space<vmem>>, vector<16x512xbf16>
    tpu.vector_store %arg3[%c0_5, %c0_6], %8 {strides = array<i32>} : memref<16x512xbf16, #tpu.memory_space<vmem>>, vector<16x512xbf16>,
    return
  }
  func.func @transform_0(%arg0: i32) -> (i32, i32) {
    %c0_i32 = arith.constant 0 : i32
    %c0_i32_0 = arith.constant 0 : i32
    %c0_i32_1 = arith.constant 0 : i32
    return %c0_i32, %c0_i32_0 : i32, i32
  }
  func.func @transform_1(%arg0: i32) -> (i32, i32) {
    %c0_i32 = arith.constant 0 : i32
    %c0_i32_0 = arith.constant 0 : i32
    return %c0_i32, %arg0 : i32, i32
  }
  func.func @transform_2(%arg0: i32) -> (i32, i32) {
    %c0_i32 = arith.constant 0 : i32
    %c0_i32_0 = arith.constant 0 : i32
    return %c0_i32, %arg0 : i32, i32
  }
}

module attributes {stable_mosaic.version = 11 : i64} {
  func.func @_convlstm_seq_kernel(%arg0: i32, %arg1: memref<1x16x512xbf16, #tpu.memory_space<vmem>>, %arg2: memref<64x288xbf16, #tpu.memory_space<vmem>>, %arg3: memref<113x256xf32, #tpu.memory_space<vmem>>, %arg4: memref<1x16x256xbf16, #tpu.memory_space<vmem>>, %arg5: memref<16x256xf32, #tpu.memory_space<vmem>>, %arg6: memref<16x256xf32, #tpu.memory_space<vmem>>, %arg7: memref<16x512xf32, #tpu.memory_space<vmem>>, %arg8: memref<16x256xf32, #tpu.memory_space<vmem>>) attributes {dimension_semantics = [#tpu.dimension_semantics<arbitrary>], iteration_bounds = array<i64: 8>, scalar_prefetch = 0 : i64, scratch_operands = 2 : i64, tpu.core_type = #tpu.core_type<tc>, window_params = [{transform_indices = @transform_0, window_bounds = array<i64: 1, 16, 512>}, {pipeline_mode = #tpu.pipeline_mode<synchronous>, transform_indices = @transform_1, window_bounds = array<i64: 64, 288>}, {pipeline_mode = #tpu.pipeline_mode<synchronous>, transform_indices = @transform_2, window_bounds = array<i64: 113, 256>}, {transform_indices = @transform_3, window_bounds = array<i64: 1, 16, 256>}, {pipeline_mode = #tpu.pipeline_mode<synchronous>, transform_indices = @transform_4, window_bounds = array<i64: 16, 256>}, {pipeline_mode = #tpu.pipeline_mode<synchronous>, transform_indices = @transform_5, window_bounds = array<i64: 16, 256>}]} {
    %c0_i32 = arith.constant 0 : i32
    %0 = arith.cmpi eq, %arg0, %c0_i32 : i32
    %1 = arith.extui %0 : i1 to i32
    %c0_i32_0 = arith.constant 0 : i32
    %2 = arith.cmpi ne, %1, %c0_i32_0 : i32
    scf.if %2 {
      %cst_25 = arith.constant 0.000000e+00 : f32
      %80 = vector.broadcast %cst_25 : f32 to vector<16x512xf32>
      %c0_26 = arith.constant 0 : index
      %c0_27 = arith.constant 0 : index
      %81 = vector.load %arg7[%c0_26, %c0_27] : memref<16x512xf32, #tpu.memory_space<vmem>>, vector<16x512xf32>
      tpu.vector_store %arg7[%c0_26, %c0_27], %80 {strides = array<i32>} : memref<16x512xf32, #tpu.memory_space<vmem>>, vector<16x512xf32>,
      %cst_28 = arith.constant 0.000000e+00 : f32
      %82 = vector.broadcast %cst_28 : f32 to vector<16x256xf32>
      %c0_29 = arith.constant 0 : index
      %c0_30 = arith.constant 0 : index
      %83 = vector.load %arg8[%c0_29, %c0_30] : memref<16x256xf32, #tpu.memory_space<vmem>>, vector<16x256xf32>
      tpu.vector_store %arg8[%c0_29, %c0_30], %82 {strides = array<i32>} : memref<16x256xf32, #tpu.memory_space<vmem>>, vector<16x256xf32>,
    } else {
    }
    %c0 = arith.constant 0 : index
    %c0_1 = arith.constant 0 : index
    %c0_2 = arith.constant 0 : index
    %3 = vector.load %arg1[%c0, %c0_1, %c0_2] : memref<1x16x512xbf16, #tpu.memory_space<vmem>>, vector<1x16x512xbf16>
    %4 = vector.shape_cast %3 : vector<1x16x512xbf16> to vector<16x512xbf16>
    %5 = arith.extf %4 : vector<16x512xbf16> to vector<16x512xf32>
    %c0_3 = arith.constant 0 : index
    %c0_4 = arith.constant 0 : index
    %6 = vector.load %arg7[%c0_3, %c0_4] : memref<16x512xf32, #tpu.memory_space<vmem>>, vector<16x512xf32>
    %7 = vector.extract_strided_slice %5 {offsets = [0, 117], sizes = [16, 256], strides = [1, 1]} : vector<16x512xf32> to vector<16x256xf32>
    %8 = vector.extract_strided_slice %5 {offsets = [0, 118], sizes = [16, 256], strides = [1, 1]} : vector<16x512xf32> to vector<16x256xf32>
    %9 = vector.extract_strided_slice %5 {offsets = [0, 119], sizes = [16, 256], strides = [1, 1]} : vector<16x512xf32> to vector<16x256xf32>
    %10 = vector.extract_strided_slice %5 {offsets = [0, 127], sizes = [16, 256], strides = [1, 1]} : vector<16x512xf32> to vector<16x256xf32>
    %11 = vector.extract_strided_slice %5 {offsets = [0, 128], sizes = [16, 256], strides = [1, 1]} : vector<16x512xf32> to vector<16x256xf32>
    %12 = vector.extract_strided_slice %5 {offsets = [0, 129], sizes = [16, 256], strides = [1, 1]} : vector<16x512xf32> to vector<16x256xf32>
    %13 = vector.extract_strided_slice %5 {offsets = [0, 137], sizes = [16, 256], strides = [1, 1]} : vector<16x512xf32> to vector<16x256xf32>
    %14 = vector.extract_strided_slice %5 {offsets = [0, 138], sizes = [16, 256], strides = [1, 1]} : vector<16x512xf32> to vector<16x256xf32>
    %15 = vector.extract_strided_slice %5 {offsets = [0, 139], sizes = [16, 256], strides = [1, 1]} : vector<16x512xf32> to vector<16x256xf32>
    %16 = vector.extract_strided_slice %6 {offsets = [0, 117], sizes = [16, 256], strides = [1, 1]} : vector<16x512xf32> to vector<16x256xf32>
    %17 = vector.extract_strided_slice %6 {offsets = [0, 118], sizes = [16, 256], strides = [1, 1]} : vector<16x512xf32> to vector<16x256xf32>
    %18 = vector.extract_strided_slice %6 {offsets = [0, 119], sizes = [16, 256], strides = [1, 1]} : vector<16x512xf32> to vector<16x256xf32>
    %19 = vector.extract_strided_slice %6 {offsets = [0, 127], sizes = [16, 256], strides = [1, 1]} : vector<16x512xf32> to vector<16x256xf32>
    %20 = vector.extract_strided_slice %6 {offsets = [0, 128], sizes = [16, 256], strides = [1, 1]} : vector<16x512xf32> to vector<16x256xf32>
    %21 = vector.extract_strided_slice %6 {offsets = [0, 129], sizes = [16, 256], strides = [1, 1]} : vector<16x512xf32> to vector<16x256xf32>
    %22 = vector.extract_strided_slice %6 {offsets = [0, 137], sizes = [16, 256], strides = [1, 1]} : vector<16x512xf32> to vector<16x256xf32>
    %23 = vector.extract_strided_slice %6 {offsets = [0, 138], sizes = [16, 256], strides = [1, 1]} : vector<16x512xf32> to vector<16x256xf32>
    %24 = vector.extract_strided_slice %6 {offsets = [0, 139], sizes = [16, 256], strides = [1, 1]} : vector<16x512xf32> to vector<16x256xf32>
    %25 = tpu.concatenate %7, %8, %9, %10, %11, %12, %13, %14, %15, %16, %17, %18, %19, %20, %21, %22 in 0 : vector<16x256xf32>, vector<16x256xf32>, vector<16x256xf32>, vector<16x256xf32>, vector<16x256xf32>, vector<16x256xf32>, vector<16x256xf32>, vector<16x256xf32>, vector<16x256xf32>, vector<16x256xf32>, vector<16x256xf32>, vector<16x256xf32>, vector<16x256xf32>, vector<16x256xf32>, vector<16x256xf32>, vector<16x256xf32> -> vector<256x256xf32>
    %26 = tpu.concatenate %23, %24 in 0 : vector<16x256xf32>, vector<16x256xf32> -> vector<32x256xf32>
    %27 = tpu.concatenate %25, %26 in 0 : vector<256x256xf32>, vector<32x256xf32> -> vector<288x256xf32>
    %28 = arith.truncf %27 : vector<288x256xf32> to vector<288x256xbf16>
    %c0_5 = arith.constant 0 : index
    %c0_6 = arith.constant 0 : index
    %29 = vector.load %arg2[%c0_5, %c0_6] : memref<64x288xbf16, #tpu.memory_space<vmem>>, vector<64x288xbf16>
    %cst = arith.constant dense<0.000000e+00> : vector<64x256xf32>
    %30 = tpu.matmul %29, %28, %cst {dimension_numbers = #tpu.dot_dimension_numbers<[1], [0], [0], [1], [0, 0, 1, 1], [], []>} : vector<64x288xbf16>, vector<288x256xbf16>, vector<64x256xf32> -> vector<64x256xf32>
    %c0_7 = arith.constant 0 : index
    %c0_8 = arith.constant 0 : index
    %31 = vector.load %arg3[%c0_7, %c0_8] : memref<113x256xf32, #tpu.memory_space<vmem>>, vector<64x256xf32>
    %32 = arith.addf %30, %31 : vector<64x256xf32>
    %c0_9 = arith.constant 0 : index
    %c0_10 = arith.constant 0 : index
    %33 = vector.load %arg8[%c0_9, %c0_10] : memref<16x256xf32, #tpu.memory_space<vmem>>, vector<16x256xf32>
    %34 = vector.extract_strided_slice %32 {offsets = [0, 0], sizes = [16, 256], strides = [1, 1]} : vector<64x256xf32> to vector<16x256xf32>
    %35 = vector.extract_strided_slice %32 {offsets = [16, 0], sizes = [16, 256], strides = [1, 1]} : vector<64x256xf32> to vector<16x256xf32>
    %36 = vector.extract_strided_slice %32 {offsets = [32, 0], sizes = [16, 256], strides = [1, 1]} : vector<64x256xf32> to vector<16x256xf32>
    %37 = vector.extract_strided_slice %32 {offsets = [48, 0], sizes = [16, 256], strides = [1, 1]} : vector<64x256xf32> to vector<16x256xf32>
    %c64 = arith.constant 64 : index
    %c0_11 = arith.constant 0 : index
    %38 = vector.load %arg3[%c64, %c0_11] : memref<113x256xf32, #tpu.memory_space<vmem>>, vector<16x256xf32>
    %c80 = arith.constant 80 : index
    %c0_12 = arith.constant 0 : index
    %39 = vector.load %arg3[%c80, %c0_12] : memref<113x256xf32, #tpu.memory_space<vmem>>, vector<16x256xf32>
    %c96 = arith.constant 96 : index
    %c0_13 = arith.constant 0 : index
    %40 = vector.load %arg3[%c96, %c0_13] : memref<113x256xf32, #tpu.memory_space<vmem>>, vector<16x256xf32>
    %c112 = arith.constant 112 : index
    %c0_14 = arith.constant 0 : index
    %41 = vector.load %arg3[%c112, %c0_14] : memref<113x256xf32, #tpu.memory_space<vmem>>, vector<1x256xf32>
    %42 = arith.mulf %38, %33 : vector<16x256xf32>
    %43 = arith.addf %34, %42 : vector<16x256xf32>
    %44 = arith.negf %43 : vector<16x256xf32>
    %45 = math.exp %44 : vector<16x256xf32>
    %cst_15 = arith.constant 1.000000e+00 : f32
    %46 = vector.broadcast %cst_15 : f32 to vector<16x256xf32>
    %47 = arith.addf %46, %45 : vector<16x256xf32>
    %48 = arith.divf %46, %47 : vector<16x256xf32>
    %49 = arith.mulf %39, %33 : vector<16x256xf32>
    %50 = arith.addf %35, %49 : vector<16x256xf32>
    %51 = arith.negf %50 : vector<16x256xf32>
    %52 = math.exp %51 : vector<16x256xf32>
    %cst_16 = arith.constant 1.000000e+00 : f32
    %53 = vector.broadcast %cst_16 : f32 to vector<16x256xf32>
    %54 = arith.addf %53, %52 : vector<16x256xf32>
    %55 = arith.divf %53, %54 : vector<16x256xf32>
    %56 = arith.mulf %55, %33 : vector<16x256xf32>
    %57 = math.tanh %36 : vector<16x256xf32>
    %58 = arith.mulf %48, %57 : vector<16x256xf32>
    %59 = arith.addf %56, %58 : vector<16x256xf32>
    %60 = arith.mulf %40, %59 : vector<16x256xf32>
    %61 = arith.addf %37, %60 : vector<16x256xf32>
    %62 = arith.negf %61 : vector<16x256xf32>
    %63 = math.exp %62 : vector<16x256xf32>
    %cst_17 = arith.constant 1.000000e+00 : f32
    %64 = vector.broadcast %cst_17 : f32 to vector<16x256xf32>
    %65 = arith.addf %64, %63 : vector<16x256xf32>
    %66 = arith.divf %64, %65 : vector<16x256xf32>
    %67 = math.tanh %59 : vector<16x256xf32>
    %68 = arith.mulf %66, %67 : vector<16x256xf32>
    %69 = vector.broadcast %41 : vector<1x256xf32> to vector<16x256xf32>
    %70 = arith.mulf %68, %69 : vector<16x256xf32>
    %c0_18 = arith.constant 0 : index
    %c128 = arith.constant 128 : index
    %71 = vector.load %arg7[%c0_18, %c128] : memref<16x512xf32, #tpu.memory_space<vmem>>, vector<16x256xf32>
    tpu.vector_store %arg7[%c0_18, %c128], %70 {strides = array<i32>} : memref<16x512xf32, #tpu.memory_space<vmem>>, vector<16x256xf32>,
    %c0_19 = arith.constant 0 : index
    %c0_20 = arith.constant 0 : index
    %72 = vector.load %arg8[%c0_19, %c0_20] : memref<16x256xf32, #tpu.memory_space<vmem>>, vector<16x256xf32>
    tpu.vector_store %arg8[%c0_19, %c0_20], %59 {strides = array<i32>} : memref<16x256xf32, #tpu.memory_space<vmem>>, vector<16x256xf32>,
    %73 = arith.truncf %70 : vector<16x256xf32> to vector<16x256xbf16>
    %c0_21 = arith.constant 0 : index
    %c0_22 = arith.constant 0 : index
    %c0_23 = arith.constant 0 : index
    %74 = vector.load %arg4[%c0_21, %c0_22, %c0_23] : memref<1x16x256xbf16, #tpu.memory_space<vmem>>, vector<1x16x256xbf16>
    %75 = vector.shape_cast %74 : vector<1x16x256xbf16> to vector<16x256xbf16>
    %76 = vector.shape_cast %73 : vector<16x256xbf16> to vector<1x16x256xbf16>
    tpu.vector_store %arg4[%c0_21, %c0_22, %c0_23], %76 {strides = array<i32>} : memref<1x16x256xbf16, #tpu.memory_space<vmem>>, vector<1x16x256xbf16>,
    %c7_i32 = arith.constant 7 : i32
    %77 = arith.cmpi eq, %arg0, %c7_i32 : i32
    %78 = arith.extui %77 : i1 to i32
    %c0_i32_24 = arith.constant 0 : i32
    %79 = arith.cmpi ne, %78, %c0_i32_24 : i32
    scf.if %79 {
      %c0_25 = arith.constant 0 : index
      %c0_26 = arith.constant 0 : index
      %80 = vector.load %arg5[%c0_25, %c0_26] : memref<16x256xf32, #tpu.memory_space<vmem>>, vector<16x256xf32>
      tpu.vector_store %arg5[%c0_25, %c0_26], %70 {strides = array<i32>} : memref<16x256xf32, #tpu.memory_space<vmem>>, vector<16x256xf32>,
      %c0_27 = arith.constant 0 : index
      %c0_28 = arith.constant 0 : index
      %81 = vector.load %arg6[%c0_27, %c0_28] : memref<16x256xf32, #tpu.memory_space<vmem>>, vector<16x256xf32>
      tpu.vector_store %arg6[%c0_27, %c0_28], %59 {strides = array<i32>} : memref<16x256xf32, #tpu.memory_space<vmem>>, vector<16x256xf32>,
    } else {
    }
    return
  }
  func.func @transform_0(%arg0: i32) -> (i32, i32, i32) {
    %c0_i32 = arith.constant 0 : i32
    %c0_i32_0 = arith.constant 0 : i32
    %c0_i32_1 = arith.constant 0 : i32
    return %arg0, %c0_i32, %c0_i32_0 : i32, i32, i32
  }
  func.func @transform_1(%arg0: i32) -> (i32, i32) {
    %c0_i32 = arith.constant 0 : i32
    %c0_i32_0 = arith.constant 0 : i32
    %c0_i32_1 = arith.constant 0 : i32
    return %c0_i32, %c0_i32_0 : i32, i32
  }
  func.func @transform_2(%arg0: i32) -> (i32, i32) {
    %c0_i32 = arith.constant 0 : i32
    %c0_i32_0 = arith.constant 0 : i32
    %c0_i32_1 = arith.constant 0 : i32
    return %c0_i32, %c0_i32_0 : i32, i32
  }
  func.func @transform_3(%arg0: i32) -> (i32, i32, i32) {
    %c0_i32 = arith.constant 0 : i32
    %c0_i32_0 = arith.constant 0 : i32
    %c0_i32_1 = arith.constant 0 : i32
    return %arg0, %c0_i32, %c0_i32_0 : i32, i32, i32
  }
  func.func @transform_4(%arg0: i32) -> (i32, i32) {
    %c0_i32 = arith.constant 0 : i32
    %c0_i32_0 = arith.constant 0 : i32
    %c0_i32_1 = arith.constant 0 : i32
    return %c0_i32, %c0_i32_0 : i32, i32
  }
  func.func @transform_5(%arg0: i32) -> (i32, i32) {
    %c0_i32 = arith.constant 0 : i32
    %c0_i32_0 = arith.constant 0 : i32
    %c0_i32_1 = arith.constant 0 : i32
    return %c0_i32, %c0_i32_0 : i32, i32
  }
}

</mosaic_0001>

<bundles_post_ra>
// kernel: encoder_forward.4
= control target key start
LH: loop header
LB: loop body
LE: loop exit
PB: predicated region body
PF: predicated region fallthrough
CT: control target
= control target key end

     0   :  { %s555_s9 = smov 0   ;;  %s557_s10 = smov 0   ;;  %s610_s0 = inlined_call_operand.vmem [shape: bf16[8,37], index: 0, kind: input, shape index: {}]   ;;  %s611_s1 = inlined_call_operand.vmem [shape: bf16[37,4096], index: 1, kind: input, shape index: {}]   ;;  %s612_s2 = inlined_call_operand.vmem [shape: bf16[8,4096], index: 2, kind: output, shape index: {}]  }
   0x1   :  { %s559_s11 = smov 0  }
   0x2 LB: > { %s440_s12 = sadd.s32 4294967295, %s536_s11   ;;  %s572_s13 = sadd.s32 1, %s536_s11   ;;  %s536_s11 = sphi %s559_s11, %s615_s11   ;;  %s532_s10 = sphi %s557_s10, %s614_s10   ;;  %s528_s9 = sphi %s555_s9, %s613_s9  }
   0x3   : > { %s37_s14 = ssub.s32 %s536_s11, %s572_s13  ;;  %s40_s15 = sadd.s32 1, %s532_s10 }
   0x4   : > { %p38_p0 = scmp.eq.s32.totalorder %s37_s14, 0  ;;  %p47_p1 = scmp.ne.s32.totalorder %s532_s10, %s528_s9 }
   0x5   : > { %p48_p2 = scmp.eq.s32.totalorder %s536_s11, 0  ;;  %p443_p4 = scmp.ge.s32.totalorder %s536_s11, 8 }
   0x6   : > { %s581_s16 = scalar_select %p38_p0, %s532_s10, %s40_s15  }
   0x7   : > { %p49_p3 = por %p48_p2, %p47_p1  ;;  %102 = sbr.rel (%p443_p4) target bundleno = 23 (0x17), region = 20 }
   0xe   : > { %105 = sbr.rel (!%p49_p3) target bundleno = 23 (0x17), region = 24  ;;  %s107_s17 = sand.u32 (%p49_p3), 1, %s532_s10  }
   0xf   : > { %s467_s18 = sshll.u32 (%p49_p3), %s536_s11, 4  ;;  %s470_s19 = smul.u32 (%p49_p3), 80, %s107_s17 }
  0x10   : > { %s112_s22 = scalar_lea.vmem (%p49_p3), %s611_s1, %s467_s18 }
  0x11   : > { %v125_v0 = vld [vmem:[%s112_s22] sm:$0xff] (%p49_p3)  ;;  %v127_v1 = vld [vmem:[%s112_s22 + $0x8] sm:$0xff] (%p49_p3)  ;;  %s109_s23 = scalar_lea.vmem (%p49_p3), [#allocation2], %s470_s19 }
  0x12   : > { %v129_v2 = vld [vmem:[%s112_s22 + $0x80] sm:$0xff] (%p49_p3)  ;;  %v131_v3 = vld [vmem:[%s112_s22 + $0x88] sm:$0xff] (%p49_p3)  ;;  %126 = vst [vmem:[%s109_s23] sm:$0xff] (%p49_p3), %v125_v0  ;;  %128 = vst [vmem:[%s109_s23 + $0x8] sm:$0xff] (%p49_p3), %v127_v1 }
  0x13   : > { %v133_v4 = vld [vmem:[%s112_s22 + $0x100] sm:$0xff] (%p49_p3)  ;;  %v135_v5 = vld [vmem:[%s112_s22 + $0x108] sm:$0xff] (%p49_p3)  ;;  %130 = vst [vmem:[%s109_s23 + $0x10] sm:$0xff] (%p49_p3), %v129_v2  ;;  %132 = vst [vmem:[%s109_s23 + $0x18] sm:$0xff] (%p49_p3), %v131_v3 }
  0x14   : > { %134 = vst [vmem:[%s109_s23 + $0x20] sm:$0xff] (%p49_p3), %v133_v4  ;;  %136 = vst [vmem:[%s109_s23 + $0x28] sm:$0xff] (%p49_p3), %v135_v5  ;;  %v137_v6 = vld [vmem:[%s112_s22 + $0x180] sm:$0xff] (%p49_p3)  ;;  %v139_v7 = vld [vmem:[%s112_s22 + $0x188] sm:$0xff] (%p49_p3) }
  0x15   : > { %v141_v8 = vld [vmem:[%s112_s22 + $0x200] sm:$0xff]  ;;  %138 = vst [vmem:[%s109_s23 + $0x30] sm:$0xff] %v137_v6  ;;  %140 = vst [vmem:[%s109_s23 + $0x38] sm:$0xff] %v139_v7  ;;  %v143_v9 = vld [vmem:[%s112_s22 + $0x208] sm:$0xff] }
  0x16   : > { %142 = vst [vmem:[%s109_s23 + $0x40] sm:$0xff] %v141_v8  ;;  %144 = vst [vmem:[%s109_s23 + $0x48] sm:$0xff] %v143_v9 }
  0x17 PF: > { %p446_p5 = scmp.ge.s32.totalorder %s536_s11, 1  ;;  %p149_p6 = scmp.lt.s32.totalorder %s536_s11, 9 }
  0x19   : > { %p150_p7 = pnand %p446_p5, %p149_p6 }
  0x1a   : > { %s156_s24 = sand.u32 (!%p150_p7), 1, %s528_s9   ;;  %v538_v10 = vmov (!%p150_p7), 0   ;;  %vm250_vm0 = vcmask (!%p150_p7), 1041408   ;;  %vm251_vm1 = vcmask (!%p150_p7), 1042432   ;;  %v539_v13 = vmov (!%p150_p7), 65535   ;;  %s447_s29 = sshll.u32 (!%p150_p7), %s440_s12, 2 }
  0x1b   : > { %153 = sbr.rel (%p150_p7) target bundleno = 265 (0x109), region = 47  ;;  %298 = vmatprep.mubr.bf16.mxu0 (!%p150_p7), %v538_v10  ;;  %339 = vmatprep.mubr.bf16.mxu1 (!%p150_p7), %v538_v10  ;;  %v252_v14 = vsel (!%p150_p7), %vm250_vm0, 4294967295, %v539_v13  ;;  %v185_v32 = vld [vmem:[%s610_s0] sm:$0xf] (!%p150_p7)  ;;  %vm246_vm2 = vcmask (!%p150_p7), 302080   ;;  %p179_p8 = scmp.lt.s32.totalorder (!%p150_p7), %s447_s29, 31 }
  0x1c   : > { %s471_s25 = smul.u32 (!%p150_p7), 80, %s156_s24  ;;  %v253_v20 = vsel (!%p150_p7), %vm251_vm1, %v252_v14, 0 }
  0x1e   : > { %s158_s26 = scalar_lea.vmem (!%p150_p7), [#allocation2], %s471_s25 }
  0x1f   : > { %v498_v11 = vld [vmem:[%s158_s26 + $0x4] ss:$16 sps:$4 sm:$0xff] (!%p150_p7)   ;;  %v500_v12 = vld [vmem:[%s158_s26 + $0xc] ss:$16 sps:$4 sm:$0xff] (!%p150_p7)   ;;  %v502_v15 = vld [vmem:[%s158_s26] ss:$16 sps:$4 sm:$0xff] (!%p150_p7)  }
  0x20   : > { %266 = vmatprep.subr.bf16.mxu0 (!%p150_p7), %v498_v11  ;;  %v503_v16 = vld [vmem:[%s158_s26 + $0x8] ss:$16 sps:$4 sm:$0xff] (!%p150_p7)   ;;  %307 = vmatprep.subr.bf16.mxu1 (!%p150_p7), %v500_v12  ;;  %v504_v17 = vld [vmem:[%s158_s26 + $0x24] ss:$16 sps:$4 sm:$0xff] (!%p150_p7)   ;;  %v506_v18 = vld [vmem:[%s158_s26 + $0x2c] ss:$16 sps:$4 sm:$0xff] (!%p150_p7)  }
  0x21   : > { %267 = vmatpush1.bf16.msra.mxu0 (!%p150_p7), %v502_v15  ;;  %308 = vmatpush1.bf16.msra.mxu1 (!%p150_p7), %v503_v16  ;;  %v508_v19 = vld [vmem:[%s158_s26 + $0x20] ss:$16 sps:$4 sm:$0xff] (!%p150_p7)   ;;  %v509_v21 = vld [vmem:[%s158_s26 + $0x28] ss:$16 sps:$4 sm:$0xff] (!%p150_p7)  }
  0x22   : > { %268 = vmatprep.subr.bf16.mxu0 %v504_v17  ;;  %v194_v22 = vld [vmem:[%s158_s26 + $0x40] sm:$0x77]  ;;  %v195_v23 = vld [vmem:[%s158_s26 + $0x48] sm:$0x77]  ;;  %309 = vmatprep.subr.bf16.mxu1 %v506_v18  ;;  %s617_s29 = smov (!%p179_p8, %s447_s29), 31 }
  0x23   : > { %v458_v24 = vcombine.high %v194_v22, %v194_v22  ;;  %v460_v25 = vcombine.high %v195_v23, %v195_v23  ;;  %v457_v26 = vcombine.low %v194_v22, %v194_v22  ;;  %v459_v27 = vcombine.low %v195_v23, %v195_v23  ;;  %s448_s30 = sshll.u32 %s617_s29, 2 }
  0x24   : > { %s182_s5 = scalar_lea.vmem %s612_s2, %s448_s30 }
  0x25   : > { %269 = vmatpush1.bf16.msra.mxu0 %v508_v19  ;;  %310 = vmatpush1.bf16.msra.mxu1 %v509_v21  ;;  %v258_v28 = vand.u32 %v458_v24, %v253_v20  ;;  %v264_v29 = vand.u32 %v460_v25, %v253_v20  ;;  %v255_v30 = vand.u32 %v457_v26, %v253_v20 }
  0x26   : > { %v261_v31 = vand.u32 %v459_v27, %v253_v20 }
  0x27   : > { %270 = vmatprep.subr.bf16.mxu0 %v258_v28  ;;  %311 = vmatprep.subr.bf16.mxu1 %v264_v29 }
  0x29   : > { %271 = vmatpush1.bf16.msra.mxu0 %v255_v30  ;;  %312 = vmatpush1.bf16.msra.mxu1 %v261_v31 }
  0x2c   : > { %461 = vmatmul.mubr.msk.bf16.vlgmr.msra.gmra.mrb[0].mxu0 %vm246_vm2, %v185_v32  ;;  %462 = vmatmul.mubr.msk.bf16.vlgmr.msra.gmra.mrb[0].mxu1 %vm246_vm2, %v185_v32 }
  0xff   : > { %v300_v33 = vpop.f32.mrb[0].mxu0  ;;  %v341_v34 = vpop.f32.mrb[0].mxu1 }
 0x100   : > { %vm348_vm3 = vcmp.ge.f32.partialorder %v300_v33, 0.0  ;;  %v352_v35 = vmul.f32 0.2, %v300_v33  ;;  %vm350_vm4 = vcmp.ge.f32.partialorder %v341_v34, 0.0  ;;  %v354_v36 = vmul.f32 0.2, %v341_v34 }
 0x101   : > { %v302_v37 = vpop.f32.mrb[1].mxu0  ;;  %v343_v38 = vpop.f32.mrb[1].mxu1 }
 0x102   : > { %v356_v39 = vsel %vm348_vm3, %v300_v33, %v352_v35  ;;  %vm349_vm5 = vcmp.ge.f32.partialorder %v302_v37, 0.0  ;;  %v353_v40 = vmul.f32 0.2, %v302_v37  ;;  %v304_v41 = vpop.f32.mrb[2].mxu0  ;;  %v345_v42 = vpop.f32.mrb[2].mxu1  ;;  %v358_v43 = vsel %vm350_vm4, %v341_v34, %v354_v36 }
 0x103   : > { %vm351_vm6 = vcmp.ge.f32.partialorder %v343_v38, 0.0  ;;  %v355_v44 = vmul.f32 0.2, %v343_v38  ;;  %v305_v45 = vpop.f32.mrb[3].mxu0  ;;  %v346_v46 = vpop.f32.mrb[3].mxu1 }
 0x104   : > { %v357_v47 = vsel %vm349_vm5, %v302_v37, %v353_v40 }
 0x105   : > { %v468_v48 = vpack.c.bf16 %v357_v47, %v356_v39  ;;  %v359_v49 = vsel %vm351_vm6, %v343_v38, %v355_v44 }
 0x106   : > { %v469_v50 = vpack.c.bf16 %v359_v49, %v358_v43 }
 0x107   : > { %376 = vst [vmem:[%s182_s5] sm:$0xff] %v468_v48 }
 0x108   : > { %377 = vst [vmem:[%s182_s5 + $0x8] sm:$0xff] %v469_v50 }
 0x109 PF: > { %p9_p9 = scmp.ge.s32.totalorder %s572_s13, 10   ;;  %s613_s9 = smov %s532_s10 }
 0x10a   : > { %s614_s10 = smov %s581_s16  ;;  %s615_s11 = smov %s572_s13 }
 0x10b   :  { %11 = sbr.rel (!%p9_p9) target bundleno = 2 (0x2), region = 86 }

// kernel: encoder_forward.5
= control target key start
LH: loop header
LB: loop body
LE: loop exit
PB: predicated region body
PF: predicated region fallthrough
CT: control target
= control target key end

     0   :  { %s2159_s18 = smov 0   ;;  %s3267_s0 = inlined_call_operand.vmem [shape: bf16[8,8,1024], index: 0, kind: input, shape index: {}]   ;;  %s3268_s1 = inlined_call_operand.vmem [shape: bf16[32,144], index: 1, kind: input, shape index: {}]   ;;  %s3269_s2 = inlined_call_operand.vmem [shape: f32[57,768], index: 2, kind: input, shape index: {}]   ;;  %s3270_s3 = inlined_call_operand.vmem [shape: bf16[8,8,768], index: 3, kind: output, shape index: {0}]   ;;  %s3271_s4 = inlined_call_operand.vmem [shape: f32[8,768], index: 4, kind: output, shape index: {1}]   ;;  %s3272_s5 = inlined_call_operand.vmem [shape: f32[8,768], index: 5, kind: output, shape index: {2}]  }
   0x1 LB: > { %s2165_s19 = sadd.s32 4294967295, %s2117_s18   ;;  %p1656_p0 = scmp.ge.s32.totalorder %s2117_s18, 1  ;;  %s2117_s18 = sphi %s2159_s18, %s16_s18  }
   0x2   : > { %p182_p1 = scmp.lt.s32.totalorder %s2117_s18, 9 }
   0x4   : > { %p183_p2 = pnand %p1656_p0, %p182_p1 }
   0x5   : > { %p210_p3 = scmp.lt.s32.totalorder (!%p183_p2), %s2165_s19, 7  ;;  %p1660_p4 = scmp.ne.s32.totalorder (!%p183_p2), %s2165_s19, 0 }
   0x6   : > { %186 = sbr.rel (%p183_p2) target bundleno = 722 (0x2d2), region = 32 }
   0xd   : > { %s211_s20 = scalar_select %p210_p3, %s2165_s19, 7 }
   0xe   : > { %224 = sbr.rel (%p1660_p4) target bundleno = 22 (0x16), region = 36  ;;  %v2119_v0 = vmov (!%p1660_p4), 0.0  }
   0xf   : > { %s1697_s21 = sshll.u32 %s211_s20, 5  ;;  %s1719_s22 = smul.u32 24, %s211_s20  ;;  %225 = vst [vmem:[#allocation2] sm:$0xff] (!%p1660_p4), %v2119_v0  ;;  %226 = vst [vmem:[#allocation2 + $0x8] sm:$0xff] (!%p1660_p4), %v2119_v0 }
  0x10   : > { %s2174_s25 = scalar_lea.vmem %s3267_s0, %s1697_s21  ;;  %227 = vst [vmem:[#allocation2 + $0x10] sm:$0xff] (!%p1660_p4), %v2119_v0  ;;  %228 = vst [vmem:[#allocation2 + $0x18] sm:$0xff] (!%p1660_p4), %v2119_v0 }
  0x11   : > { %s2179_s28 = scalar_lea.vmem %s3270_s3, %s1719_s22  ;;  %229 = vst [vmem:[#allocation2 + $0x20] sm:$0xff] (!%p1660_p4), %v2119_v0  ;;  %230 = vst [vmem:[#allocation2 + $0x28] sm:$0xff] (!%p1660_p4), %v2119_v0 }
  0x12   : > { %231 = vst [vmem:[#allocation2 + $0x30] sm:$0xff] (!%p1660_p4), %v2119_v0  ;;  %232 = vst [vmem:[#allocation2 + $0x38] sm:$0xff] (!%p1660_p4), %v2119_v0 }
  0x13   : > { %233 = vst [vmem:[#allocation3] sm:$0xff] (!%p1660_p4), %v2119_v0  ;;  %234 = vst [vmem:[#allocation3 + $0x8] sm:$0xff] (!%p1660_p4), %v2119_v0 }
  0x14   : > { %235 = vst [vmem:[#allocation3 + $0x10] sm:$0xff] (!%p1660_p4), %v2119_v0  ;;  %236 = vst [vmem:[#allocation3 + $0x18] sm:$0xff] (!%p1660_p4), %v2119_v0 }
  0x15   : > { %237 = vst [vmem:[#allocation3 + $0x20] sm:$0xff] %v2119_v0  ;;  %238 = vst [vmem:[#allocation3 + $0x28] sm:$0xff] %v2119_v0 }
  0x16 PF: > { %v2201_v9 = vld [vmem:[%s2174_s25] sm:$0xff]  ;;  %v2204_v10 = vld [vmem:[%s2174_s25 + $0x8] sm:$0xff]  ;;  %s2120_s29 = smov 127   ;;  %s2121_s30 = smov 126   ;;  %v241_v18 = vld [vmem:[%s2174_s25 + $0x10] sm:$0xff]  ;;  %vm280_vm0 = vcmask 1039360  }
  0x17   : > { %v2186_v3 = vld [vmem:[#allocation2 + $0x8] sm:$0xff]  ;;  %v244_v11 = vunpack.c.h.bf16 %v2201_v9  ;;  %v245_v12 = vunpack.c.l.bf16 %v2204_v10  ;;  %v243_v14 = vunpack.c.l.bf16 %v2201_v9  ;;  %v2215_v15 = vunpack.c.h.bf16 %v2204_v10  ;;  %s2122_s6 = smov 110   ;;  %s2123_s7 = smov 109   ;;  %v2253_v25 = vld [vmem:[#allocation2] sm:$0xff]  ;;  %v242_v31 = vld [vmem:[%s2174_s25 + $0x18] sm:$0xff] }
  0x18   : > { %v2192_v5 = vld [vmem:[#allocation2 + $0x10] sm:$0xff]  ;;  %v2194_v6 = vld [vmem:[#allocation2 + $0x18] sm:$0xff]  ;;  %v2232_v19 = vunpack.c.l.bf16 %v241_v18  ;;  %s2124_s8 = smov 108   ;;  %s2125_s9 = smov 92   ;;  %v2251_v24 = vunpack.c.h.bf16 %v241_v18  ;;  %v2279_v32 = vunpack.c.l.bf16 %v242_v31  ;;  %v250_v37 = vunpack.c.h.bf16 %v242_v31 }
  0x19   : > { %v2182_v1 = vld [vmem:[#allocation2 + $0x28] sm:$0xff]  ;;  %v2196_v7 = vld [vmem:[#allocation2 + $0x20] sm:$0xff]  ;;  %v1738_v8 = vpack.i.bf16 %v2192_v5, %v2186_v3  ;;  %v1753_v16 = vpack.i.bf16 %v245_v12, %v244_v11  ;;  %v1758_v17 = vpack.i.bf16 %v243_v14, %v2215_v15  ;;  %v1788_v20 = vpack.i.bf16 %v2186_v3, %v2215_v15  ;;  %s2126_s10 = smov 91   ;;  %s2127_s11 = smov 90  }
  0x1a   : > { %v2184_v2 = vld [vmem:[#allocation2 + $0x30] sm:$0xff]  ;;  %v1743_v13 = vpack.i.bf16 %v2196_v7, %v2194_v6  ;;  %v2237_v21 = vld [vmem:[#allocation2 + $0x38] sm:$0xff]  ;;  %v1798_v23 = vpack.i.bf16 %v2232_v19, %v2215_v15  ;;  %v1838_v26 = vpack.i.bf16 %v2253_v25, %v2251_v24  ;;  %v1853_v27 = vpack.i.bf16 %v2251_v24, %v2232_v19  ;;  %s2128_s12 = smov 19   ;;  %p1694_p5 = scmp.ne.s32.totalorder %s2165_s19, 7 }
  0x1b   : > { %v2190_v4 = vpack.i.bf16 %v2184_v2, %v2182_v1  ;;  %1739 = vrot.lane.b32.xlu0 %v1738_v8, %s2120_s29  ;;  %v1803_v22 = vpack.i.bf16 %v2232_v19, %v2237_v21  ;;  %v1848_v28 = vpack.i.bf16 %v2253_v25, %v2194_v6  ;;  %v1873_v29 = vpack.i.bf16 %v2194_v6, %v2192_v5 }
  0x1c   : > { %v1883_v30 = vpack.i.bf16 %v2186_v3, %v2251_v24  ;;  %v1913_v33 = vpack.i.bf16 %v2279_v32, %v2251_v24  ;;  %v1918_v34 = vpack.i.bf16 %v2182_v1, %v2196_v7  ;;  %v1928_v35 = vpack.i.bf16 %v2196_v7, %v2279_v32 }
  0x1d   : > { %1749 = vrot.lane.b32.xlu1 %v2190_v4, %s2120_s29  ;;  %v1923_v36 = vpack.i.bf16 %v2184_v2, %v2279_v32  ;;  %v1948_v38 = vpack.i.bf16 %v250_v37, %v2279_v32  ;;  %v1968_v39 = vpack.i.bf16 %v2196_v7, %v250_v37  ;;  %v1978_v40 = vpack.i.bf16 %v2237_v21, %v2184_v2 }
  0x1e   : > { %vm308_vm1 = vcmask 1031168   ;;  %vm336_vm2 = vcmask 900096   ;;  %vm362_vm3 = vcmask 891904   ;;  %vm390_vm4 = vcmask 883712  }
  0x1f   : > { %1744 = vrot.lane.b32.xlu0 %v1743_v13, %s2120_s29  ;;  %vm418_vm5 = vcmask 752640   ;;  %vm446_vm6 = vcmask 744448   ;;  %vm474_vm7 = vcmask 736256   ;;  %vm1119_vm8 = vcmask 130048  }
  0x20   : > { %vm1010_vm9 = vcmask 154624  }
  0x21   : > { %1754 = vrot.lane.b32.xlu1 %v1753_v16, %s2120_s29 }
  0x23   : > { %1759 = vrot.lane.b32.xlu0 %v1758_v17, %s2120_s29 }
  0x25   : > { %1764 = vrot.lane.b32.xlu1 %v1753_v16, %s2121_s30 }
  0x27   : > { %1769 = vrot.lane.b32.xlu0 %v1758_v17, %s2121_s30 }
  0x29   : > { %1774 = vrot.lane.b32.xlu1 %v1753_v16, %s2122_s6 }
  0x2b   : > { %1779 = vrot.lane.b32.xlu0 %v1758_v17, %s2122_s6 }
  0x2d   : > { %1784 = vrot.lane.b32.xlu1 %v1753_v16, %s2123_s7 }
  0x2f   : > { %1789 = vrot.lane.b32.xlu0 %v1788_v20, %s2123_s7 }
  0x31   : > { %1794 = vrot.lane.b32.xlu1 %v1753_v16, %s2124_s8 }
  0x33   : > { %1799 = vrot.lane.b32.xlu0 %v1798_v23, %s2124_s8 }
  0x35   : > { %1804 = vrot.lane.b32.xlu1 %v1803_v22, %s2120_s29 }
  0x37   : > { %1809 = vrot.lane.b32.xlu0 %v1753_v16, %s2125_s9 }
  0x39   : > { %1814 = vrot.lane.b32.xlu1 %v1788_v20, %s2125_s9 }
  0x3b   : > { %1819 = vrot.lane.b32.xlu0 %v1753_v16, %s2126_s10 }
  0x3d   : > { %1824 = vrot.lane.b32.xlu1 %v1798_v23, %s2126_s10 }
  0x3f   : > { %1829 = vrot.lane.b32.xlu0 %v1753_v16, %s2127_s11 }
  0x41   : > { %1834 = vrot.lane.b32.xlu1 %v1798_v23, %s2127_s11 }
  0x43   : > { %1839 = vrot.lane.b32.xlu0 %v1838_v26, %s2120_s29 }
  0x45   : > { %1844 = vrot.lane.b32.xlu1 %v1738_v8, %s2121_s30 }
  0x47   : > { %1849 = vrot.lane.b32.xlu0 %v1848_v28, %s2121_s30 }
  0x49   : > { %1854 = vrot.lane.b32.xlu1 %v1853_v27, %s2121_s30 }
  0x4b   : > { %1859 = vrot.lane.b32.xlu0 %v1853_v27, %s2122_s6 }
  0x4d   : > { %1864 = vrot.lane.b32.xlu1 %v1738_v8, %s2122_s6 }
  0x4f   : > { %1869 = vrot.lane.b32.xlu0 %v1848_v28, %s2122_s6 }
  0x51   : > { %1874 = vrot.lane.b32.xlu1 %v1873_v29, %s2123_s7 }
  0x53   : > { %1879 = vrot.lane.b32.xlu0 %v1853_v27, %s2123_s7 }
  0x55   : > { %1884 = vrot.lane.b32.xlu1 %v1883_v30, %s2124_s8 }
  0x57   : > { %1889 = vrot.lane.b32.xlu0 %v1873_v29, %s2124_s8 }
  0x59   : > { %1894 = vrot.lane.b32.xlu1 %v1873_v29, %s2125_s9 }
  0x5b   : > { %1899 = vrot.lane.b32.xlu0 %v1853_v27, %s2125_s9 }
  0x5d   : > { %1904 = vrot.lane.b32.xlu1 %v1883_v30, %s2126_s10 }
  0x5f   : > { %1909 = vrot.lane.b32.xlu0 %v1873_v29, %s2126_s10 }
  0x61   : > { %1914 = vrot.lane.b32.xlu1 %v1913_v33, %s2127_s11 }
  0x63   : > { %278 = vrot.lane.b32.xlu0 %v2279_v32, %s2120_s29 }
  0x65   : > { %1919 = vrot.lane.b32.xlu1 %v1918_v34, %s2121_s30 }
  0x67   : > { %1924 = vrot.lane.b32.xlu0 %v1923_v36, %s2121_s30 }
  0x69   : > { %1929 = vrot.lane.b32.xlu1 %v1928_v35, %s2122_s6 }
  0x6b   : > { %1934 = vrot.lane.b32.xlu0 %v2190_v4, %s2122_s6 }
  0x6d   : > { %1939 = vrot.lane.b32.xlu1 %v1918_v34, %s2123_s7 }
  0x6f   : > { %1944 = vrot.lane.b32.xlu0 %v1923_v36, %s2123_s7 }
  0x71   : > { %1949 = vrot.lane.b32.xlu1 %v1948_v38, %s2124_s8 }
  0x73   : > { %1954 = vrot.lane.b32.xlu0 %v1918_v34, %s2124_s8 }
  0x75   : > { %1959 = vrot.lane.b32.xlu1 %v1918_v34, %s2125_s9 }
  0x77   : > { %1964 = vrot.lane.b32.xlu0 %v1948_v38, %s2125_s9 }
  0x79   : > { %1969 = vrot.lane.b32.xlu1 %v1968_v39, %s2126_s10 }
  0x7b   : > { %472 = vrot.lane.b32.xlu0 %v250_v37, %s2127_s11 }
  0x7d   : > { %1979 = vrot.lane.b32.xlu1 %v1978_v40, %s2125_s9 }
  0x7f   : > { %1974 = vrot.lane.b32.xlu0 %v1978_v40, %s2124_s8 }
  0x8d   : > { %v2315_v42 = vpop.permute.xlu0 %1739 }
  0x8e   : > { %v1742_v44 = vunpack.i.h.bf16 %v2315_v42  ;;  %v1741_v45 = vunpack.i.l.bf16 %v2315_v42 }
  0x8f   : > { %v1750_v41 = vpop.permute.xlu1 %1749 }
  0x90   : > { %v2317_v43 = vunpack.i.h.bf16 %v1750_v41  ;;  %v1751_v47 = vunpack.i.l.bf16 %v1750_v41  ;;  %v2333_v54 = vsel %vm280_vm0, %v1741_v45, %v1742_v44 }
  0x91   : > { %v1745_v48 = vpop.permute.xlu0 %1744 }
  0x92   : > { %v1747_v49 = vunpack.i.h.bf16 %v1745_v48  ;;  %v1746_v50 = vunpack.i.l.bf16 %v1745_v48  ;;  %v2325_v51 = vsel %vm280_vm0, %v1751_v47, %v2317_v43 }
  0x93   : > { %v2321_v46 = vpop.permute.xlu1 %1754  ;;  %v1998_v62 = vpack.i.bf16 %v2184_v2, %v2325_v51 }
  0x94   : > { %v1757_v52 = vunpack.i.h.bf16 %v2321_v46  ;;  %v2336_v55 = vsel %vm280_vm0, %v1742_v44, %v1746_v50  ;;  %v2339_v56 = vsel %vm280_vm0, %v1746_v50, %v1747_v49  ;;  %v2349_v61 = vsel %vm280_vm0, %v1747_v49, %v1751_v47 }
  0x95   : > { %v2341_v57 = vpop.permute.xlu0 %1759  ;;  %v1983_v58 = vpack.i.bf16 %v2336_v55, %v2333_v54  ;;  %v1988_v59 = vpack.i.bf16 %v2279_v32, %v2339_v56  ;;  %v1993_v2 = vpack.i.bf16 %v2349_v61, %v2182_v1  ;;  %v1756_v38 = vunpack.i.l.bf16 %v2321_v46 }
  0x96   : > { %v1761_v60 = vunpack.i.l.bf16 %v2341_v57  ;;  %v1762_v50 = vunpack.i.h.bf16 %v2341_v57 }
  0x97   : > { %v2328_v53 = vpop.permute.xlu1 %1764  ;;  %1984 = vrot.lane.b32.xlu1 %v1983_v58, %s2126_s10  ;;  %1989 = vrot.lane.b32.xlu0 %v1988_v59, %s2126_s10  ;;  %v282_v59 = vsel %vm280_vm0, %v1756_v38, %v1757_v52 }
  0x98   : > { %v1767_v63 = vunpack.i.h.bf16 %v2328_v53  ;;  %v1766_v0 = vunpack.i.l.bf16 %v2328_v53  ;;  %v283_v8 = vsel %vm280_vm0, %v1757_v52, %v1761_v60  ;;  %v281_v52 = vsel %vm280_vm0, %v1762_v50, %v1756_v38 }
  0x99   : > { %v2364_v17 = vpop.permute.xlu0 %1769  ;;  %v714_v18 = vpack.c.bf16 %v283_v8, %v245_v12 }
  0x9a   : > { %v1772_v20 = vunpack.i.h.bf16 %v2364_v17  ;;  %v310_v23 = vsel %vm308_vm1, %v1766_v0, %v1767_v63  ;;  %v1771_v8 = vunpack.i.l.bf16 %v2364_v17 }
  0x9b   : > { %v2357_v4 = vpop.permute.xlu1 %1774  ;;  %1999 = vrot.lane.b32.xlu1 %v1998_v62, %s2126_s10  ;;  %1994 = vrot.lane.b32.xlu0 %v1993_v2, %s2126_s10  ;;  %v713_v2 = vpack.c.bf16 %v282_v59, %v244_v11  ;;  %v712_v11 = vpack.c.bf16 %v281_v52, %v243_v14 }
  0x9c   : > { %v1777_v13 = vunpack.i.h.bf16 %v2357_v4  ;;  %v1776_v16 = vunpack.i.l.bf16 %v2357_v4  ;;  %v309_v29 = vsel %vm308_vm1, %v1772_v20, %v1766_v0 }
  0x9d   : > { %v2381_v27 = vpop.permute.xlu0 %1779 }
  0x9e   : > { %v338_v26 = vsel %vm336_vm2, %v1776_v16, %v1777_v13  ;;  %v1782_v28 = vunpack.i.h.bf16 %v2381_v27 }
  0x9f   : > { %v2373_v22 = vpop.permute.xlu1 %1784  ;;  %888 = vrot.lane.b32.xlu0 %v714_v18, %s2128_s12  ;;  %v720_v10 = vpack.c.bf16 %v338_v26, %v310_v23  ;;  %v1781_v18 = vunpack.i.l.bf16 %v2381_v27 }
  0xa0   : > { %v337_v30 = vsel %vm336_vm2, %v1782_v28, %v1776_v16  ;;  %v1787_v34 = vunpack.i.h.bf16 %v2373_v22 }
  0xa1   : > { %v2389_v31 = vpop.permute.xlu0 %1789  ;;  %v719_v33 = vpack.c.bf16 %v337_v30, %v309_v29  ;;  %v339_v9 = vsel %vm336_vm2, %v1777_v13, %v1781_v18 }
  0xa2   : > { %v1791_v36 = vunpack.i.l.bf16 %v2389_v31 }
  0xa3   : > { %v2385_v12 = vpop.permute.xlu1 %1794  ;;  %900 = vrot.lane.b32.xlu0 %v720_v10, %s2128_s12  ;;  %v1786_v10 = vunpack.i.l.bf16 %v2373_v22 }
  0xa4   : > { %v1797_v35 = vunpack.i.h.bf16 %v2385_v12  ;;  %v364_v46 = vsel %vm362_vm3, %v1787_v34, %v1791_v36  ;;  %v1796_v38 = vunpack.i.l.bf16 %v2385_v12 }
  0xa5   : > { %v2399_v40 = vpop.permute.xlu0 %1799  ;;  %v363_v4 = vsel %vm362_vm3, %v1786_v10, %v1787_v34 }
  0xa6   : > { %v1801_v41 = vunpack.i.l.bf16 %v2399_v40  ;;  %v391_v13 = vsel %vm390_vm4, %v1796_v38, %v1797_v35 }
  0xa7   : > { %v2395_v37 = vpop.permute.xlu1 %1804  ;;  %898 = vrot.lane.b32.xlu0 %v719_v33, %s2128_s12  ;;  %v311_v33 = vsel %vm308_vm1, %v1767_v63, %v1771_v8 }
  0xa8   : > { %v1806_v39 = vunpack.i.l.bf16 %v2395_v37  ;;  %v392_v49 = vsel %vm390_vm4, %v1797_v35, %v1801_v41  ;;  %v721_v12 = vpack.c.bf16 %v339_v9, %v311_v33 }
  0xa9   : > { %v1810_v58 = vpop.permute.xlu0 %1809 }
  0xaa   : > { %v657_v44 = vsel %vm280_vm0, %v2317_v43, %v1806_v39  ;;  %v1812_v62 = vunpack.i.h.bf16 %v1810_v58  ;;  %v1811_v0 = vunpack.i.l.bf16 %v1810_v58 }
  0xab   : > { %v2405_v47 = vpop.permute.xlu1 %1814  ;;  %v2003_v48 = vpack.i.bf16 %v657_v44, %v2237_v21  ;;  %684 = vrot.lane.b32.xlu0 %v1806_v39, %s2126_s10  ;;  %v728_v21 = vpack.c.bf16 %v392_v49, %v364_v46  ;;  %v1807_v49 = vunpack.i.h.bf16 %v2395_v37 }
  0xac   : > { %v419_v28 = vsel %vm418_vm5, %v1811_v0, %v1812_v62  ;;  %v1816_v50 = vunpack.i.l.bf16 %v2405_v47 }
  0xad   : > { %2004 = vrot.lane.b32.xlu1 %v2003_v48, %s2126_s10  ;;  %v1820_v20 = vpop.permute.xlu0 %1819  ;;  %v284_v37 = vsel %vm280_vm0, %v1761_v60, %v1807_v49 }
  0xae   : > { %v1822_v23 = vunpack.i.h.bf16 %v1820_v20  ;;  %v1821_v26 = vunpack.i.l.bf16 %v1820_v20  ;;  %v715_v57 = vpack.c.bf16 %v284_v37, %v2215_v15 }
  0xaf   : > { %v2419_v16 = vpop.permute.xlu1 %1824  ;;  %916 = vrot.lane.b32.xlu0 %v728_v21, %s2128_s12  ;;  %v727_v21 = vpack.c.bf16 %v391_v13, %v363_v4 }
  0xb0   : > { %v447_v30 = vsel %vm446_vm6, %v1821_v26, %v1822_v23  ;;  %v733_v53 = vpack.c.bf16 %v1821_v26, %v1811_v0  ;;  %v1826_v58 = vunpack.i.l.bf16 %v2419_v16 }
  0xb1   : > { %886 = vrot.lane.b32.xlu1 %v713_v2, %s2128_s12  ;;  %v2441_v44 = vpop.permute.xlu0 %1829  ;;  %v734_v22 = vpack.c.bf16 %v447_v30, %v419_v28  ;;  %v726_v28 = vpack.c.bf16 %v1796_v38, %v1786_v10 }
  0xb2   : > { %v1832_v14 = vunpack.i.h.bf16 %v2441_v44  ;;  %v1831_v20 = vunpack.i.l.bf16 %v2441_v44  ;;  %v448_v52 = vsel %vm446_vm6, %v1822_v23, %v1826_v58 }
  0xb3   : > { %v2429_v29 = vpop.permute.xlu1 %1834  ;;  %928 = vrot.lane.b32.xlu0 %v734_v22, %s2128_s12 }
  0xb4   : > { %v1836_v39 = vunpack.i.l.bf16 %v2429_v29  ;;  %v475_v23 = vsel %vm474_vm7, %v1831_v20, %v1832_v14  ;;  %v740_v37 = vpack.c.bf16 %v2253_v25, %v1831_v20 }
  0xb5   : > { %884 = vrot.lane.b32.xlu1 %v712_v11, %s2128_s12  ;;  %v2456_v46 = vpop.permute.xlu0 %1839 }
  0xb6   : > { %v476_v48 = vsel %vm474_vm7, %v1832_v14, %v1836_v39 }
  0xb7   : > { %v2451_v63 = vpop.permute.xlu1 %1844  ;;  %926 = vrot.lane.b32.xlu0 %v733_v53, %s2128_s12  ;;  %v742_v59 = vpack.c.bf16 %v2192_v5, %v476_v48  ;;  %v420_v5 = vsel %vm418_vm5, %v1812_v62, %v1816_v50  ;;  %v1842_v62 = vunpack.i.h.bf16 %v2456_v46 }
  0xb8   : > { %v1847_v34 = vunpack.i.h.bf16 %v2451_v63  ;;  %v1846_v35 = vunpack.i.l.bf16 %v2451_v63  ;;  %v735_v30 = vpack.c.bf16 %v448_v52, %v420_v5  ;;  %v741_v63 = vpack.c.bf16 %v2186_v3, %v475_v23 }
  0xb9   : > { %902 = vrot.lane.b32.xlu1 %v721_v12, %s2128_s12  ;;  %v2468_v2 = vpop.permute.xlu0 %1849  ;;  %v509_v12 = vsel %vm280_vm0, %v1842_v62, %v1741_v45  ;;  %v1802_v62 = vunpack.i.h.bf16 %v2399_v40 }
  0xba   : > { %v1852_v60 = vunpack.i.h.bf16 %v2468_v2  ;;  %v537_v33 = vsel %vm308_vm1, %v1846_v35, %v1847_v34 }
  0xbb   : > { %v2466_v0 = vpop.permute.xlu1 %1854  ;;  %944 = vrot.lane.b32.xlu0 %v742_v59, %s2128_s12  ;;  %v748_v22 = vpack.c.bf16 %v537_v33, %v2333_v54  ;;  %v1841_v59 = vunpack.i.l.bf16 %v2456_v46 }
  0xbc   : > { %v1857_v44 = vunpack.i.h.bf16 %v2466_v0  ;;  %v1856_v9 = vunpack.i.l.bf16 %v2466_v0  ;;  %v536_v14 = vsel %vm308_vm1, %v1852_v60, %v1846_v35 }
  0xbd   : > { %914 = vrot.lane.b32.xlu1 %v727_v21, %s2128_s12  ;;  %v2486_v11 = vpop.permute.xlu0 %1859  ;;  %v747_v42 = vpack.c.bf16 %v536_v14, %v509_v12 }
  0xbe   : > { %v1862_v10 = vunpack.i.h.bf16 %v2486_v11  ;;  %v1861_v53 = vunpack.i.l.bf16 %v2486_v11  ;;  %v313_v13 = vsel %vm308_vm1, %v1856_v9, %v1857_v44  ;;  %v312_v40 = vsel %vm308_vm1, %v1771_v8, %v1856_v9 }
  0xbf   : > { %v2484_v26 = vpop.permute.xlu1 %1864  ;;  %890 = vrot.lane.b32.xlu0 %v715_v57, %s2128_s12  ;;  %v1851_v57 = vunpack.i.l.bf16 %v2468_v2  ;;  %v1827_v8 = vunpack.i.h.bf16 %v2419_v16 }
  0xc0   : > { %v341_v3 = vsel %vm336_vm2, %v1861_v53, %v1862_v10  ;;  %v1867_v45 = vunpack.i.h.bf16 %v2484_v26 }
  0xc1   : > { %912 = vrot.lane.b32.xlu1 %v726_v28, %s2128_s12  ;;  %v2499_v15 = vpop.permute.xlu0 %1869  ;;  %v723_v5 = vpack.c.bf16 %v341_v3, %v313_v13  ;;  %v393_v3 = vsel %vm390_vm4, %v1801_v41, %v1802_v62 }
  0xc2   : > { %v1871_v54 = vunpack.i.l.bf16 %v2499_v15 }
  0xc3   : > { %v2497_v38 = vpop.permute.xlu1 %1874  ;;  %956 = vrot.lane.b32.xlu0 %v748_v22, %s2128_s12  ;;  %v538_v22 = vsel %vm308_vm1, %v1847_v34, %v1851_v57 }
  0xc4   : > { %v1877_v48 = vunpack.i.h.bf16 %v2497_v38  ;;  %v1876_v35 = vunpack.i.l.bf16 %v2497_v38  ;;  %v565_v52 = vsel %vm336_vm2, %v1867_v45, %v1871_v54  ;;  %v749_v34 = vpack.c.bf16 %v538_v22, %v2336_v55 }
  0xc5   : > { %930 = vrot.lane.b32.xlu1 %v735_v30, %s2128_s12  ;;  %v2522_v21 = vpop.permute.xlu0 %1879  ;;  %v285_v30 = vsel %vm280_vm0, %v1807_v49, %v1841_v59  ;;  %v1792_v55 = vunpack.i.h.bf16 %v2389_v31 }
  0xc6   : > { %v589_v28 = vsel %vm362_vm3, %v1876_v35, %v1877_v48  ;;  %v1881_v25 = vunpack.i.l.bf16 %v2522_v21  ;;  %v716_v23 = vpack.c.bf16 %v285_v30, %v2232_v19  ;;  %v1817_v19 = vunpack.i.h.bf16 %v2405_v47 }
  0xc7   : > { %v2513_v4 = vpop.permute.xlu1 %1884  ;;  %954 = vrot.lane.b32.xlu0 %v747_v42, %s2128_s12  ;;  %v756_v33 = vpack.c.bf16 %v589_v28, %v565_v52  ;;  %v1866_v42 = vunpack.i.l.bf16 %v2484_v26  ;;  %v1872_v26 = vunpack.i.h.bf16 %v2499_v15  ;;  %v588_v30 = vsel %vm362_vm3, %v1792_v55, %v1876_v35 }
  0xc8   : > { %v365_v14 = vsel %vm362_vm3, %v1791_v36, %v1881_v25  ;;  %v1887_v13 = vunpack.i.h.bf16 %v2513_v4  ;;  %v340_v36 = vsel %vm336_vm2, %v1781_v18, %v1861_v53  ;;  %v1886_v22 = vunpack.i.l.bf16 %v2513_v4 }
  0xc9   : > { %942 = vrot.lane.b32.xlu1 %v741_v63, %s2128_s12  ;;  %v2543_v20 = vpop.permute.xlu0 %1889  ;;  %v722_v41 = vpack.c.bf16 %v340_v36, %v312_v40  ;;  %v564_v53 = vsel %vm336_vm2, %v1866_v42, %v1867_v45  ;;  %v1882_v35 = vunpack.i.h.bf16 %v2522_v21 }
  0xca   : > { %v1891_v49 = vunpack.i.l.bf16 %v2543_v20  ;;  %v755_v9 = vpack.c.bf16 %v588_v30, %v564_v53  ;;  %v761_v45 = vpack.c.bf16 %v1817_v19, %v1887_v13 }
  0xcb   : > { %v2536_v60 = vpop.permute.xlu1 %1894  ;;  %906 = vrot.lane.b32.xlu0 %v723_v5, %s2128_s12  ;;  %v729_v5 = vpack.c.bf16 %v393_v3, %v365_v14  ;;  %v563_v14 = vsel %vm336_vm2, %v1872_v26, %v1866_v42  ;;  %v366_v40 = vsel %vm362_vm3, %v1881_v25, %v1882_v35 }
  0xcc   : > { %v1896_v63 = vunpack.i.l.bf16 %v2536_v60  ;;  %v615_v52 = vsel %vm390_vm4, %v1887_v13, %v1891_v49  ;;  %v1897_v36 = vunpack.i.h.bf16 %v2536_v60  ;;  %v754_v42 = vpack.c.bf16 %v1792_v55, %v563_v14 }
  0xcd   : > { %940 = vrot.lane.b32.xlu1 %v740_v37, %s2128_s12  ;;  %v2567_v37 = vpop.permute.xlu0 %1899 }
  0xce   : > { %v642_v28 = vsel %vm418_vm5, %v1817_v19, %v1896_v63  ;;  %v1902_v31 = vunpack.i.h.bf16 %v2567_v37  ;;  %v1892_v19 = vunpack.i.h.bf16 %v2543_v20  ;;  %v643_v25 = vsel %vm418_vm5, %v1896_v63, %v1897_v36 }
  0xcf   : > { %v2557_v12 = vpop.permute.xlu1 %1904  ;;  %972 = vrot.lane.b32.xlu0 %v756_v33, %s2128_s12  ;;  %v762_v18 = vpack.c.bf16 %v642_v28, %v615_v52 }
  0xd0   : > { %v1906_v33 = vunpack.i.l.bf16 %v2557_v12  ;;  %v616_v55 = vsel %vm390_vm4, %v1891_v49, %v1892_v19 }
  0xd1   : > { %892 = vrot.lane.b32.xlu1 %v716_v23, %s2128_s12  ;;  %v1901_v23 = vunpack.i.l.bf16 %v2567_v37  ;;  %v2589_v17 = vpop.permute.xlu0 %1909 }
  0xd3   : > { %918 = vrot.lane.b32.xlu0 %v729_v5, %s2128_s12  ;;  %v2581_v27 = vpop.permute.xlu1 %1914  ;;  %v422_v3 = vsel %vm418_vm5, %v1901_v23, %v1902_v31  ;;  %v450_v5 = vsel %vm446_vm6, %v1827_v8, %v1906_v33 }
  0xd4   : > { %v737_v28 = vpack.c.bf16 %v450_v5, %v422_v3  ;;  %v1916_v49 = vunpack.i.l.bf16 %v2581_v27 }
  0xd5   : > { %958 = vrot.lane.b32.xlu1 %v749_v34, %s2128_s12  ;;  %v1837_v34 = vunpack.i.h.bf16 %v2429_v29  ;;  %v279_v52 = vpop.permute.xlu0 %278 }
  0xd6   : > { %v286_v29 = vsel %vm280_vm0, %v1841_v59, %v279_v52  ;;  %v718_v11 = vpack.c.bf16 %v279_v52, %v2279_v32 }
  0xd7   : > { %984 = vrot.lane.b32.xlu0 %v762_v18, %s2128_s12  ;;  %v2606_v13 = vpop.permute.xlu1 %1919  ;;  %v477_v26 = vsel %vm474_vm7, %v1836_v39, %v1837_v34  ;;  %v763_v39 = vpack.c.bf16 %v643_v25, %v616_v55  ;;  %v717_v63 = vpack.c.bf16 %v286_v29, %v2251_v24  ;;  %v449_v24 = vsel %vm446_vm6, %v1826_v58, %v1827_v8 }
  0xd8   : > { %v1921_v30 = vunpack.i.l.bf16 %v2606_v13  ;;  %v1922_v8 = vunpack.i.h.bf16 %v2606_v13 }
  0xd9   : > { %904 = vrot.lane.b32.xlu1 %v722_v41, %s2128_s12  ;;  %v394_v41 = vsel %vm390_vm4, %v1802_v62, %v1886_v22  ;;  %v743_v62 = vpack.c.bf16 %v2194_v6, %v477_v26  ;;  %v421_v6 = vsel %vm418_vm5, %v1816_v50, %v1901_v23  ;;  %v478_v23 = vsel %vm474_vm7, %v1837_v34, %v1916_v49 }
  0xda   : > { %v730_v18 = vpack.c.bf16 %v394_v41, %v366_v40  ;;  %v539_v59 = vsel %vm308_vm1, %v1851_v57, %v1921_v30  ;;  %v736_v47 = vpack.c.bf16 %v449_v24, %v421_v6 }
  0xdb   : > { %982 = vrot.lane.b32.xlu0 %v761_v45, %s2128_s12  ;;  %v1930_v53 = vpop.permute.xlu1 %1929  ;;  %v750_v50 = vpack.c.bf16 %v539_v59, %v2339_v56  ;;  %v744_v56 = vpack.c.bf16 %v2196_v7, %v478_v23 }
  0xdc   : > { %v1931_v45 = vunpack.i.l.bf16 %v1930_v53  ;;  %v1932_v58 = vunpack.i.h.bf16 %v1930_v53  ;;  %v2713_v53 = vld [vmem:[%s3268_s1 + $0x4] ss:$8 sps:$4 sm:$0xff]  }
  0xdd   : > { %970 = vrot.lane.b32.xlu1 %v755_v9, %s2128_s12  ;;  %v2632_v9 = vpop.permute.xlu0 %1924  ;;  %1665 = vmatprep.mubr.msk.bf16.mxu0 %vm1119_vm8, %v2713_v53 }
  0xde   : > { %v1926_v46 = vunpack.i.l.bf16 %v2632_v9  ;;  %v342_v16 = vsel %vm336_vm2, %v1862_v10, %v1931_v45  ;;  %v540_v10 = vsel %vm308_vm1, %v1921_v30, %v1922_v8  ;;  %v1912_v30 = vunpack.i.h.bf16 %v2589_v17  ;;  %1667 = vmatprep.mubr.msk.bf16.mxu1 %vm1119_vm8, %v2713_v53 }
  0xdf   : > { %934 = vrot.lane.b32.xlu0 %v737_v28, %s2128_s12  ;;  %v2645_v14 = vpop.permute.xlu1 %1939  ;;  %v751_v38 = vpack.c.bf16 %v540_v10, %v2349_v61 }
  0xe0   : > { %v1941_v2 = vunpack.i.l.bf16 %v2645_v14  ;;  %v314_v57 = vsel %vm308_vm1, %v1857_v44, %v1926_v46  ;;  %v566_v44 = vsel %vm336_vm2, %v1871_v54, %v1932_v58  ;;  %v725_v15 = vpack.c.bf16 %v1931_v45, %v1926_v46 }
  0xe1   : > { %968 = vrot.lane.b32.xlu1 %v754_v42, %s2128_s12  ;;  %v2651_v3 = vpop.permute.xlu0 %1934  ;;  %v724_v34 = vpack.c.bf16 %v342_v16, %v314_v57 }
  0xe2   : > { %v590_v5 = vsel %vm362_vm3, %v1877_v48, %v1941_v2  ;;  %v1942_v48 = vunpack.i.h.bf16 %v2645_v14  ;;  %v1936_v42 = vunpack.i.l.bf16 %v2651_v3 }
  0xe3   : > { %946 = vrot.lane.b32.xlu0 %v743_v62, %s2128_s12  ;;  %v757_v7 = vpack.c.bf16 %v590_v5, %v566_v44  ;;  %v1950_v32 = vpop.permute.xlu1 %1949  ;;  %v1907_v62 = vunpack.i.h.bf16 %v2557_v12 }
  0xe4   : > { %v567_v54 = vsel %vm336_vm2, %v1932_v58, %v1936_v42  ;;  %v591_v28 = vsel %vm362_vm3, %v1941_v2, %v1942_v48  ;;  %v1951_v59 = vunpack.i.l.bf16 %v1950_v32  ;;  %v1952_v23 = vunpack.i.h.bf16 %v1950_v32 }
  0xe5   : > { %920 = vrot.lane.b32.xlu1 %v730_v18, %s2128_s12  ;;  %v2672_v0 = vpop.permute.xlu0 %1944  ;;  %v758_v41 = vpack.c.bf16 %v591_v28, %v567_v54 }
  0xe6   : > { %v1946_v24 = vunpack.i.l.bf16 %v2672_v0  ;;  %v396_v10 = vsel %vm390_vm4, %v1951_v59, %v1952_v23 }
  0xe7   : > { %894 = vrot.lane.b32.xlu0 %v717_v63, %s2128_s12  ;;  %v2697_v61 = vpop.permute.xlu1 %1959  ;;  %v1911_v63 = vunpack.i.l.bf16 %v2589_v17  ;;  %v1927_v17 = vunpack.i.h.bf16 %v2632_v9  ;;  %v1937_v9 = vunpack.i.h.bf16 %v2651_v3 }
  0xe8   : > { %v367_v5 = vsel %vm362_vm3, %v1882_v35, %v1946_v24  ;;  %v732_v54 = vpack.c.bf16 %v396_v10, %v1946_v24 }
  0xe9   : > { %986 = vrot.lane.b32.xlu1 %v763_v39, %s2128_s12  ;;  %v2687_v52 = vpop.permute.xlu0 %1954  ;;  %v686_v58 = vsel %vm446_vm6, %v1907_v62, %v1911_v63  ;;  %v568_v13 = vsel %vm336_vm2, %v1936_v42, %v1937_v9 }
  0xea   : > { %v1956_v44 = vunpack.i.l.bf16 %v2687_v52  ;;  %v1957_v32 = vunpack.i.h.bf16 %v2687_v52 }
  0xeb   : > { %960 = vrot.lane.b32.xlu0 %v750_v50, %s2128_s12  ;;  %v2702_v26 = vpop.permute.xlu1 %1969  ;;  %v687_v50 = vsel %vm446_vm6, %v1911_v63, %v1912_v30 }
  0xec   : > { %v617_v35 = vsel %vm390_vm4, %v1892_v19, %v1956_v44  ;;  %v1971_v19 = vunpack.i.l.bf16 %v2702_v26 }
  0xed   : > { %932 = vrot.lane.b32.xlu1 %v736_v47, %s2128_s12  ;;  %v2699_v40 = vpop.permute.xlu0 %1964 }
  0xee   : > { %v1966_v60 = vunpack.i.l.bf16 %v2699_v40 }
  0xef   : > { %908 = vrot.lane.b32.xlu0 %v724_v34, %s2128_s12  ;;  %v2706_v25 = vpop.permute.xlu1 %1979  ;;  %v395_v34 = vsel %vm390_vm4, %v1886_v22, %v1951_v59 }
  0xf0   : > { %v731_v22 = vpack.c.bf16 %v395_v34, %v367_v5  ;;  %v423_v59 = vsel %vm418_vm5, %v1902_v31, %v1966_v60 }
  0xf1   : > { %948 = vrot.lane.b32.xlu1 %v744_v56, %s2128_s12  ;;  %v2704_v55 = vpop.permute.xlu0 %472 }
  0xf3   : > { %974 = vrot.lane.b32.xlu0 %v757_v7, %s2128_s12 }
  0xf5   : > { %896 = vrot.lane.b32.xlu1 %v718_v11, %s2128_s12  ;;  %v2708_v18 = vpop.permute.xlu0 %1974  ;;  %v1961_v11 = vunpack.i.l.bf16 %v2697_v61 }
  0xf6   : > { %v1977_v3 = vunpack.i.h.bf16 %v2708_v18 }
  0xf7   : > { %v644_v21 = vsel %vm418_vm5, %v1897_v36, %v1961_v11 }
  0xf8   : > { %v764_v36 = vpack.c.bf16 %v644_v21, %v617_v35 }
  0xf9   : > { %962 = vrot.lane.b32.xlu1 %v751_v38, %s2128_s12  ;;  %v1962_v38 = vunpack.i.h.bf16 %v2697_v61 }
  0xfb   : > { %v645_v28 = vsel %vm418_vm5, %v1961_v11, %v1962_v38 }
  0xfd   : > { %910 = vrot.lane.b32.xlu1 %v725_v15, %s2128_s12 }
 0x101   : > { %976 = vrot.lane.b32.xlu1 %v758_v41, %s2128_s12  ;;  %v618_v41 = vsel %vm390_vm4, %v1956_v44, %v1957_v32 }
 0x109   : > { %v1985_v29 = vpop.permute.xlu1 %1984  ;;  %v1990_v39 = vpop.permute.xlu0 %1989 }
 0x10a   : > { %v1987_v6 = vunpack.i.h.bf16 %v1985_v29  ;;  %v1986_v45 = vunpack.i.l.bf16 %v1985_v29  ;;  %v1991_v46 = vunpack.i.l.bf16 %v1990_v39  ;;  %v1992_v15 = vunpack.i.h.bf16 %v1990_v39 }
 0x10b   : > { %v1967_v29 = vunpack.i.h.bf16 %v2699_v40 }
 0x10c   : > { %v768_v47 = vpack.c.bf16 %v1986_v45, %v1907_v62  ;;  %v692_v2 = vsel %vm446_vm6, %v1986_v45, %v1987_v6  ;;  %v693_v57 = vsel %vm446_vm6, %v1987_v6, %v1991_v46  ;;  %v451_v39 = vsel %vm446_vm6, %v1906_v33, %v1992_v15 }
 0x10d   : > { %v2728_v16 = vpop.permute.xlu0 %1994  ;;  %v770_v56 = vpack.c.bf16 %v693_v57, %v687_v50  ;;  %v769_v7 = vpack.c.bf16 %v692_v2, %v686_v58  ;;  %v2763_v20 = vpop.permute.xlu1 %1999  ;;  %v765_v6 = vpack.c.bf16 %v645_v28, %v618_v41  ;;  %v1972_v45 = vunpack.i.h.bf16 %v2702_v26 }
 0x10e   : > { %996 = vrot.lane.b32.xlu1 %v768_v47, %s2128_s12  ;;  %v1997_v63 = vunpack.i.h.bf16 %v2728_v16  ;;  %v452_v24 = vsel %vm446_vm6, %v1992_v15, %v1971_v19  ;;  %v2001_v47 = vunpack.i.l.bf16 %v2763_v20  ;;  %v1996_v40 = vunpack.i.l.bf16 %v2728_v16 }
 0x10f   : > { %1000 = vrot.lane.b32.xlu0 %v770_v56, %s2128_s12  ;;  %v738_v50 = vpack.c.bf16 %v451_v39, %v423_v59  ;;  %v1917_v33 = vunpack.i.h.bf16 %v2581_v27  ;;  %v424_v26 = vsel %vm418_vm5, %v1966_v60, %v1967_v29  ;;  %v688_v31 = vsel %vm446_vm6, %v1912_v30, %v1972_v45 }
 0x110   : > { %v694_v23 = vsel %vm446_vm6, %v1991_v46, %v1997_v63  ;;  %v739_v2 = vpack.c.bf16 %v452_v24, %v424_v26  ;;  %v695_v57 = vsel %vm446_vm6, %v1997_v63, %v2001_v47  ;;  %v689_v58 = vsel %vm446_vm6, %v1972_v45, %v1996_v40 }
 0x111   : > { %v2744_v4 = vpop.permute.xlu0 %888  ;;  %v771_v46 = vpack.c.bf16 %v694_v23, %v688_v31  ;;  %v479_v34 = vsel %vm474_vm7, %v1916_v49, %v1917_v33  ;;  %v772_v30 = vpack.c.bf16 %v695_v57, %v689_v58  ;;  %v480_v11 = vsel %vm474_vm7, %v1917_v33, %v2704_v55 }
 0x112   : > { %998 = vrot.lane.b32.xlu1 %v769_v7, %s2128_s12  ;;  %v745_v10 = vpack.c.bf16 %v2182_v1, %v479_v34  ;;  %v541_v27 = vsel %vm308_vm1, %v1922_v8, %v1927_v17  ;;  %v1947_v49 = vunpack.i.h.bf16 %v2672_v0  ;;  %v1981_v0 = vunpack.i.l.bf16 %v2706_v25 }
 0x113   : > { %922 = vrot.lane.b32.xlu0 %v731_v22, %s2128_s12  ;;  %v2110_v22 = vld [vmem:[#allocation2 + $0x30] sm:$0xff]  ;;  %v752_v1 = vpack.c.bf16 %v541_v27, %v2325_v51  ;;  %v753_v28 = vpack.c.bf16 %v1927_v17, %v2317_v43  ;;  %v1982_v41 = vunpack.i.h.bf16 %v2706_v25 }
 0x114   : > { %v746_v55 = vpack.c.bf16 %v2110_v22, %v480_v11  ;;  %v592_v8 = vsel %vm362_vm3, %v1942_v48, %v1947_v49  ;;  %v646_v42 = vsel %vm418_vm5, %v1962_v38, %v1981_v0 }
 0x115   : > { %v2761_v62 = vpop.permute.xlu0 %900  ;;  %v759_v48 = vpack.c.bf16 %v592_v8, %v568_v13  ;;  %v647_v19 = vsel %vm418_vm5, %v1981_v0, %v1982_v41 }
 0x116   : > { %924 = vrot.lane.b32.xlu1 %v732_v54, %s2128_s12  ;;  %v1976_v54 = vunpack.i.l.bf16 %v2708_v18 }
 0x117   : > { %988 = vrot.lane.b32.xlu0 %v764_v36, %s2128_s12  ;;  %v760_v36 = vpack.c.bf16 %v1947_v49, %v1937_v9 }
 0x118   : > { %v619_v25 = vsel %vm390_vm4, %v1957_v32, %v1976_v54  ;;  %v620_v39 = vsel %vm390_vm4, %v1976_v54, %v1977_v3 }
 0x119   : > { %v899_v12 = vpop.permute.xlu0 %898  ;;  %v766_v32 = vpack.c.bf16 %v646_v42, %v619_v25 }
 0x11a   : > { %990 = vrot.lane.b32.xlu1 %v765_v6, %s2128_s12  ;;  %v1017_v43 = vsel %vm1010_vm9, %v899_v12, %v2761_v62  ;;  %v767_v6 = vpack.c.bf16 %v647_v19, %v620_v39 }
 0x11b   : > { %936 = vrot.lane.b32.xlu0 %v738_v50, %s2128_s12 }
 0x11d   : > { %v2796_v56 = vpop.permute.xlu0 %684 }
 0x11e   : > { %938 = vrot.lane.b32.xlu1 %v739_v2, %s2128_s12 }
 0x11f   : > { %v2785_v37 = vpop.permute.xlu1 %2004  ;;  %1002 = vrot.lane.b32.xlu0 %v771_v46, %s2128_s12 }
 0x120   : > { %v2007_v18 = vunpack.i.h.bf16 %v2785_v37  ;;  %v2006_v61 = vunpack.i.l.bf16 %v2785_v37 }
 0x121   : > { %v2806_v44 = vpop.permute.xlu0 %916 }
 0x122   : > { %1004 = vrot.lane.b32.xlu1 %v772_v30, %s2128_s12  ;;  %v696_v63 = vsel %vm446_vm6, %v2001_v47, %v2007_v18  ;;  %v697_v12 = vsel %vm446_vm6, %v2007_v18, %v2796_v56 }
 0x123   : > { %v887_v5 = vpop.permute.xlu1 %886  ;;  %950 = vrot.lane.b32.xlu0 %v745_v10, %s2128_s12 }
 0x124   : > { %v1012_v7 = vsel %vm1010_vm9, %v887_v5, %v2744_v4 }
 0x125   : > { %1126 = vmatprep.subr.bf16.mxu0 %v1012_v7  ;;  %v929_v35 = vpop.permute.xlu0 %928 }
 0x126   : > { %952 = vrot.lane.b32.xlu1 %v746_v55, %s2128_s12 }
 0x127   : > { %v885_v21 = vpop.permute.xlu1 %884  ;;  %964 = vrot.lane.b32.xlu0 %v752_v1, %s2128_s12 }
 0x128   : > { %v1011_v15 = vsel %vm1010_vm9, %v885_v21, %v887_v5 }
 0x129   : > { %1127 = vmatpush1.bf16.msra.mxu0 %v1011_v15  ;;  %v927_v60 = vpop.permute.xlu0 %926 }
 0x12a   : > { %966 = vrot.lane.b32.xlu1 %v753_v28, %s2128_s12  ;;  %v1029_v16 = vsel %vm1010_vm9, %v927_v60, %v929_v35 }
 0x12b   : > { %v2832_v51 = vpop.permute.xlu1 %902  ;;  %978 = vrot.lane.b32.xlu0 %v759_v48, %s2128_s12 }
 0x12c   : > { %v1018_v14 = vsel %vm1010_vm9, %v2761_v62, %v2832_v51  ;;  %v2002_v62 = vunpack.i.h.bf16 %v2763_v20 }
 0x12d   : > { %1128 = vmatprep.subr.bf16.mxu0 %v1018_v14  ;;  %v2853_v38 = vpop.permute.xlu0 %944 }
 0x12e   : > { %1129 = vmatpush1.bf16.msra.mxu0 %v1017_v43  ;;  %980 = vrot.lane.b32.xlu1 %v760_v36, %s2128_s12  ;;  %v690_v59 = vsel %vm446_vm6, %v1996_v40, %v2002_v62  ;;  %v691_v24 = vsel %vm446_vm6, %v2002_v62, %v2006_v61 }
 0x12f   : > { %v915_v29 = vpop.permute.xlu1 %914  ;;  %992 = vrot.lane.b32.xlu0 %v766_v32, %s2128_s12  ;;  %v773_v26 = vpack.c.bf16 %v696_v63, %v690_v59  ;;  %v774_v20 = vpack.c.bf16 %v697_v12, %v691_v24 }
 0x130   : > { %v1024_v52 = vsel %vm1010_vm9, %v915_v29, %v2806_v44 }
 0x131   : > { %1130 = vmatprep.subr.bf16.mxu0 %v1024_v52  ;;  %v891_v50 = vpop.permute.xlu0 %890 }
 0x132   : > { %994 = vrot.lane.b32.xlu1 %v767_v6, %s2128_s12  ;;  %v1013_v30 = vsel %vm1010_vm9, %v2744_v4, %v891_v50 }
 0x133   : > { %v913_v45 = vpop.permute.xlu1 %912  ;;  %1006 = vrot.lane.b32.xlu0 %v773_v26, %s2128_s12  ;;  %v2933_v26 = vld [vmem:[%s3268_s1 + $0x14] ss:$8 sps:$4 sm:$0xff]  }
 0x134   : > { %v1023_v33 = vsel %vm1010_vm9, %v913_v45, %v915_v29 }
 0x135   : > { %1131 = vmatpush1.bf16.msra.mxu0 %v1023_v33  ;;  %v957_v23 = vpop.permute.xlu0 %956 }
 0x136   : > { %1008 = vrot.lane.b32.xlu1 %v774_v20, %s2128_s12 }
 0x137   : > { %v931_v47 = vpop.permute.xlu1 %930 }
 0x138   : > { %v1030_v40 = vsel %vm1010_vm9, %v929_v35, %v931_v47 }
 0x139   : > { %1132 = vmatprep.subr.bf16.mxu0 %v1030_v40  ;;  %v955_v37 = vpop.permute.xlu0 %954 }
 0x13a   : > { %1133 = vmatpush1.bf16.msra.mxu0 %v1029_v16  ;;  %v1041_v10 = vsel %vm1010_vm9, %v955_v37, %v957_v23 }
 0x13b   : > { %v943_v2 = vpop.permute.xlu1 %942 }
 0x13c   : > { %v1036_v31 = vsel %vm1010_vm9, %v943_v2, %v2853_v38 }
 0x13d   : > { %1134 = vmatprep.subr.bf16.mxu0 %v1036_v31  ;;  %v2876_v58 = vpop.permute.xlu0 %906 }
 0x13f   : > { %v941_v57 = vpop.permute.xlu1 %940 }
 0x140   : > { %v1035_v56 = vsel %vm1010_vm9, %v941_v57, %v943_v2 }
 0x141   : > { %1135 = vmatpush1.bf16.msra.mxu0 %v1035_v56  ;;  %v973_v34 = vpop.permute.xlu0 %972  ;;  %v2948_v56 = vld [vmem:[%s3268_s1 + $0x10] ss:$8 sps:$4 sm:$0xff]  }
 0x143   : > { %v2879_v46 = vpop.permute.xlu1 %892 }
 0x144   : > { %v1014_v17 = vsel %vm1010_vm9, %v891_v50, %v2879_v46  ;;  %v2927_v50 = vld [vmem:[%s3268_s1] ss:$8 sps:$4 sm:$0xff]  }
 0x145   : > { %1179 = vmatprep.subr.bf16.mxu1 %v1014_v17  ;;  %v919_v11 = vpop.permute.xlu0 %918 }
 0x146   : > { %1180 = vmatpush1.bf16.msra.mxu1 %v1013_v30  ;;  %v1025_v0 = vsel %vm1010_vm9, %v2806_v44, %v919_v11 }
 0x147   : > { %v959_v5 = vpop.permute.xlu1 %958 }
 0x148   : > { %v1042_v7 = vsel %vm1010_vm9, %v957_v23, %v959_v5 }
 0x149   : > { %1136 = vmatprep.subr.bf16.mxu0 %v1042_v7  ;;  %v985_v9 = vpop.permute.xlu0 %984 }
 0x14a   : > { %1137 = vmatpush1.bf16.msra.mxu0 %v1041_v10 }
 0x14b   : > { %v905_v27 = vpop.permute.xlu1 %904 }
 0x14c   : > { %v1020_v49 = vsel %vm1010_vm9, %v905_v27, %v2876_v58  ;;  %v1019_v22 = vsel %vm1010_vm9, %v2832_v51, %v905_v27 }
 0x14d   : > { %1181 = vmatprep.subr.bf16.mxu1 %v1020_v49  ;;  %v983_v55 = vpop.permute.xlu0 %982 }
 0x14e   : > { %1182 = vmatpush1.bf16.msra.mxu1 %v1019_v22  ;;  %v1053_v51 = vsel %vm1010_vm9, %v983_v55, %v985_v9 }
 0x14f   : > { %v971_v4 = vpop.permute.xlu1 %970 }
 0x150   : > { %v1048_v21 = vsel %vm1010_vm9, %v971_v4, %v973_v34 }
 0x151   : > { %1138 = vmatprep.subr.bf16.mxu0 %v1048_v21  ;;  %v2892_v15 = vpop.permute.xlu0 %934 }
 0x153   : > { %v969_v35 = vpop.permute.xlu1 %968 }
 0x154   : > { %v1047_v1 = vsel %vm1010_vm9, %v969_v35, %v971_v4 }
 0x155   : > { %1139 = vmatpush1.bf16.msra.mxu0 %v1047_v1  ;;  %v947_v54 = vpop.permute.xlu0 %946 }
 0x156   : > { %v1037_v42 = vsel %vm1010_vm9, %v2853_v38, %v947_v54 }
 0x157   : > { %v2895_v13 = vpop.permute.xlu1 %920 }
 0x158   : > { %v1026_v8 = vsel %vm1010_vm9, %v919_v11, %v2895_v13 }
 0x159   : > { %1183 = vmatprep.subr.bf16.mxu1 %v1026_v8  ;;  %v895_v60 = vpop.permute.xlu0 %894 }
 0x15a   : > { %1184 = vmatpush1.bf16.msra.mxu1 %v1025_v0 }
 0x15b   : > { %v987_v28 = vpop.permute.xlu1 %986 }
 0x15c   : > { %v1054_v41 = vsel %vm1010_vm9, %v985_v9, %v987_v28 }
 0x15d   : > { %1140 = vmatprep.subr.bf16.mxu0 %v1054_v41  ;;  %v961_v25 = vpop.permute.xlu0 %960 }
 0x15e   : > { %1141 = vmatpush1.bf16.msra.mxu0 %v1053_v51  ;;  %v1043_v39 = vsel %vm1010_vm9, %v959_v5, %v961_v25 }
 0x15f   : > { %v933_v3 = vpop.permute.xlu1 %932 }
 0x160   : > { %v1032_v14 = vsel %vm1010_vm9, %v933_v3, %v2892_v15  ;;  %v1031_v48 = vsel %vm1010_vm9, %v931_v47, %v933_v3  ;;  %v1015_v47 = vsel %vm1010_vm9, %v2879_v46, %v895_v60 }
 0x161   : > { %1185 = vmatprep.subr.bf16.mxu1 %v1032_v14  ;;  %v909_v19 = vpop.permute.xlu0 %908  ;;  %v2982_v14 = vld [vmem:[#allocation3] sm:$0xff] }
 0x162   : > { %1186 = vmatpush1.bf16.msra.mxu1 %v1031_v48  ;;  %v1021_v37 = vsel %vm1010_vm9, %v2876_v58, %v909_v19  ;;  %v1291_v48 = vld [vmem:[%s3269_s2 + $0xc0] sm:$0xff] }
 0x163   : > { %v2906_v43 = vpop.permute.xlu1 %948 }
 0x164   : > { %v1038_v44 = vsel %vm1010_vm9, %v947_v54, %v2906_v43 }
 0x165   : > { %1187 = vmatprep.subr.bf16.mxu1 %v1038_v44  ;;  %v975_v61 = vpop.permute.xlu0 %974  ;;  %v1292_v44 = vld [vmem:[%s3269_s2 + $0xc8] sm:$0xff] }
 0x166   : > { %1188 = vmatpush1.bf16.msra.mxu1 %v1037_v42  ;;  %v1049_v32 = vsel %vm1010_vm9, %v973_v34, %v975_v61  ;;  %v779_v42 = vld [vmem:[%s3269_s2] sm:$0xff] }
 0x167   : > { %v897_v18 = vpop.permute.xlu1 %896 }
 0x168   : > { %v1016_v33 = vsel %vm1010_vm9, %v895_v60, %v897_v18  ;;  %v1313_v18 = vmul.f32 %v1291_v48, %v2982_v14 }
 0x16b   : > { %v2912_v36 = vpop.permute.xlu1 %962 }
 0x16c   : > { %v1044_v29 = vsel %vm1010_vm9, %v961_v25, %v2912_v36  ;;  %v1297_v25 = vld [vmem:[%s3269_s2 + $0xf0] sm:$0xff] }
 0x16d   : > { %1189 = vmatprep.subr.bf16.mxu1 %v1044_v29 }
 0x16e   : > { %1190 = vmatpush1.bf16.msra.mxu1 %v1043_v39 }
 0x16f   : > { %v911_v62 = vpop.permute.xlu1 %910 }
 0x170   : > { %v1022_v23 = vsel %vm1010_vm9, %v909_v19, %v911_v62  ;;  %v1298_v19 = vld [vmem:[%s3269_s2 + $0xf8] sm:$0xff]  ;;  %v785_v62 = vld [vmem:[%s3269_s2 + $0x30] sm:$0xff] }
 0x173   : > { %v2917_v52 = vpop.permute.xlu1 %976 }
 0x174   : > { %v1050_v38 = vsel %vm1010_vm9, %v975_v61, %v2917_v52 }
 0x175   : > { %1191 = vmatprep.subr.bf16.mxu1 %v1050_v38  ;;  %v1361_v38 = vmul.f32 %v1297_v25, %v2982_v14 }
 0x176   : > { %1192 = vmatpush1.bf16.msra.mxu1 %v1049_v32  ;;  %v786_v32 = vld [vmem:[%s3269_s2 + $0x38] sm:$0xff] }
 0x180   : > { %v997_v63 = vpop.permute.xlu1 %996 }
 0x181   : > { %v1001_v6 = vpop.permute.xlu0 %1000 }
 0x184   : > { %v999_v45 = vpop.permute.xlu1 %998 }
 0x185   : > { %v1060_v59 = vsel %vm1010_vm9, %v999_v45, %v1001_v6  ;;  %v1059_v24 = vsel %vm1010_vm9, %v997_v63, %v999_v45  ;;  %v923_v12 = vpop.permute.xlu0 %922 }
 0x186   : > { %1142 = vmatprep.subr.bf16.mxu0 %v1060_v59  ;;  %v1027_v17 = vsel %vm1010_vm9, %v2895_v13, %v923_v12 }
 0x187   : > { %1143 = vmatpush1.bf16.msra.mxu0 %v1059_v24 }
 0x188   : > { %v925_v20 = vpop.permute.xlu1 %924  ;;  %1232 = vmatprep.subr.bf16.mxu0 %v1016_v33 }
 0x189   : > { %v989_v16 = vpop.permute.xlu0 %988  ;;  %v1028_v46 = vsel %vm1010_vm9, %v923_v12, %v925_v20 }
 0x18a   : > { %1159 = vmatmul.mubr.bf16.vlgmr.msra.gmra.mrb[0].mxu0 %v2927_v50  ;;  %v1055_v57 = vsel %vm1010_vm9, %v987_v28, %v989_v16 }
 0x18b   : > { %1233 = vmatpush1.bf16.msra.mxu0 %v1015_v47  ;;  %1666 = vmatprep.mubr.msk.bf16.mxu0 %vm1119_vm8, %v2933_v26 }
 0x18c   : > { %v991_v40 = vpop.permute.xlu1 %990  ;;  %1234 = vmatprep.subr.bf16.mxu0 %v1022_v23 }
 0x18d   : > { %v1056_v2 = vsel %vm1010_vm9, %v989_v16, %v991_v40  ;;  %v937_v31 = vpop.permute.xlu0 %936 }
 0x18e   : > { %1193 = vmatprep.subr.bf16.mxu1 %v1056_v2  ;;  %v1033_v7 = vsel %vm1010_vm9, %v2892_v15, %v937_v31 }
 0x18f   : > { %1194 = vmatpush1.bf16.msra.mxu1 %v1055_v57  ;;  %1235 = vmatpush1.bf16.msra.mxu0 %v1021_v37  ;;  %v791_v57 = vld [vmem:[%s3269_s2 + $0x60] sm:$0xff] }
 0x190   : > { %v939_v34 = vpop.permute.xlu1 %938  ;;  %1236 = vmatprep.subr.bf16.mxu0 %v1028_v46 }
 0x191   : > { %v1003_v30 = vpop.permute.xlu0 %1002  ;;  %v1034_v58 = vsel %vm1010_vm9, %v937_v31, %v939_v34  ;;  %v1293_v34 = vld [vmem:[%s3269_s2 + $0xd0] sm:$0xff] }
 0x192   : > { %1169 = vmatmul.mubr.bf16.gmra.mrb[4].mxu0 %v2948_v56  ;;  %v1061_v27 = vsel %vm1010_vm9, %v1001_v6, %v1003_v30 }
 0x193   : > { %1237 = vmatpush1.bf16.msra.mxu0 %v1027_v17  ;;  %1669 = vmatprep.mubr.msk.bf16.mxu0 %vm1119_vm8, %v2713_v53 }
 0x194   : > { %v1005_v5 = vpop.permute.xlu1 %1004  ;;  %1238 = vmatprep.subr.bf16.mxu0 %v1034_v58 }
 0x195   : > { %v1062_v11 = vsel %vm1010_vm9, %v1003_v30, %v1005_v5  ;;  %v951_v10 = vpop.permute.xlu0 %950  ;;  %v3029_v30 = vld [vmem:[#allocation3 + $0x18] sm:$0xff] }
 0x196   : > { %1195 = vmatprep.subr.bf16.mxu1 %v1062_v11  ;;  %v1039_v53 = vsel %vm1010_vm9, %v2906_v43, %v951_v10  ;;  %v2987_v43 = vld [vmem:[#allocation3 + $0x8] sm:$0xff] }
 0x197   : > { %1196 = vmatpush1.bf16.msra.mxu1 %v1061_v27  ;;  %1239 = vmatpush1.bf16.msra.mxu0 %v1033_v7  ;;  %v1314_v39 = vmul.f32 %v1292_v44, %v2987_v43  ;;  %v1362_v45 = vmul.f32 %v1298_v19, %v2987_v43  ;;  %v782_v27 = vld [vmem:[%s3269_s2 + $0x18] sm:$0xff] }
 0x198   : > { %v953_v9 = vpop.permute.xlu1 %952  ;;  %1701 = vmatprep.subr.bf16.mxu1 %v1016_v33 }
 0x199   : > { %v1040_v49 = vsel %vm1010_vm9, %v951_v10, %v953_v9  ;;  %v965_v22 = vpop.permute.xlu0 %964 }
 0x19a   : > { %1212 = vmatmul.mubr.bf16.vlgmr.msra.gmra.mrb[0].mxu1 %v2927_v50  ;;  %1240 = vmatprep.subr.bf16.mxu0 %v1040_v49  ;;  %v1045_v21 = vsel %vm1010_vm9, %v2912_v36, %v965_v22  ;;  %v780_v36 = vld [vmem:[%s3269_s2 + $0x8] sm:$0xff] }
 0x19b   : > { %1710 = vmatpush1.bf16.msra.mxu1 %v1015_v47  ;;  %1241 = vmatpush1.bf16.msra.mxu0 %v1039_v53 }
 0x19c   : > { %v967_v4 = vpop.permute.xlu1 %966  ;;  %1702 = vmatprep.subr.bf16.mxu1 %v1022_v23  ;;  %1668 = vmatprep.mubr.msk.bf16.mxu1 %vm1119_vm8, %v2933_v26 }
 0x19d   : > { %v1046_v55 = vsel %vm1010_vm9, %v965_v22, %v967_v4  ;;  %v979_v35 = vpop.permute.xlu0 %978  ;;  %v787_v4 = vld [vmem:[%s3269_s2 + $0x40] sm:$0xff] }
 0x19e   : > { %1242 = vmatprep.subr.bf16.mxu0 %v1046_v55  ;;  %v1051_v13 = vsel %vm1010_vm9, %v2917_v52, %v979_v35 }
 0x19f   : > { %1711 = vmatpush1.bf16.msra.mxu1 %v1021_v37  ;;  %1243 = vmatpush1.bf16.msra.mxu0 %v1045_v21 }
 0x1a0   : > { %v981_v15 = vpop.permute.xlu1 %980  ;;  %1703 = vmatprep.subr.bf16.mxu1 %v1028_v46  ;;  %v3021_v46 = vld [vmem:[#allocation3 + $0x10] sm:$0xff] }
 0x1a1   : > { %v1052_v1 = vsel %vm1010_vm9, %v979_v35, %v981_v15  ;;  %v993_v8 = vpop.permute.xlu0 %992  ;;  %v1315_v10 = vmul.f32 %v1293_v34, %v3021_v46  ;;  %v797_v34 = vld [vmem:[%s3269_s2 + $0x90] sm:$0xff] }
 0x1a2   : > { %1244 = vmatprep.subr.bf16.mxu0 %v1052_v1  ;;  %1222 = vmatmul.mubr.bf16.gmra.mrb[4].mxu1 %v2948_v56  ;;  %v1057_v28 = vsel %vm1010_vm9, %v991_v40, %v993_v8 }
 0x1a3   : > { %1712 = vmatpush1.bf16.msra.mxu1 %v1027_v17  ;;  %1245 = vmatpush1.bf16.msra.mxu0 %v1051_v13  ;;  %v792_v17 = vld [vmem:[%s3269_s2 + $0x68] sm:$0xff] }
 0x1a4   : > { %v995_v0 = vpop.permute.xlu1 %994  ;;  %1704 = vmatprep.subr.bf16.mxu1 %v1034_v58  ;;  %1670 = vmatprep.mubr.msk.bf16.mxu1 %vm1119_vm8, %v2933_v26  ;;  %v1294_v58 = vld [vmem:[%s3269_s2 + $0xd8] sm:$0xff] }
 0x1a5   : > { %v1058_v54 = vsel %vm1010_vm9, %v993_v8, %v995_v0  ;;  %v1007_v41 = vpop.permute.xlu0 %1006  ;;  %v1316_v22 = vmul.f32 %v1294_v58, %v3029_v30 }
 0x1a6   : > { %1246 = vmatprep.subr.bf16.mxu0 %v1058_v54  ;;  %v1063_v60 = vsel %vm1010_vm9, %v1005_v5, %v1007_v41  ;;  %v781_v5 = vld [vmem:[%s3269_s2 + $0x10] sm:$0xff] }
 0x1a7   : > { %1713 = vmatpush1.bf16.msra.mxu1 %v1033_v7  ;;  %1247 = vmatpush1.bf16.msra.mxu0 %v1057_v28  ;;  %v1299_v7 = vld [vmem:[%s3269_s2 + $0x100] sm:$0xff] }
 0x1a8   : > { %v1009_v51 = vpop.permute.xlu1 %1008  ;;  %1705 = vmatprep.subr.bf16.mxu1 %v1040_v49  ;;  %v1300_v49 = vld [vmem:[%s3269_s2 + $0x108] sm:$0xff]  ;;  %v1363_v15 = vmul.f32 %v1299_v7, %v3021_v46  ;;  %v798_v7 = vld [vmem:[%s3269_s2 + $0x98] sm:$0xff] }
 0x1a9   : > { %v1064_v3 = vsel %vm1010_vm9, %v1007_v41, %v1009_v51 }
 0x1aa   : > { %1248 = vmatprep.subr.bf16.mxu0 %v1064_v3 }
 0x1ab   : > { %1714 = vmatpush1.bf16.msra.mxu1 %v1039_v53  ;;  %1249 = vmatpush1.bf16.msra.mxu0 %v1063_v60 }
 0x1ac   : > { %1706 = vmatprep.subr.bf16.mxu1 %v1046_v55 }
 0x1ae   : > { %1265 = vmatmul.mubr.bf16.vlgmr.msra.gmra.mrb[8].mxu0 %v2927_v50 }
 0x1af   : > { %1715 = vmatpush1.bf16.msra.mxu1 %v1045_v21 }
 0x1b0   : > { %1707 = vmatprep.subr.bf16.mxu1 %v1052_v1  ;;  %v788_v1 = vld [vmem:[%s3269_s2 + $0x48] sm:$0xff] }
 0x1b3   : > { %1716 = vmatpush1.bf16.msra.mxu1 %v1051_v13 }
 0x1b4   : > { %1708 = vmatprep.subr.bf16.mxu1 %v1058_v54 }
 0x1b7   : > { %1717 = vmatpush1.bf16.msra.mxu1 %v1057_v28  ;;  %v1364_v28 = vmul.f32 %v1300_v49, %v3029_v30 }
 0x1b8   : > { %1709 = vmatprep.subr.bf16.mxu1 %v1064_v3 }
 0x1bb   : > { %1718 = vmatpush1.bf16.msra.mxu1 %v1063_v60 }
 0x1be   : > { %1275 = vmatmul.mubr.bf16.vlgmr.msra.gmra.mrb[8].mxu1 %v2948_v56 }
 0x25d   : > { %v1160_v29 = vpop.f32.mrb[0].mxu0 }
 0x25e   : > { %v1161_v61 = vadd.f32 %v1160_v29, %v779_v42  ;;  %v1162_v52 = vpop.f32.mrb[1].mxu0 }
 0x25f   : > { %v1163_v63 = vadd.f32 %v1162_v52, %v780_v36  ;;  %v1164_v6 = vpop.f32.mrb[2].mxu0 }
 0x260   : > { %v1319_v59 = vadd.f32 %v1313_v18, %v1161_v61  ;;  %v1165_v24 = vadd.f32 %v1164_v6, %v785_v62  ;;  %v1166_v12 = vpop.f32.mrb[3].mxu0 }
 0x261   : > { %v1320_v50 = vadd.f32 %v1314_v39, %v1163_v63  ;;  %v1167_v33 = vadd.f32 %v1166_v12, %v786_v32  ;;  %v794_v12 = vld [vmem:[%s3269_s2 + $0x78] sm:$0xff] }
 0x262   : > { %v1673_v26 = vmul.f32 -1.442695, %v1319_v59  ;;  %v1367_v20 = vadd.f32 %v1361_v38, %v1165_v24  ;;  %v793_v59 = vld [vmem:[%s3269_s2 + $0x70] sm:$0xff] }
 0x263   : > { %v1674_v47 = vmul.f32 -1.442695, %v1320_v50  ;;  %v1368_v16 = vadd.f32 %v1362_v45, %v1167_v33  ;;  %v3066_v33 = vld [vmem:[#allocation3 + $0x20] sm:$0xff] }
 0x264   : > { %2014 = vpow2.f32 %v1673_v26  ;;  %v1679_v23 = vmul.f32 -1.442695, %v1367_v20  ;;  %v1295_v26 = vld [vmem:[%s3269_s2 + $0xe0] sm:$0xff]  ;;  %v3071_v20 = vld [vmem:[#allocation3 + $0x28] sm:$0xff] }
 0x265   : > { %2016 = vpow2.f32 %v1674_v47  ;;  %v1680_v40 = vmul.f32 -1.442695, %v1368_v16  ;;  %v1170_v2 = vpop.f32.mrb[4].mxu0 }
 0x266   : > { %2018 = vpow2.f32 %v1679_v23  ;;  %v1172_v37 = vpop.f32.mrb[5].mxu0  ;;  %v1171_v11 = vadd.f32 %v1170_v2, %v791_v57  ;;  %v1301_v2 = vld [vmem:[%s3269_s2 + $0x110] sm:$0xff] }
 0x267   : > { %2020 = vpow2.f32 %v1680_v40  ;;  %v3014_v31 = vpop.f32.mrb[6].mxu0  ;;  %v1173_v9 = vadd.f32 %v1172_v37, %v792_v17  ;;  %v1296_v40 = vld [vmem:[%s3269_s2 + $0xe8] sm:$0xff]  ;;  %v1302_v37 = vld [vmem:[%s3269_s2 + $0x118] sm:$0xff] }
 0x268   : > { %v3019_v56 = vpop.f32.mrb[7].mxu0  ;;  %2022 = vtanh.f32 %v1171_v11 }
 0x269   : > { %2024 = vtanh.f32 %v1173_v9  ;;  %v1303_v9 = vld [vmem:[%s3269_s2 + $0x120] sm:$0xff] }
 0x26d   : > { %v1213_v53 = vpop.f32.mrb[0].mxu1 }
 0x26e   : > { %v2015_v55 = vpop.eup %2014  ;;  %v1214_v21 = vadd.f32 %v1213_v53, %v781_v5  ;;  %v1215_v35 = vpop.f32.mrb[1].mxu1  ;;  %v783_v53 = vld [vmem:[%s3269_s2 + $0x20] sm:$0xff] }
 0x26f   : > { %v2017_v13 = vpop.eup %2016  ;;  %v1343_v8 = vadd.f32 1.0, %v2015_v55  ;;  %v1216_v0 = vadd.f32 %v1215_v35, %v782_v27  ;;  %v1217_v54 = vpop.f32.mrb[2].mxu1  ;;  %v1175_v35 = vadd.f32 %v3014_v31, %v797_v34  ;;  %v789_v31 = vld [vmem:[%s3269_s2 + $0x50] sm:$0xff] }
 0x270   : > { %v2019_v41 = vpop.eup %2018  ;;  %v1344_v51 = vadd.f32 1.0, %v2017_v13  ;;  %v1321_v3 = vadd.f32 %v1315_v10, %v1214_v21  ;;  %v1218_v60 = vadd.f32 %v1217_v54, %v787_v4  ;;  %v1219_v48 = vpop.f32.mrb[3].mxu1  ;;  %v1317_v10 = vmul.f32 %v1295_v26, %v3066_v33 }
 0x271   : > { %v2021_v44 = vpop.eup %2020  ;;  %2026 = vrcp.f32 %v1343_v8  ;;  %v1391_v42 = vadd.f32 1.0, %v2019_v41  ;;  %v1322_v25 = vadd.f32 %v1316_v22, %v1216_v0  ;;  %v1220_v18 = vadd.f32 %v1219_v48, %v788_v1  ;;  %v784_v1 = vld [vmem:[%s3269_s2 + $0x28] sm:$0xff] }
 0x272   : > { %2028 = vrcp.f32 %v1344_v51  ;;  %v1392_v36 = vadd.f32 1.0, %v2021_v44  ;;  %v1675_v19 = vmul.f32 -1.442695, %v1321_v3  ;;  %v1369_v29 = vadd.f32 %v1363_v15, %v1218_v60  ;;  %v2023_v45 = vpop.eup %2022 }
 0x273   : > { %2030 = vrcp.f32 %v1391_v42  ;;  %v1676_v39 = vmul.f32 -1.442695, %v1322_v25  ;;  %v1370_v62 = vadd.f32 %v1364_v28, %v1220_v18  ;;  %v2025_v24 = vpop.eup %2024  ;;  %v1318_v22 = vmul.f32 %v1296_v40, %v3071_v20 }
 0x274   : > { %2032 = vrcp.f32 %v1392_v36  ;;  %v1681_v61 = vmul.f32 -1.442695, %v1369_v29  ;;  %v1366_v4 = vmul.f32 %v1302_v37, %v3071_v20  ;;  %v1177_v0 = vadd.f32 %v3019_v56, %v798_v7  ;;  %v790_v56 = vld [vmem:[%s3269_s2 + $0x58] sm:$0xff] }
 0x275   : > { %2034 = vpow2.f32 %v1675_v19  ;;  %v1682_v52 = vmul.f32 -1.442695, %v1370_v62  ;;  %v1223_v38 = vpop.f32.mrb[4].mxu1 }
 0x276   : > { %2036 = vpow2.f32 %v1676_v39  ;;  %v1225_v32 = vpop.f32.mrb[5].mxu1  ;;  %v1224_v23 = vadd.f32 %v1223_v38, %v793_v59 }
 0x277   : > { %2038 = vpow2.f32 %v1681_v61  ;;  %v3056_v63 = vpop.f32.mrb[6].mxu1  ;;  %v1226_v58 = vadd.f32 %v1225_v32, %v794_v12 }
 0x278   : > { %2040 = vpow2.f32 %v1682_v52  ;;  %v3058_v6 = vpop.f32.mrb[7].mxu1 }
 0x279   : > { %2042 = vtanh.f32 %v1224_v23 }
 0x27a   : > { %2044 = vtanh.f32 %v1226_v58  ;;  %v799_v58 = vld [vmem:[%s3269_s2 + $0xa0] sm:$0xff] }
 0x27b   : > { %v2027_v50 = vpop.eup %2026 }
 0x27c   : > { %v2029_v47 = vpop.eup %2028  ;;  %v1421_v16 = vmul.f32 %v2027_v50, %v2023_v45 }
 0x27d   : > { %v2031_v57 = vpop.eup %2030  ;;  %v1422_v17 = vmul.f32 %v2029_v47, %v2025_v24 }
 0x27e   : > { %v2033_v5 = vpop.eup %2032  ;;  %v1409_v11 = vmul.f32 %v2031_v57, %v2982_v14  ;;  %v1365_v14 = vmul.f32 %v1301_v2, %v3066_v33 }
 0x27f   : > { %v2035_v27 = vpop.eup %2034  ;;  %v1410_v49 = vmul.f32 %v2033_v5, %v2987_v43  ;;  %v1304_v43 = vld [vmem:[%s3269_s2 + $0x128] sm:$0xff]  ;;  %v1305_v5 = vld [vmem:[%s3269_s2 + $0x130] sm:$0xff] }
 0x280   : > { %v2037_v55 = vpop.eup %2036  ;;  %v1345_v21 = vadd.f32 1.0, %v2035_v27  ;;  %v3101_v15 = vadd.f32 %v1421_v16, %v1409_v11 }
 0x281   : > { %v2039_v13 = vpop.eup %2038  ;;  %v1346_v8 = vadd.f32 1.0, %v2037_v55  ;;  %v3110_v54 = vadd.f32 %v1422_v17, %v1410_v49  ;;  %v1266_v28 = vpop.f32.mrb[8].mxu0  ;;  %v1494_v49 = vlaneseq }
 0x282   : > { %v2041_v41 = vpop.eup %2040  ;;  %2046 = vrcp.f32 %v1345_v21  ;;  %v1393_v51 = vadd.f32 1.0, %v2039_v13  ;;  %v1433_v3 = vmul.f32 %v3101_v15, %v1303_v9  ;;  %1536 = vst [vmem:[#allocation3] sm:$0xff] %v3101_v15  ;;  %v1267_v60 = vadd.f32 %v1266_v28, %v783_v53  ;;  %v1268_v48 = vpop.f32.mrb[9].mxu0  ;;  %1579 = vst [vmem:[%s3272_s5] sm:$0xff] (!%p1694_p5), %v3101_v15 }
 0x283   : > { %2048 = vrcp.f32 %v1346_v8  ;;  %v1394_v44 = vadd.f32 1.0, %v2041_v41  ;;  %v1434_v42 = vmul.f32 %v3110_v54, %v1304_v43  ;;  %1537 = vst [vmem:[#allocation3 + $0x8] sm:$0xff] %v3110_v54  ;;  %v1269_v25 = vadd.f32 %v1268_v48, %v784_v1  ;;  %v1270_v18 = vpop.f32.mrb[10].mxu0  ;;  %v2043_v47 = vpop.eup %2042  ;;  %v795_v48 = vld [vmem:[%s3269_s2 + $0x80] sm:$0xff]  ;;  %1580 = vst [vmem:[%s3272_s5 + $0x8] sm:$0xff] (!%p1694_p5), %v3110_v54 }
 0x284   : > { %2050 = vrcp.f32 %v1393_v51  ;;  %v1439_v36 = vadd.f32 %v1433_v3, %v1175_v35  ;;  %v1323_v19 = vadd.f32 %v1317_v10, %v1267_v60  ;;  %v1271_v29 = vadd.f32 %v1270_v18, %v789_v31  ;;  %v1272_v39 = vpop.f32.mrb[11].mxu0  ;;  %v2045_v16 = vpop.eup %2044  ;;  %v800_v10 = vld [vmem:[%s3269_s2 + $0xa8] sm:$0xff]  ;;  %v1672_v51 = vld [vmem:[%s3269_s2 + $0x150] ss:$8 sm:$0x30] }
 0x285   : > { %2052 = vrcp.f32 %v1394_v44  ;;  %v1440_v62 = vadd.f32 %v1434_v42, %v1177_v0  ;;  %v1324_v61 = vadd.f32 %v1318_v22, %v1269_v25  ;;  %v1273_v52 = vadd.f32 %v1272_v39, %v790_v56  ;;  %v796_v25 = vld [vmem:[%s3269_s2 + $0x88] sm:$0xff] }
 0x286   : > { %v1685_v38 = vmul.f32 -1.442695, %v1439_v36  ;;  %v1677_v32 = vmul.f32 -1.442695, %v1323_v19  ;;  %v1371_v45 = vadd.f32 %v1365_v14, %v1271_v29  ;;  %v1230_v1 = vadd.f32 %v3058_v6, %v800_v10 }
 0x287   : > { %v1686_v59 = vmul.f32 -1.442695, %v1440_v62  ;;  %v1678_v24 = vmul.f32 -1.442695, %v1324_v61  ;;  %v1372_v12 = vadd.f32 %v1366_v4, %v1273_v52  ;;  %v3158_v6 = vshrl.u32 %v1494_v49, 7  ;;  %v1307_v49 = vld [vmem:[%s3269_s2 + $0x140] sm:$0xff] }
 0x288   : > { %2054 = vpow2.f32 %v1685_v38  ;;  %v1683_v50 = vmul.f32 -1.442695, %v1371_v45 }
 0x289   : > { %2056 = vpow2.f32 %v1686_v59  ;;  %v1684_v26 = vmul.f32 -1.442695, %v1372_v12  ;;  %v1496_v39 = vsub.s32 0, %v3158_v6  ;;  %v1500_v61 = vsub.s32 1, %v3158_v6 }
 0x28a   : > { %2058 = vpow2.f32 %v1677_v32 }
 0x28b   : > { %2060 = vpow2.f32 %v1678_v24 }
 0x28c   : > { %v2047_v23 = vpop.eup %2046  ;;  %2062 = vpow2.f32 %v1683_v50 }
 0x28d   : > { %v2049_v40 = vpop.eup %2048  ;;  %2064 = vpow2.f32 %v1684_v26  ;;  %v1423_v2 = vmul.f32 %v2047_v23, %v2043_v47 }
 0x28e   : > { %v2051_v37 = vpop.eup %2050  ;;  %v1424_v57 = vmul.f32 %v2049_v40, %v2045_v16  ;;  %2066 = vtanh.f32 %v3101_v15 }
 0x28f   : > { %v2053_v34 = vpop.eup %2052  ;;  %v1411_v17 = vmul.f32 %v2051_v37, %v3021_v46  ;;  %v1306_v46 = vld [vmem:[%s3269_s2 + $0x138] sm:$0xff]  ;;  %2068 = vtanh.f32 %v3110_v54 }
 0x290   : > { %v1412_v11 = vmul.f32 %v2053_v34, %v3029_v30  ;;  %v1228_v30 = vadd.f32 %v3056_v63, %v799_v58  ;;  %v1671_v63 = vld [vmem:[%s3269_s2 + $0x150] ss:$8 sm:$0xf] }
 0x291   : > { %v3130_v7 = vadd.f32 %v1423_v2, %v1411_v17  ;;  %v1276_v27 = vpop.f32.mrb[8].mxu1  ;;  %v3166_v29 = vor.u32 %v1672_v51, %v1671_v63 }
 0x292   : > { %v2055_v9 = vpop.eup %2054  ;;  %v3138_v53 = vadd.f32 %v1424_v57, %v1412_v11  ;;  %v1278_v22 = vpop.f32.mrb[9].mxu1  ;;  %v1277_v19 = vadd.f32 %v1276_v27, %v795_v48 }
 0x293   : > { %v2057_v14 = vpop.eup %2056  ;;  %v1463_v4 = vadd.f32 1.0, %v2055_v9  ;;  %v1435_v55 = vmul.f32 %v3130_v7, %v1305_v5  ;;  %1538 = vst [vmem:[#allocation3 + $0x10] sm:$0xff] %v3130_v7  ;;  %v3144_v21 = vpop.f32.mrb[10].mxu1  ;;  %v1279_v62 = vadd.f32 %v1278_v22, %v796_v25  ;;  %v1497_v32 = vrot.slane %v3166_v29, %v1496_v39  ;;  %v801_v9 = vld [vmem:[%s3269_s2 + $0xb0] sm:$0xff]  ;;  %1581 = vst [vmem:[%s3272_s5 + $0x10] sm:$0xff] (!%p1694_p5), %v3130_v7 }
 0x294   : > { %v2059_v35 = vpop.eup %2058  ;;  %v1464_v43 = vadd.f32 1.0, %v2057_v14  ;;  %v1436_v13 = vmul.f32 %v3138_v53, %v1306_v46  ;;  %1539 = vst [vmem:[#allocation3 + $0x18] sm:$0xff] %v3138_v53  ;;  %v3150_v8 = vpop.f32.mrb[11].mxu1  ;;  %v1501_v59 = vrot.slane %v3166_v29, %v1500_v61  ;;  %v802_v14 = vld [vmem:[%s3269_s2 + $0xb8] sm:$0xff]  ;;  %v1516_v61 = vsub.s32 5, %v3158_v6  ;;  %1582 = vst [vmem:[%s3272_s5 + $0x18] sm:$0xff] (!%p1694_p5), %v3138_v53 }
 0x295   : > { %v2061_v0 = vpop.eup %2060  ;;  %2070 = vrcp.f32 %v1463_v4  ;;  %v1347_v28 = vadd.f32 1.0, %v2059_v35  ;;  %v1441_v31 = vadd.f32 %v1435_v55, %v1228_v30  ;;  %v1281_v30 = vadd.f32 %v3144_v21, %v801_v9 }
 0x296   : > { %v2063_v41 = vpop.eup %2062  ;;  %2072 = vrcp.f32 %v1464_v43  ;;  %v1348_v3 = vadd.f32 1.0, %v2061_v0  ;;  %v1442_v60 = vadd.f32 %v1436_v13, %v1230_v1  ;;  %v1504_v35 = vsub.s32 2, %v3158_v6 }
 0x297   : > { %v2065_v56 = vpop.eup %2064  ;;  %2074 = vrcp.f32 %v1347_v28  ;;  %v1395_v44 = vadd.f32 1.0, %v2063_v41  ;;  %v1687_v42 = vmul.f32 -1.442695, %v1441_v31  ;;  %v1283_v43 = vadd.f32 %v3150_v8, %v802_v14 }
 0x298   : > { %2076 = vrcp.f32 %v1348_v3  ;;  %v1396_v18 = vadd.f32 1.0, %v2065_v56  ;;  %v1688_v36 = vmul.f32 -1.442695, %v1442_v60  ;;  %v2067_v52 = vpop.eup %2066  ;;  %v1508_v13 = vsub.s32 3, %v3158_v6 }
 0x299   : > { %2078 = vrcp.f32 %v1395_v44  ;;  %v2069_v38 = vpop.eup %2068  ;;  %v1505_v41 = vrot.slane %v3166_v29, %v1504_v35 }
 0x29a   : > { %2080 = vrcp.f32 %v1396_v18  ;;  %v1509_v60 = vrot.slane %v3166_v29, %v1508_v13 }
 0x29b   : > { %2082 = vpow2.f32 %v1687_v42 }
 0x29c   : > { %2084 = vpow2.f32 %v1688_v36 }
 0x29d   : > { %2086 = vtanh.f32 %v1277_v19 }
 0x29e   : > { %2088 = vtanh.f32 %v1279_v62  ;;  %v1512_v62 = vsub.s32 4, %v3158_v6 }
 0x29f   : > { %v2071_v45 = vpop.eup %2070  ;;  %2090 = vtanh.f32 %v3130_v7 }
 0x2a0   : > { %v2073_v24 = vpop.eup %2072  ;;  %v1487_v12 = vmul.f32 %v2071_v45, %v2067_v52  ;;  %2092 = vtanh.f32 %v3138_v53 }
 0x2a1   : > { %v2075_v50 = vpop.eup %2074  ;;  %v1488_v26 = vmul.f32 %v2073_v24, %v2069_v38 }
 0x2a2   : > { %v2077_v47 = vpop.eup %2076  ;;  %v3172_v16 = vmul.f32 %v1497_v32, %v1487_v12  ;;  %v1513_v32 = vrot.slane %v3166_v29, %v1512_v62 }
 0x2a3   : > { %v2079_v23 = vpop.eup %2078  ;;  %v3174_v40 = vmul.f32 %v1501_v59, %v1488_v26  ;;  %v1517_v59 = vrot.slane %v3166_v29, %v1516_v61 }
 0x2a4   : > { %v2081_v2 = vpop.eup %2080  ;;  %1530 = vst [vmem:[#allocation2 + $0x8] sm:$0xff] %v3172_v16  ;;  %v1413_v58 = vmul.f32 %v2079_v23, %v3066_v33  ;;  %1573 = vst [vmem:[%s3271_s4] sm:$0xff] (!%p1694_p5), %v3172_v16 }
 0x2a5   : > { %v2083_v37 = vpop.eup %2082  ;;  %1531 = vst [vmem:[#allocation2 + $0x10] sm:$0xff] %v3174_v40  ;;  %v1698_v57 = vpack.c.bf16 %v3174_v40, %v3172_v16  ;;  %v1414_v10 = vmul.f32 %v2081_v2, %v3071_v20  ;;  %v1308_v20 = vld [vmem:[%s3269_s2 + $0x148] sm:$0xff]  ;;  %1574 = vst [vmem:[%s3271_s4 + $0x8] sm:$0xff] (!%p1694_p5), %v3174_v40 }
 0x2a6   : > { %v2085_v34 = vpop.eup %2084  ;;  %v1465_v17 = vadd.f32 1.0, %v2083_v37 }
 0x2a7   : > { %v2087_v5 = vpop.eup %2086  ;;  %1566 = vst [vmem:[%s2179_s28] sm:$0xff] %v1698_v57  ;;  %v1466_v11 = vadd.f32 1.0, %v2085_v34 }
 0x2a8   : > { %v2089_v46 = vpop.eup %2088  ;;  %2094 = vrcp.f32 %v1465_v17  ;;  %v1425_v27 = vmul.f32 %v2087_v5, %v2075_v50 }
 0x2a9   : > { %2096 = vrcp.f32 %v1466_v11  ;;  %v1426_v33 = vmul.f32 %v2089_v46, %v2077_v47  ;;  %v2091_v28 = vpop.eup %2090 }
 0x2aa   : > { %v3191_v22 = vadd.f32 %v1425_v27, %v1413_v58  ;;  %v2093_v21 = vpop.eup %2092 }
 0x2ab   : > { %v3199_v4 = vadd.f32 %v1426_v33, %v1414_v10 }
 0x2ac   : > { %v1437_v55 = vmul.f32 %v3191_v22, %v1307_v49  ;;  %1540 = vst [vmem:[#allocation3 + $0x20] sm:$0xff] %v3191_v22  ;;  %1583 = vst [vmem:[%s3272_s5 + $0x20] sm:$0xff] (!%p1694_p5), %v3191_v22 }
 0x2ad   : > { %v1438_v1 = vmul.f32 %v3199_v4, %v1308_v20  ;;  %1541 = vst [vmem:[#allocation3 + $0x28] sm:$0xff] %v3199_v4  ;;  %1584 = vst [vmem:[%s3272_s5 + $0x28] sm:$0xff] (!%p1694_p5), %v3199_v4 }
 0x2ae   : > { %v1443_v0 = vadd.f32 %v1437_v55, %v1281_v30 }
 0x2af   : > { %v1444_v63 = vadd.f32 %v1438_v1, %v1283_v43 }
 0x2b0   : > { %v1689_v31 = vmul.f32 -1.442695, %v1443_v0 }
 0x2b1   : > { %v1690_v51 = vmul.f32 -1.442695, %v1444_v63 }
 0x2b2   : > { %v2095_v3 = vpop.eup %2094  ;;  %2098 = vpow2.f32 %v1689_v31 }
 0x2b3   : > { %v2097_v8 = vpop.eup %2096  ;;  %v1489_v48 = vmul.f32 %v2095_v3, %v2091_v28  ;;  %2100 = vpow2.f32 %v1690_v51 }
 0x2b4   : > { %v1490_v56 = vmul.f32 %v2097_v8, %v2093_v21  ;;  %2102 = vtanh.f32 %v3191_v22 }
 0x2b5   : > { %v1526_v44 = vmul.f32 %v1505_v41, %v1489_v48  ;;  %2104 = vtanh.f32 %v3199_v4 }
 0x2b6   : > { %v1527_v42 = vmul.f32 %v1509_v60, %v1490_v56 }
 0x2b7   : > { %1532 = vst [vmem:[#allocation2 + $0x18] sm:$0xff] %v1526_v44  ;;  %1575 = vst [vmem:[%s3271_s4 + $0x10] sm:$0xff] (!%p1694_p5), %v1526_v44 }
 0x2b8   : > { %1533 = vst [vmem:[#allocation2 + $0x20] sm:$0xff] %v1527_v42  ;;  %v1699_v25 = vpack.c.bf16 %v1527_v42, %v1526_v44  ;;  %1576 = vst [vmem:[%s3271_s4 + $0x18] sm:$0xff] (!%p1694_p5), %v1527_v42 }
 0x2ba   : > { %1567 = vst [vmem:[%s2179_s28 + $0x8] sm:$0xff] %v1699_v25 }
 0x2bc   : > { %v2099_v18 = vpop.eup %2098 }
 0x2bd   : > { %v2101_v36 = vpop.eup %2100  ;;  %v1467_v19 = vadd.f32 1.0, %v2099_v18 }
 0x2be   : > { %v1468_v39 = vadd.f32 1.0, %v2101_v36  ;;  %v2103_v52 = vpop.eup %2102 }
 0x2bf   : > { %2106 = vrcp.f32 %v1467_v19  ;;  %v2105_v38 = vpop.eup %2104 }
 0x2c0   : > { %2108 = vrcp.f32 %v1468_v39 }
 0x2c9   : > { %v2107_v45 = vpop.eup %2106 }
 0x2ca   : > { %v2109_v24 = vpop.eup %2108  ;;  %v1491_v12 = vmul.f32 %v2107_v45, %v2103_v52 }
 0x2cb   : > { %v1492_v50 = vmul.f32 %v2109_v24, %v2105_v38  ;;  %1572 = sbr.rel (%p1694_p5) target bundleno = 722 (0x2d2), region = 40 }
 0x2cc   : > { %v1528_v26 = vmul.f32 %v1513_v32, %v1491_v12 }
 0x2cd   : > { %v1529_v47 = vmul.f32 %v1517_v59, %v1492_v50 }
 0x2ce   : > { %1534 = vst [vmem:[#allocation2 + $0x28] sm:$0xff] %v1528_v26  ;;  %1577 = vst [vmem:[%s3271_s4 + $0x20] sm:$0xff] (!%p1694_p5), %v1528_v26 }
 0x2cf   : > { %1535 = vst [vmem:[#allocation2 + $0x30] sm:$0xff] %v1529_v47  ;;  %v1700_v23 = vpack.c.bf16 %v1529_v47, %v1528_v26  ;;  %1578 = vst [vmem:[%s3271_s4 + $0x28] sm:$0xff] (!%p1694_p5), %v1529_v47 }
 0x2d1   : > { %1568 = vst [vmem:[%s2179_s28 + $0x10] sm:$0xff] %v1700_v23 }
 0x2d2 PF: > { %s16_s18 = sadd.s32 1, %s2117_s18  }
 0x2d3   : > { %p13_p6 = scmp.ge.s32.totalorder %s16_s18, 10  }
 0x2d5   :  { %15 = sbr.rel (!%p13_p6) target bundleno = 1 (0x1), region = 87 }

// kernel: encoder_forward.6
= control target key start
LH: loop header
LB: loop body
LE: loop exit
PB: predicated region body
PF: predicated region fallthrough
CT: control target
= control target key end

     0   :  { %s715_s9 = smov 0   ;;  %s717_s10 = smov 0   ;;  %s848_s0 = inlined_call_operand.vmem [shape: bf16[16,73], index: 0, kind: input, shape index: {}]   ;;  %s849_s1 = inlined_call_operand.vmem [shape: bf16[73,1024], index: 1, kind: input, shape index: {}]   ;;  %s850_s2 = inlined_call_operand.vmem [shape: bf16[16,1024], index: 2, kind: output, shape index: {}]  }
   0x1   :  { %s719_s11 = smov 0  }
   0x2 LB: > { %s569_s12 = sadd.s32 4294967295, %s696_s11   ;;  %s732_s13 = sadd.s32 1, %s696_s11   ;;  %s696_s11 = sphi %s719_s11, %s854_s11   ;;  %s692_s10 = sphi %s717_s10, %s853_s10   ;;  %s688_s9 = sphi %s715_s9, %s852_s9  }
   0x3   : > { %s37_s14 = ssub.s32 %s696_s11, %s732_s13  ;;  %s40_s15 = sadd.s32 1, %s692_s10 }
   0x4   : > { %p38_p0 = scmp.eq.s32.totalorder %s37_s14, 0  ;;  %p47_p1 = scmp.ne.s32.totalorder %s692_s10, %s688_s9 }
   0x5   : > { %p48_p2 = scmp.eq.s32.totalorder %s696_s11, 0  ;;  %p77_p3 = scmp.eq.s32.totalorder %s569_s12, 1 }
   0x6   : > { %s743_s16 = scalar_select %p38_p0, %s692_s10, %s40_s15  }
   0x7   : > { %p49_p4 = por %p48_p2, %p47_p1  ;;  %p745_p5 = por %p77_p3, %p47_p1 }
   0x8   : > { %p572_p6 = scmp.ge.s32.totalorder %s696_s11, 2 }
   0xa   : > { %102 = sbr.rel (%p572_p6) target bundleno = 31 (0x1f), region = 20 }
  0x11   : > { %105 = sbr.rel (!%p49_p4) target bundleno = 31 (0x1f), region = 24  ;;  %s107_s18 = sand.u32 (%p49_p4), 1, %s692_s10  }
  0x12   : > { %s609_s19 = sshll.u32 (%p49_p4), %s696_s11, 4  ;;  %s615_s20 = smul.u32 (%p49_p4), 160, %s107_s18 }
  0x13   : > { %s755_s23 = scalar_lea.vmem (%p49_p4), %s849_s1, %s609_s19 }
  0x14   : > { %v125_v0 = vld [vmem:[%s755_s23] sm:$0xff] (%p49_p4)  ;;  %v127_v1 = vld [vmem:[%s755_s23 + $0x8] sm:$0xff] (%p49_p4)  ;;  %s763_s24 = scalar_lea.vmem (%p49_p4), [#allocation2], %s615_s20 }
  0x15   : > { %v129_v2 = vld [vmem:[%s755_s23 + $0x20] sm:$0xff] (%p49_p4)  ;;  %v131_v3 = vld [vmem:[%s755_s23 + $0x28] sm:$0xff] (%p49_p4)  ;;  %126 = vst [vmem:[%s763_s24] sm:$0xff] (%p49_p4), %v125_v0  ;;  %128 = vst [vmem:[%s763_s24 + $0x8] sm:$0xff] (%p49_p4), %v127_v1 }
  0x16   : > { %v133_v4 = vld [vmem:[%s755_s23 + $0x40] sm:$0xff] (%p49_p4)  ;;  %v135_v5 = vld [vmem:[%s755_s23 + $0x48] sm:$0xff] (%p49_p4)  ;;  %130 = vst [vmem:[%s763_s24 + $0x10] sm:$0xff] (%p49_p4), %v129_v2  ;;  %132 = vst [vmem:[%s763_s24 + $0x18] sm:$0xff] (%p49_p4), %v131_v3 }
  0x17   : > { %134 = vst [vmem:[%s763_s24 + $0x20] sm:$0xff] (%p49_p4), %v133_v4  ;;  %136 = vst [vmem:[%s763_s24 + $0x28] sm:$0xff] (%p49_p4), %v135_v5  ;;  %v137_v6 = vld [vmem:[%s755_s23 + $0x60] sm:$0xff] (%p49_p4)  ;;  %v139_v7 = vld [vmem:[%s755_s23 + $0x68] sm:$0xff] (%p49_p4) }
  0x18   : > { %v141_v8 = vld [vmem:[%s755_s23 + $0x80] sm:$0xff]  ;;  %138 = vst [vmem:[%s763_s24 + $0x30] sm:$0xff] %v137_v6  ;;  %140 = vst [vmem:[%s763_s24 + $0x38] sm:$0xff] %v139_v7  ;;  %v143_v9 = vld [vmem:[%s755_s23 + $0x88] sm:$0xff] }
  0x19   : > { %142 = vst [vmem:[%s763_s24 + $0x40] sm:$0xff] %v141_v8  ;;  %v145_v10 = vld [vmem:[%s755_s23 + $0xa0] sm:$0xff]  ;;  %v147_v11 = vld [vmem:[%s755_s23 + $0xa8] sm:$0xff]  ;;  %144 = vst [vmem:[%s763_s24 + $0x48] sm:$0xff] %v143_v9 }
  0x1a   : > { %146 = vst [vmem:[%s763_s24 + $0x50] sm:$0xff] %v145_v10  ;;  %148 = vst [vmem:[%s763_s24 + $0x58] sm:$0xff] %v147_v11  ;;  %v149_v12 = vld [vmem:[%s755_s23 + $0xc0] sm:$0xff]  ;;  %v151_v13 = vld [vmem:[%s755_s23 + $0xc8] sm:$0xff] }
  0x1b   : > { %v153_v14 = vld [vmem:[%s755_s23 + $0xe0] sm:$0xff]  ;;  %150 = vst [vmem:[%s763_s24 + $0x60] sm:$0xff] %v149_v12  ;;  %152 = vst [vmem:[%s763_s24 + $0x68] sm:$0xff] %v151_v13  ;;  %v155_v15 = vld [vmem:[%s755_s23 + $0xe8] sm:$0xff] }
  0x1c   : > { %154 = vst [vmem:[%s763_s24 + $0x70] sm:$0xff] %v153_v14  ;;  %v157_v16 = vld [vmem:[%s755_s23 + $0x100] sm:$0xff]  ;;  %v159_v17 = vld [vmem:[%s755_s23 + $0x108] sm:$0xff]  ;;  %156 = vst [vmem:[%s763_s24 + $0x78] sm:$0xff] %v155_v15 }
  0x1d   : > { %158 = vst [vmem:[%s763_s24 + $0x80] sm:$0xff] %v157_v16  ;;  %160 = vst [vmem:[%s763_s24 + $0x88] sm:$0xff] %v159_v17  ;;  %v161_v18 = vld [vmem:[%s755_s23 + $0x120] sm:$0xff]  ;;  %v163_v19 = vld [vmem:[%s755_s23 + $0x128] sm:$0xff] }
  0x1e   : > { %162 = vst [vmem:[%s763_s24 + $0x90] sm:$0xff] %v161_v18  ;;  %164 = vst [vmem:[%s763_s24 + $0x98] sm:$0xff] %v163_v19 }
  0x1f PF: > { %p575_p7 = scmp.ge.s32.totalorder %s696_s11, 1  ;;  %p169_p8 = scmp.lt.s32.totalorder %s696_s11, 3 }
  0x21   : > { %p170_p9 = pnand %p575_p7, %p169_p8 }
  0x22   : > { %s176_s25 = sand.u32 (!%p170_p9), 1, %s688_s9   ;;  %v698_v20 = vmov (!%p170_p9), 0   ;;  %vm326_vm0 = vcmask (!%p170_p9), 1043456   ;;  %vm327_vm1 = vcmask (!%p170_p9), 1044480   ;;  %v699_v30 = vmov (!%p170_p9), 65535   ;;  %v673_v48 = vld [vmem:[%s848_s0] sm:$0xff] (!%p170_p9)  }
  0x23   : > { %173 = sbr.rel (%p170_p9) target bundleno = 293 (0x125), region = 47  ;;  %374 = vmatprep.mubr.bf16.mxu0 (!%p170_p9), %v698_v20  ;;  %417 = vmatprep.mubr.bf16.mxu1 (!%p170_p9), %v698_v20  ;;  %v328_v31 = vsel (!%p170_p9), %vm326_vm0, 4294967295, %v699_v30  ;;  %vm322_vm2 = vcmask (!%p170_p9), 596992   ;;  %s576_s30 = sshll.u32 (!%p170_p9), %s176_s25, 5 }
  0x24   : > { %s616_s26 = smul.u32 (!%p170_p9), 160, %s176_s25  ;;  %v329_v39 = vsel (!%p170_p9), %vm327_vm1, %v328_v31, 0  ;;  %s195_s3 = scalar_lea.vmem (!%p170_p9), [#allocation3], %s576_s30 }
  0x26   : > { %s804_s27 = scalar_lea.vmem (!%p170_p9), [#allocation2], %s616_s26 }
  0x27   : > { %v643_v21 = vld [vmem:[%s804_s27 + $0x4] ss:$16 sps:$4 sm:$0xff] (!%p170_p9)   ;;  %v645_v22 = vld [vmem:[%s804_s27 + $0xc] ss:$16 sps:$4 sm:$0xff] (!%p170_p9)   ;;  %v647_v23 = vld [vmem:[%s804_s27] ss:$16 sps:$4 sm:$0xff] (!%p170_p9)  }
  0x28   : > { %342 = vmatprep.subr.bf16.mxu0 (!%p170_p9), %v643_v21  ;;  %v648_v24 = vld [vmem:[%s804_s27 + $0x8] ss:$16 sps:$4 sm:$0xff] (!%p170_p9)   ;;  %385 = vmatprep.subr.bf16.mxu1 (!%p170_p9), %v645_v22  ;;  %v649_v25 = vld [vmem:[%s804_s27 + $0x24] ss:$16 sps:$4 sm:$0xff] (!%p170_p9)   ;;  %v651_v26 = vld [vmem:[%s804_s27 + $0x2c] ss:$16 sps:$4 sm:$0xff] (!%p170_p9)  }
  0x29   : > { %343 = vmatpush1.bf16.msra.mxu0 (!%p170_p9), %v647_v23  ;;  %386 = vmatpush1.bf16.msra.mxu1 (!%p170_p9), %v648_v24  ;;  %v653_v27 = vld [vmem:[%s804_s27 + $0x20] ss:$16 sps:$4 sm:$0xff] (!%p170_p9)   ;;  %v654_v28 = vld [vmem:[%s804_s27 + $0x28] ss:$16 sps:$4 sm:$0xff] (!%p170_p9)   ;;  %v655_v29 = vld [vmem:[%s804_s27 + $0x44] ss:$16 sps:$4 sm:$0xff] (!%p170_p9)  }
  0x2a   : > { %344 = vmatprep.subr.bf16.mxu0 %v649_v25  ;;  %387 = vmatprep.subr.bf16.mxu1 %v651_v26  ;;  %v657_v32 = vld [vmem:[%s804_s27 + $0x4c] ss:$16 sps:$4 sm:$0xff]   ;;  %v659_v33 = vld [vmem:[%s804_s27 + $0x40] ss:$16 sps:$4 sm:$0xff]   ;;  %v660_v34 = vld [vmem:[%s804_s27 + $0x48] ss:$16 sps:$4 sm:$0xff]  }
  0x2b   : > { %v661_v35 = vld [vmem:[%s804_s27 + $0x64] ss:$16 sps:$4 sm:$0xff]   ;;  %v663_v36 = vld [vmem:[%s804_s27 + $0x6c] ss:$16 sps:$4 sm:$0xff]   ;;  %v665_v37 = vld [vmem:[%s804_s27 + $0x60] ss:$16 sps:$4 sm:$0xff]  }
  0x2c   : > { %v666_v38 = vld [vmem:[%s804_s27 + $0x68] ss:$16 sps:$4 sm:$0xff]   ;;  %v667_v40 = vld [vmem:[%s804_s27 + $0x84] ss:$16 sps:$4 sm:$0x1f]   ;;  %s614_s4 = sshll.u32 (%p745_p5), %s569_s12, 4 }
  0x2d   : > { %345 = vmatpush1.bf16.msra.mxu0 %v653_v27  ;;  %388 = vmatpush1.bf16.msra.mxu1 %v654_v28  ;;  %v669_v41 = vld [vmem:[%s804_s27 + $0x8c] ss:$16 sps:$4 sm:$0x1f]   ;;  %v334_v42 = vand.u32 %v667_v40, %v329_v39  ;;  %v671_v43 = vld [vmem:[%s804_s27 + $0x80] ss:$16 sps:$4 sm:$0x1f]   ;;  %s489_s7 = scalar_lea.vmem (%p745_p5), %s850_s2, %s614_s4 }
  0x2e   : > { %346 = vmatprep.subr.bf16.mxu0 %v655_v29  ;;  %389 = vmatprep.subr.bf16.mxu1 %v657_v32  ;;  %v672_v44 = vld [vmem:[%s804_s27 + $0x88] ss:$16 sps:$4 sm:$0x1f]   ;;  %v340_v45 = vand.u32 %v669_v41, %v329_v39  ;;  %v331_v46 = vand.u32 %v671_v43, %v329_v39 }
  0x2f   : > { %v337_v47 = vand.u32 %v672_v44, %v329_v39 }
  0x31   : > { %347 = vmatpush1.bf16.msra.mxu0 %v659_v33  ;;  %390 = vmatpush1.bf16.msra.mxu1 %v660_v34 }
  0x32   : > { %348 = vmatprep.subr.bf16.mxu0 %v661_v35  ;;  %391 = vmatprep.subr.bf16.mxu1 %v663_v36 }
  0x35   : > { %349 = vmatpush1.bf16.msra.mxu0 %v665_v37  ;;  %392 = vmatpush1.bf16.msra.mxu1 %v666_v38 }
  0x36   : > { %350 = vmatprep.subr.bf16.mxu0 %v334_v42  ;;  %393 = vmatprep.subr.bf16.mxu1 %v340_v45 }
  0x39   : > { %351 = vmatpush1.bf16.msra.mxu0 %v331_v46  ;;  %394 = vmatpush1.bf16.msra.mxu1 %v337_v47 }
  0x3c   : > { %598 = vmatmul.mubr.msk.bf16.vlgmr.msra.gmra.mrb[0].mxu0 %vm322_vm2, %v673_v48  ;;  %599 = vmatmul.mubr.msk.bf16.vlgmr.msra.gmra.mrb[0].mxu1 %vm322_vm2, %v673_v48 }
 0x10f   : > { %v376_v49 = vpop.f32.mrb[0].mxu0  ;;  %v419_v50 = vpop.f32.mrb[0].mxu1 }
 0x110   : > { %vm428_vm3 = vcmp.ge.f32.partialorder %v376_v49, 0.0  ;;  %v436_v51 = vmul.f32 0.2, %v376_v49  ;;  %vm430_vm4 = vcmp.ge.f32.partialorder %v419_v50, 0.0  ;;  %v438_v52 = vmul.f32 0.2, %v419_v50 }
 0x111   : > { %v378_v53 = vpop.f32.mrb[1].mxu0  ;;  %v421_v54 = vpop.f32.mrb[1].mxu1 }
 0x112   : > { %v444_v55 = vsel %vm428_vm3, %v376_v49, %v436_v51  ;;  %v446_v56 = vsel %vm430_vm4, %v419_v50, %v438_v52  ;;  %vm429_vm5 = vcmp.ge.f32.partialorder %v378_v53, 0.0  ;;  %v437_v57 = vmul.f32 0.2, %v378_v53  ;;  %v380_v58 = vpop.f32.mrb[2].mxu0  ;;  %v423_v59 = vpop.f32.mrb[2].mxu1 }
 0x113   : > { %vm431_vm6 = vcmp.ge.f32.partialorder %v421_v54, 0.0  ;;  %v439_v60 = vmul.f32 0.2, %v421_v54  ;;  %vm432_vm7 = vcmp.ge.f32.partialorder %v380_v58, 0.0  ;;  %v440_v61 = vmul.f32 0.2, %v380_v58 }
 0x114   : > { %v445_v62 = vsel %vm429_vm5, %v378_v53, %v437_v57  ;;  %vm434_vm8 = vcmp.ge.f32.partialorder %v423_v59, 0.0  ;;  %v442_v63 = vmul.f32 0.2, %v423_v59  ;;  %v382_v0 = vpop.f32.mrb[3].mxu0  ;;  %v425_v1 = vpop.f32.mrb[3].mxu1 }
 0x115   : > { %v610_v2 = vpack.c.bf16 %v445_v62, %v444_v55  ;;  %v447_v3 = vsel %vm431_vm6, %v421_v54, %v439_v60  ;;  %vm433_vm9 = vcmp.ge.f32.partialorder %v382_v0, 0.0  ;;  %v448_v5 = vsel %vm432_vm7, %v380_v58, %v440_v61 }
 0x116   : > { %v611_v4 = vpack.c.bf16 %v447_v3, %v446_v56  ;;  %v441_v6 = vmul.f32 0.2, %v382_v0  ;;  %vm435_vm10 = vcmp.ge.f32.partialorder %v425_v1, 0.0  ;;  %v450_v7 = vsel %vm434_vm8, %v423_v59, %v442_v63  ;;  %486 = sbr.rel (!%p745_p5) target bundleno = 293 (0x125), region = 55 }
 0x117   : > { %476 = vst [vmem:[%s195_s3] sm:$0xff] %v610_v2  ;;  %v443_v8 = vmul.f32 0.2, %v425_v1 }
 0x118   : > { %477 = vst [vmem:[%s195_s3 + $0x8] sm:$0xff] %v611_v4  ;;  %v449_v9 = vsel %vm433_vm9, %v382_v0, %v441_v6 }
 0x119   : > { %v612_v10 = vpack.c.bf16 %v449_v9, %v448_v5  ;;  %v451_v11 = vsel %vm435_vm10, %v425_v1, %v443_v8 }
 0x11a   : > { %v613_v12 = vpack.c.bf16 %v451_v11, %v450_v7 }
 0x11b   : > { %478 = vst [vmem:[%s195_s3 + $0x10] sm:$0xff] %v612_v10 }
 0x11c   : > { %479 = vst [vmem:[%s195_s3 + $0x18] sm:$0xff] %v613_v12 }
 0x11e   : > { %v502_v13 = vld [vmem:[%s195_s3] sm:$0xff] }
 0x11f   : > { %v504_v14 = vld [vmem:[%s195_s3 + $0x8] sm:$0xff]  ;;  %503 = vst [vmem:[%s489_s7] sm:$0xff] %v502_v13 }
 0x120   : > { %505 = vst [vmem:[%s489_s7 + $0x8] sm:$0xff] %v504_v14 }
 0x122   : > { %v506_v15 = vld [vmem:[%s195_s3 + $0x10] sm:$0xff] }
 0x123   : > { %v508_v16 = vld [vmem:[%s195_s3 + $0x18] sm:$0xff]  ;;  %507 = vst [vmem:[%s489_s7 + $0x20] sm:$0xff] %v506_v15 }
 0x124   : > { %509 = vst [vmem:[%s489_s7 + $0x28] sm:$0xff] %v508_v16 }
 0x125 PF: > { %p9_p10 = scmp.ge.s32.totalorder %s732_s13, 4   ;;  %s852_s9 = smov %s692_s10 }
 0x126   : > { %s853_s10 = smov %s743_s16  ;;  %s854_s11 = smov %s732_s13 }
 0x127   :  { %11 = sbr.rel (!%p9_p10) target bundleno = 2 (0x2), region = 109 }

// kernel: encoder_forward.7
= control target key start
LH: loop header
LB: loop body
LE: loop exit
PB: predicated region body
PF: predicated region fallthrough
CT: control target
= control target key end

     0   :  { %11 = vsyncpa [#allocation5], 0  ;;  %s2722_s0 = inlined_call_operand.vmem [shape: bf16[8,16,512], index: 0, kind: input, shape index: {}]   ;;  %s2723_s1 = inlined_call_operand.vmem [shape: bf16[64,288], index: 1, kind: input, shape index: {}]   ;;  %s2724_s2 = inlined_call_operand.vmem [shape: f32[113,256], index: 2, kind: input, shape index: {}]   ;;  %s2725_s3 = inlined_call_operand.hbm [shape: bf16[8,16,256], index: 3, kind: output, shape index: {0}]   ;;  %s2726_s4 = inlined_call_operand.vmem [shape: f32[16,256], index: 4, kind: output, shape index: {1}]   ;;  %s2727_s5 = inlined_call_operand.vmem [shape: f32[16,256], index: 5, kind: output, shape index: {2}]  }
   0x1   :  { %13 = vsyncpa [#allocation5 + $0x1], 0  ;;  %s2002_s18 = smov 0   ;;  %s2004_s19 = smov 0  }
   0x2   :  { %s2006_s20 = smov 0   ;;  %s2008_s21 = smov 0  }
   0x3 LB: > { %s2023_s22 = sadd.s32 4294967295, %s1956_s21   ;;  %s1440_s23 = sadd.s32 4294967294, %s1956_s21   ;;  %s1956_s21 = sphi %s2008_s21, %s2733_s21   ;;  %s1952_s20 = sphi %s2006_s20, %s2732_s20   ;;  %s1948_s19 = sphi %s2004_s19, %s2731_s19   ;;  %s1944_s18 = sphi %s2002_s18, %s2730_s18  }
   0x4   : > { %s2027_s24 = sadd.s32 1, %s1956_s21   ;;  %s94_s25 = sadd.s32 1, %s1952_s20 }
   0x5   : > { %s91_s26 = ssub.s32 %s1956_s21, %s2027_s24  ;;  %p104_p0 = scmp.ne.s32.totalorder %s1952_s20, %s1948_s19 }
   0x6   : > { %p92_p1 = scmp.eq.s32.totalorder %s91_s26, 0  ;;  %p105_p2 = scmp.eq.s32.totalorder %s2023_s22, 7 }
   0x7   : > { %p110_p3 = scmp.ne.s32.totalorder %s1948_s19, %s1944_s18  ;;  %p111_p4 = scmp.eq.s32.totalorder %s1440_s23, 7 }
   0x8   : > { %s2038_s27 = scalar_select %p92_p1, %s1952_s20, %s94_s25  }
   0x9   : > { %p2040_p5 = por %p105_p2, %p104_p0  ;;  %p2044_p6 = por %p111_p4, %p110_p3 }
   0xa   : > { %p1443_p7 = scmp.ge.s32.totalorder %s1956_s21, 1  ;;  %p185_p8 = scmp.lt.s32.totalorder %s1956_s21, 9 }
   0xc   : > { %p186_p9 = pnand %p1443_p7, %p185_p8 }
   0xd   : > { %s206_s30 = sand.u32 (!%p186_p9), 1, %s1948_s19   ;;  %p213_p10 = scmp.lt.s32.totalorder (!%p186_p9), %s2023_s22, 7 }
   0xe   : > { %189 = sbr.rel (%p186_p9) target bundleno = 722 (0x2d2), region = 32  ;;  %s1444_s6 = sshll.u32 (!%p186_p9), %s206_s30, 4 }
   0xf   : > { %s2060_s12 = scalar_lea.vmem (!%p186_p9), [#allocation4], %s1444_s6  ;;  %p1447_p11 = scmp.ne.s32.totalorder (!%p186_p9), %s2023_s22, 0 }
  0x15   : > { %s214_s7 = scalar_select %p213_p10, %s2023_s22, 7 }
  0x16   : > { %222 = sbr.rel (%p1447_p11) target bundleno = 29 (0x1d), region = 36  ;;  %v1958_v0 = vmov (!%p1447_p11), 0.0  }
  0x17   : > { %s1488_s8 = sshll.u32 %s214_s7, 5  ;;  %223 = vst [vmem:[#allocation2] sm:$0xff] (!%p1447_p11), %v1958_v0  ;;  %224 = vst [vmem:[#allocation2 + $0x8] sm:$0xff] (!%p1447_p11), %v1958_v0 }
  0x18   : > { %s2058_s11 = scalar_lea.vmem %s2722_s0, %s1488_s8  ;;  %225 = vst [vmem:[#allocation2 + $0x10] sm:$0xff] (!%p1447_p11), %v1958_v0  ;;  %226 = vst [vmem:[#allocation2 + $0x18] sm:$0xff] (!%p1447_p11), %v1958_v0 }
  0x19   : > { %227 = vst [vmem:[#allocation2 + $0x20] sm:$0xff] (!%p1447_p11), %v1958_v0  ;;  %228 = vst [vmem:[#allocation2 + $0x28] sm:$0xff] (!%p1447_p11), %v1958_v0 }
  0x1a   : > { %229 = vst [vmem:[#allocation2 + $0x30] sm:$0xff] (!%p1447_p11), %v1958_v0  ;;  %230 = vst [vmem:[#allocation2 + $0x38] sm:$0xff] (!%p1447_p11), %v1958_v0 }
  0x1b   : > { %231 = vst [vmem:[#allocation3] sm:$0xff] (!%p1447_p11), %v1958_v0  ;;  %232 = vst [vmem:[#allocation3 + $0x8] sm:$0xff] (!%p1447_p11), %v1958_v0 }
  0x1c   : > { %233 = vst [vmem:[#allocation3 + $0x10] sm:$0xff] (!%p1447_p11), %v1958_v0  ;;  %234 = vst [vmem:[#allocation3 + $0x18] sm:$0xff] (!%p1447_p11), %v1958_v0 }
  0x1d PF: > { %v2082_v9 = vld [vmem:[%s2058_s11] sm:$0xff]  ;;  %v2085_v10 = vld [vmem:[%s2058_s11 + $0x8] sm:$0xff]  ;;  %v2088_v11 = vld [vmem:[%s2058_s11 + $0x10] sm:$0xff]  ;;  %s1959_s13 = smov 127   ;;  %s1960_s14 = smov 126   ;;  %vm273_vm0 = vcmask 1039360  }
  0x1e   : > { %v2067_v3 = vld [vmem:[#allocation2 + $0x8] sm:$0xff]  ;;  %v240_v12 = vunpack.c.h.bf16 %v2082_v9  ;;  %v241_v13 = vunpack.c.l.bf16 %v2085_v10  ;;  %v2094_v14 = vld [vmem:[%s2058_s11 + $0x18] sm:$0xff]  ;;  %v239_v15 = vunpack.c.l.bf16 %v2082_v9  ;;  %v244_v17 = vunpack.c.h.bf16 %v2088_v11  ;;  %s1961_s15 = smov 118   ;;  %s1962_s16 = smov 117   ;;  %v2133_v30 = vld [vmem:[#allocation2] sm:$0xff] }
  0x1f   : > { %v2063_v1 = vld [vmem:[#allocation2 + $0x18] sm:$0xff]  ;;  %v2071_v5 = vld [vmem:[#allocation2 + $0x10] sm:$0xff]  ;;  %v245_v18 = vunpack.c.l.bf16 %v2094_v14  ;;  %v243_v19 = vunpack.c.l.bf16 %v2088_v11  ;;  %v1450_v23 = vcombine.low %v2085_v10, %v2094_v14  ;;  %v1449_v24 = vcombine.high %v2082_v9, %v2088_v11  ;;  %s1963_s17 = smov 116   ;;  %s1964_s23 = smov 108  }
  0x20   : > { %v2073_v6 = vld [vmem:[#allocation2 + $0x28] sm:$0xff]  ;;  %v2079_v8 = vpack.i.bf16 %v2071_v5, %v2067_v3  ;;  %v1591_v20 = vpack.i.bf16 %v241_v13, %v240_v12  ;;  %v1448_v25 = vcombine.low %v2082_v9, %v2088_v11  ;;  %v242_v26 = vunpack.c.h.bf16 %v2085_v10  ;;  %s1965_s25 = smov 107   ;;  %s1966_s26 = smov 106   ;;  %v2135_v31 = vld [vmem:[#allocation2 + $0x20] sm:$0xff] }
  0x21   : > { %v2065_v2 = vld [vmem:[#allocation2 + $0x38] sm:$0xff]  ;;  %v2075_v7 = vld [vmem:[#allocation2 + $0x30] sm:$0xff]  ;;  %v1601_v21 = vpack.i.bf16 %v243_v19, %v239_v15  ;;  %v1596_v22 = vpack.i.bf16 %v245_v18, %v244_v17  ;;  %v246_v28 = vunpack.c.h.bf16 %v2094_v14  ;;  %v1706_v32 = vpack.i.bf16 %v2135_v31, %v2133_v30  ;;  %s1967_s6 = smov 11   ;;  %p1482_p12 = scmp.ne.s32.totalorder %s2023_s22, 7 }
  0x22   : > { %v1586_v4 = vpack.i.bf16 %v2065_v2, %v2063_v1  ;;  %1577 = vrot.lane.b32.xlu0 %v2079_v8, %s1959_s13  ;;  %v1581_v16 = vpack.i.bf16 %v2075_v7, %v2073_v6  ;;  %v1651_v27 = vpack.i.bf16 %v244_v17, %v242_v26  ;;  %v652_v33 = vpack.c.bf16 %v2135_v31, %v2133_v30 }
  0x23   : > { %v1656_v29 = vpack.i.bf16 %v246_v28, %v245_v18  ;;  %v1761_v34 = vpack.i.bf16 %v2065_v2, %v2075_v7  ;;  %v1756_v35 = vpack.i.bf16 %v2073_v6, %v2063_v1  ;;  %vm296_vm1 = vcmask 1031168  }
  0x24   : > { %1587 = vrot.lane.b32.xlu1 %v1586_v4, %s1959_s13  ;;  %vm319_vm2 = vcmask 965632   ;;  %vm338_vm3 = vcmask 957440   ;;  %vm361_vm4 = vcmask 949248   ;;  %vm384_vm5 = vcmask 883712  }
  0x25   : > { %vm407_vm6 = vcmask 875520   ;;  %vm430_vm7 = vcmask 867328   ;;  %vm933_vm8 = vcmask 89088   ;;  %vm1006_vm9 = vcmask 261120  }
  0x26   : > { %1582 = vrot.lane.b32.xlu0 %v1581_v16, %s1959_s13 }
  0x28   : > { %1592 = vrot.lane.b32.xlu1 %v1591_v20, %s1959_s13 }
  0x2a   : > { %1597 = vrot.lane.b32.xlu0 %v1596_v22, %s1959_s13 }
  0x2c   : > { %1602 = vrot.lane.b32.xlu1 %v1601_v21, %s1959_s13 }
  0x2e   : > { %1607 = vrot.lane.b32.xlu0 %v1591_v20, %s1960_s14 }
  0x30   : > { %1612 = vrot.lane.b32.xlu1 %v1596_v22, %s1960_s14 }
  0x32   : > { %1617 = vrot.lane.b32.xlu0 %v1601_v21, %s1960_s14 }
  0x34   : > { %1622 = vrot.lane.b32.xlu1 %v1591_v20, %s1961_s15 }
  0x36   : > { %1627 = vrot.lane.b32.xlu0 %v1596_v22, %s1961_s15 }
  0x38   : > { %1632 = vrot.lane.b32.xlu1 %v1601_v21, %s1961_s15 }
  0x3a   : > { %1637 = vrot.lane.b32.xlu0 %v1591_v20, %s1962_s16 }
  0x3c   : > { %1642 = vrot.lane.b32.xlu1 %v1596_v22, %s1962_s16 }
  0x3e   : > { %1647 = vrot.lane.b32.xlu0 %v1591_v20, %s1963_s17 }
  0x40   : > { %1652 = vrot.lane.b32.xlu1 %v1651_v27, %s1963_s17 }
  0x42   : > { %1657 = vrot.lane.b32.xlu0 %v1656_v29, %s1963_s17 }
  0x44   : > { %1662 = vrot.lane.b32.xlu1 %v1591_v20, %s1964_s23 }
  0x46   : > { %1667 = vrot.lane.b32.xlu0 %v1651_v27, %s1964_s23 }
  0x48   : > { %1672 = vrot.lane.b32.xlu1 %v1656_v29, %s1964_s23 }
  0x4a   : > { %1677 = vrot.lane.b32.xlu0 %v1591_v20, %s1965_s25 }
  0x4c   : > { %1682 = vrot.lane.b32.xlu1 %v1651_v27, %s1965_s25 }
  0x4e   : > { %1687 = vrot.lane.b32.xlu0 %v1656_v29, %s1965_s25 }
  0x50   : > { %1692 = vrot.lane.b32.xlu1 %v1591_v20, %s1966_s26 }
  0x52   : > { %1697 = vrot.lane.b32.xlu0 %v1651_v27, %s1966_s26 }
  0x54   : > { %1702 = vrot.lane.b32.xlu1 %v1656_v29, %s1966_s26 }
  0x56   : > { %1707 = vrot.lane.b32.xlu0 %v1706_v32, %s1959_s13 }
  0x58   : > { %1712 = vrot.lane.b32.xlu1 %v2079_v8, %s1960_s14 }
  0x5a   : > { %1717 = vrot.lane.b32.xlu0 %v1581_v16, %s1960_s14 }
  0x5c   : > { %1722 = vrot.lane.b32.xlu1 %v1706_v32, %s1960_s14 }
  0x5e   : > { %1727 = vrot.lane.b32.xlu0 %v2079_v8, %s1961_s15 }
  0x60   : > { %1732 = vrot.lane.b32.xlu1 %v1581_v16, %s1961_s15 }
  0x62   : > { %1737 = vrot.lane.b32.xlu0 %v1706_v32, %s1961_s15 }
  0x64   : > { %1742 = vrot.lane.b32.xlu1 %v2079_v8, %s1962_s16 }
  0x66   : > { %1747 = vrot.lane.b32.xlu0 %v1581_v16, %s1962_s16 }
  0x68   : > { %1752 = vrot.lane.b32.xlu1 %v2079_v8, %s1963_s17 }
  0x6a   : > { %1757 = vrot.lane.b32.xlu0 %v1756_v35, %s1963_s17 }
  0x6c   : > { %1762 = vrot.lane.b32.xlu1 %v1761_v34, %s1963_s17 }
  0x6e   : > { %1767 = vrot.lane.b32.xlu0 %v2079_v8, %s1965_s25 }
  0x70   : > { %1772 = vrot.lane.b32.xlu1 %v1756_v35, %s1965_s25 }
  0x72   : > { %1777 = vrot.lane.b32.xlu0 %v1761_v34, %s1965_s25 }
  0x74   : > { %1782 = vrot.lane.b32.xlu1 %v2079_v8, %s1964_s23 }
  0x76   : > { %1787 = vrot.lane.b32.xlu0 %v1756_v35, %s1964_s23 }
  0x78   : > { %1792 = vrot.lane.b32.xlu1 %v1761_v34, %s1964_s23 }
  0x7a   : > { %827 = vrot.lane.b32.xlu0 %v1449_v24, %s1967_s6 }
  0x7c   : > { %829 = vrot.lane.b32.xlu1 %v1450_v23, %s1967_s6 }
  0x80   : > { %825 = vrot.lane.b32.xlu1 %v1448_v25, %s1967_s6 }
  0x94   : > { %v2172_v38 = vpop.permute.xlu0 %1577 }
  0x95   : > { %v2175_v39 = vunpack.i.h.bf16 %v2172_v38  ;;  %v1579_v40 = vunpack.i.l.bf16 %v2172_v38 }
  0x96   : > { %v1588_v36 = vpop.permute.xlu1 %1587 }
  0x97   : > { %v1589_v37 = vunpack.i.l.bf16 %v1588_v36  ;;  %v2184_v42 = vsel %vm273_vm0, %v1579_v40, %v2175_v39  ;;  %v1590_v46 = vunpack.i.h.bf16 %v1588_v36 }
  0x98   : > { %v2188_v44 = vpop.permute.xlu0 %1582 }
  0x99   : > { %v579_v43 = vsel %vm273_vm0, %v2175_v39, %v1589_v37  ;;  %v2192_v47 = vunpack.i.h.bf16 %v2188_v44  ;;  %v1584_v48 = vunpack.i.l.bf16 %v2188_v44 }
  0x9a   : > { %v2178_v41 = vpop.permute.xlu1 %1592  ;;  %v1796_v45 = vpack.i.bf16 %v579_v43, %v2184_v42 }
  0x9b   : > { %v1595_v49 = vunpack.i.h.bf16 %v2178_v41  ;;  %v580_v51 = vsel %vm273_vm0, %v2192_v47, %v1590_v46  ;;  %v2205_v52 = vsel %vm273_vm0, %v1584_v48, %v2192_v47  ;;  %v657_v53 = vpack.c.bf16 %v2192_v47, %v2175_v39 }
  0x9c   : > { %1797 = vrot.lane.b32.xlu0 %v1796_v45, %s1965_s25  ;;  %v1598_v54 = vpop.permute.xlu0 %1597  ;;  %v1806_v55 = vpack.i.bf16 %v1590_v46, %v580_v51  ;;  %v1801_v56 = vpack.i.bf16 %v2205_v52, %v1589_v37  ;;  %v1594_v10 = vunpack.i.l.bf16 %v2178_v41 }
  0x9d   : > { %v1600_v57 = vunpack.i.h.bf16 %v1598_v54  ;;  %v1599_v11 = vunpack.i.l.bf16 %v1598_v54 }
  0x9e   : > { %v2197_v50 = vpop.permute.xlu1 %1602  ;;  %1802 = vrot.lane.b32.xlu1 %v1801_v56, %s1965_s25  ;;  %v275_v22 = vsel %vm273_vm0, %v1594_v10, %v1595_v49 }
  0x9f   : > { %v630_v58 = vpack.c.bf16 %v1600_v57, %v1595_v49  ;;  %v1605_v21 = vunpack.i.h.bf16 %v2197_v50  ;;  %v1604_v23 = vunpack.i.l.bf16 %v2197_v50  ;;  %v277_v26 = vsel %vm273_vm0, %v1599_v11, %v1600_v57 }
  0xa0   : > { %1807 = vrot.lane.b32.xlu0 %v1806_v55, %s1965_s25  ;;  %v1608_v60 = vpop.permute.xlu0 %1607  ;;  %v629_v37 = vpack.c.bf16 %v277_v26, %v275_v22 }
  0xa1   : > { %v1610_v62 = vunpack.i.h.bf16 %v1608_v60  ;;  %v1609_v14 = vunpack.i.l.bf16 %v1608_v60  ;;  %v274_v43 = vsel %vm273_vm0, %v1604_v23, %v1594_v10  ;;  %v276_v54 = vsel %vm273_vm0, %v1605_v21, %v1599_v11 }
  0xa2   : > { %v1613_v59 = vpop.permute.xlu1 %1612  ;;  %835 = vrot.lane.b32.xlu1 %v630_v58, %s1967_s6 }
  0xa3   : > { %v1615_v61 = vunpack.i.h.bf16 %v1613_v59  ;;  %v1614_v15 = vunpack.i.l.bf16 %v1613_v59  ;;  %v298_v34 = vsel %vm296_vm1, %v1609_v14, %v1610_v62 }
  0xa4   : > { %v1618_v1 = vpop.permute.xlu0 %1617 }
  0xa5   : > { %v633_v63 = vpack.c.bf16 %v1615_v61, %v1610_v62  ;;  %v1620_v28 = vunpack.i.h.bf16 %v1618_v1  ;;  %v1619_v29 = vunpack.i.l.bf16 %v1618_v1  ;;  %v300_v35 = vsel %vm296_vm1, %v1614_v15, %v1615_v61 }
  0xa6   : > { %v2213_v0 = vpop.permute.xlu1 %1622  ;;  %v632_v41 = vpack.c.bf16 %v300_v35, %v298_v34  ;;  %v628_v61 = vpack.c.bf16 %v276_v54, %v274_v43 }
  0xa7   : > { %841 = vrot.lane.b32.xlu0 %v633_v63, %s1967_s6  ;;  %v1625_v2 = vunpack.i.h.bf16 %v2213_v0  ;;  %v1624_v36 = vunpack.i.l.bf16 %v2213_v0  ;;  %v297_v50 = vsel %vm296_vm1, %v1619_v29, %v1609_v14  ;;  %v299_v51 = vsel %vm296_vm1, %v1620_v28, %v1614_v15 }
  0xa8   : > { %v2219_v8 = vpop.permute.xlu0 %1627  ;;  %v631_v60 = vpack.c.bf16 %v299_v51, %v297_v50 }
  0xa9   : > { %v1630_v9 = vunpack.i.h.bf16 %v2219_v8  ;;  %v1629_v46 = vunpack.i.l.bf16 %v2219_v8  ;;  %v321_v62 = vsel %vm319_vm2, %v1624_v36, %v1625_v2 }
  0xaa   : > { %v2217_v4 = vpop.permute.xlu1 %1632 }
  0xab   : > { %v636_v12 = vpack.c.bf16 %v1630_v9, %v1625_v2  ;;  %v1635_v59 = vunpack.i.h.bf16 %v2217_v4  ;;  %v1634_v0 = vunpack.i.l.bf16 %v2217_v4  ;;  %v323_v11 = vsel %vm319_vm2, %v1629_v46, %v1630_v9 }
  0xac   : > { %v1638_v16 = vpop.permute.xlu0 %1637  ;;  %v635_v9 = vpack.c.bf16 %v323_v11, %v321_v62 }
  0xad   : > { %v1640_v19 = vunpack.i.h.bf16 %v1638_v16  ;;  %v1639_v20 = vunpack.i.l.bf16 %v1638_v16  ;;  %847 = vrot.lane.b32.xlu1 %v636_v12, %s1967_s6  ;;  %v320_v21 = vsel %vm319_vm2, %v1634_v0, %v1624_v36  ;;  %v322_v22 = vsel %vm319_vm2, %v1635_v59, %v1629_v46 }
  0xae   : > { %v1643_v13 = vpop.permute.xlu1 %1642  ;;  %v634_v28 = vpack.c.bf16 %v322_v22, %v320_v21 }
  0xaf   : > { %v1645_v17 = vunpack.i.h.bf16 %v1643_v13  ;;  %v1644_v18 = vunpack.i.l.bf16 %v1643_v13  ;;  %v339_v8 = vsel %vm338_vm3, %v1639_v20, %v1640_v19 }
  0xb0   : > { %v2230_v32 = vpop.permute.xlu0 %1647 }
  0xb1   : > { %v639_v24 = vpack.c.bf16 %v1645_v17, %v1640_v19  ;;  %v637_v25 = vpack.c.bf16 %v1644_v18, %v1639_v20  ;;  %v1650_v55 = vunpack.i.h.bf16 %v2230_v32  ;;  %v340_v10 = vsel %vm338_vm3, %v1644_v18, %v1645_v17 }
  0xb2   : > { %v2228_v27 = vpop.permute.xlu1 %1652  ;;  %v1649_v12 = vunpack.i.l.bf16 %v2230_v32  ;;  %v638_v18 = vpack.c.bf16 %v340_v10, %v339_v8 }
  0xb3   : > { %849 = vrot.lane.b32.xlu1 %v637_v25, %s1967_s6  ;;  %853 = vrot.lane.b32.xlu0 %v639_v24, %s1967_s6  ;;  %v1654_v56 = vunpack.i.l.bf16 %v2228_v27  ;;  %v1655_v13 = vunpack.i.h.bf16 %v2228_v27 }
  0xb4   : > { %v1658_v49 = vpop.permute.xlu0 %1657  ;;  %v362_v26 = vsel %vm361_vm4, %v1649_v12, %v1650_v55 }
  0xb5   : > { %v1660_v57 = vunpack.i.h.bf16 %v1658_v49  ;;  %v1659_v58 = vunpack.i.l.bf16 %v1658_v49  ;;  %v363_v14 = vsel %vm361_vm4, %v1650_v55, %v1654_v56  ;;  %v640_v50 = vpack.c.bf16 %v1655_v13, %v1649_v12 }
  0xb6   : > { %v2238_v45 = vpop.permute.xlu1 %1662 }
  0xb7   : > { %833 = vrot.lane.b32.xlu0 %v629_v37, %s1967_s6  ;;  %839 = vrot.lane.b32.xlu1 %v632_v41, %s1967_s6  ;;  %v1665_v2 = vunpack.i.h.bf16 %v2238_v45  ;;  %v1664_v15 = vunpack.i.l.bf16 %v2238_v45  ;;  %v365_v17 = vsel %vm361_vm4, %v1659_v58, %v1660_v57  ;;  %v364_v27 = vsel %vm361_vm4, %v1655_v13, %v1659_v58 }
  0xb8   : > { %v1668_v1 = vpop.permute.xlu0 %1667  ;;  %v642_v23 = vpack.c.bf16 %v365_v17, %v363_v14  ;;  %v641_v43 = vpack.c.bf16 %v364_v27, %v362_v26 }
  0xb9   : > { %v1670_v4 = vunpack.i.h.bf16 %v1668_v1  ;;  %v385_v24 = vsel %vm384_vm5, %v1664_v15, %v1665_v2  ;;  %v1669_v32 = vunpack.i.l.bf16 %v1668_v1 }
  0xba   : > { %v1673_v63 = vpop.permute.xlu1 %1672 }
  0xbb   : > { %837 = vrot.lane.b32.xlu1 %v631_v60, %s1967_s6  ;;  %831 = vrot.lane.b32.xlu0 %v628_v61, %s1967_s6  ;;  %v1674_v16 = vunpack.i.l.bf16 %v1673_v63  ;;  %v1675_v34 = vunpack.i.h.bf16 %v1673_v63  ;;  %v643_v51 = vpack.c.bf16 %v1670_v4, %v1664_v15  ;;  %v386_v55 = vsel %vm384_vm5, %v1665_v2, %v1669_v32 }
  0xbc   : > { %v2264_v20 = vpop.permute.xlu0 %1677 }
  0xbd   : > { %v387_v25 = vsel %vm384_vm5, %v1670_v4, %v1674_v16  ;;  %v1680_v36 = vunpack.i.h.bf16 %v2264_v20  ;;  %v388_v56 = vsel %vm384_vm5, %v1674_v16, %v1675_v34  ;;  %v1679_v57 = vunpack.i.l.bf16 %v2264_v20 }
  0xbe   : > { %v2262_v19 = vpop.permute.xlu1 %1682  ;;  %v644_v41 = vpack.c.bf16 %v387_v25, %v385_v24  ;;  %v645_v13 = vpack.c.bf16 %v388_v56, %v386_v55 }
  0xbf   : > { %851 = vrot.lane.b32.xlu1 %v638_v18, %s1967_s6  ;;  %845 = vrot.lane.b32.xlu0 %v635_v9, %s1967_s6  ;;  %v1684_v37 = vunpack.i.l.bf16 %v2262_v19  ;;  %v1685_v58 = vunpack.i.h.bf16 %v2262_v19  ;;  %v408_v4 = vsel %vm407_vm6, %v1679_v57, %v1680_v36 }
  0xc0   : > { %v1688_v35 = vpop.permute.xlu0 %1687 }
  0xc1   : > { %v1690_v45 = vunpack.i.h.bf16 %v1688_v35  ;;  %v1689_v46 = vunpack.i.l.bf16 %v1688_v35  ;;  %v409_v60 = vsel %vm407_vm6, %v1680_v36, %v1684_v37  ;;  %v653_v35 = vpack.c.bf16 %v2073_v6, %v2067_v3 }
  0xc2   : > { %v1693_v29 = vpop.permute.xlu1 %1692  ;;  %v656_v36 = vpack.c.bf16 %v2205_v52, %v2184_v42 }
  0xc3   : > { %859 = vrot.lane.b32.xlu1 %v642_v23, %s1967_s6  ;;  %843 = vrot.lane.b32.xlu0 %v634_v28, %s1967_s6  ;;  %v1695_v59 = vunpack.i.h.bf16 %v1693_v29  ;;  %v1694_v62 = vunpack.i.l.bf16 %v1693_v29  ;;  %v411_v0 = vsel %vm407_vm6, %v1689_v46, %v1690_v45  ;;  %v410_v15 = vsel %vm407_vm6, %v1685_v58, %v1689_v46 }
  0xc4   : > { %v1698_v54 = vpop.permute.xlu0 %1697  ;;  %v648_v12 = vpack.c.bf16 %v411_v0, %v409_v60  ;;  %v647_v21 = vpack.c.bf16 %v410_v15, %v408_v4  ;;  %v654_v28 = vpack.c.bf16 %v2075_v7, %v2071_v5 }
  0xc5   : > { %v1700_v61 = vunpack.i.h.bf16 %v1698_v54  ;;  %v431_v2 = vsel %vm430_vm7, %v1694_v62, %v1695_v59  ;;  %v1699_v22 = vunpack.i.l.bf16 %v1698_v54 }
  0xc6   : > { %v1703_v49 = vpop.permute.xlu1 %1702 }
  0xc7   : > { %863 = vrot.lane.b32.xlu1 %v644_v41, %s1967_s6  ;;  %857 = vrot.lane.b32.xlu0 %v641_v43, %s1967_s6  ;;  %v1704_v63 = vunpack.i.l.bf16 %v1703_v49  ;;  %v1705_v23 = vunpack.i.h.bf16 %v1703_v49  ;;  %v649_v25 = vpack.c.bf16 %v1700_v61, %v1694_v62  ;;  %v432_v44 = vsel %vm430_vm7, %v1695_v59, %v1699_v22 }
  0xc8   : > { %v1708_v8 = vpop.permute.xlu0 %1707 }
  0xc9   : > { %v1710_v10 = vunpack.i.h.bf16 %v1708_v8  ;;  %v1709_v11 = vunpack.i.l.bf16 %v1708_v8  ;;  %v433_v14 = vsel %vm430_vm7, %v1700_v61, %v1704_v63 }
  0xca   : > { %v2286_v1 = vpop.permute.xlu1 %1712  ;;  %v650_v20 = vpack.c.bf16 %v433_v14, %v431_v2 }
  0xcb   : > { %861 = vrot.lane.b32.xlu1 %v643_v51, %s1967_s6  ;;  %855 = vrot.lane.b32.xlu0 %v640_v50, %s1967_s6  ;;  %v459_v17 = vsel %vm273_vm0, %v1709_v11, %v1579_v40  ;;  %v461_v18 = vsel %vm273_vm0, %v1710_v10, %v1584_v48  ;;  %v646_v40 = vpack.c.bf16 %v1685_v58, %v1679_v57  ;;  %v1715_v5 = vunpack.i.h.bf16 %v2286_v1 }
  0xcc   : > { %v2302_v9 = vpop.permute.xlu0 %1717  ;;  %v655_v19 = vpack.c.bf16 %v461_v18, %v459_v17  ;;  %v434_v48 = vsel %vm430_vm7, %v1704_v63, %v1705_v23  ;;  %v1714_v7 = vunpack.i.l.bf16 %v2286_v1 }
  0xcd   : > { %v651_v29 = vpack.c.bf16 %v434_v48, %v432_v44  ;;  %v1720_v43 = vunpack.i.h.bf16 %v2302_v9  ;;  %v1719_v45 = vunpack.i.l.bf16 %v2302_v9 }
  0xce   : > { %v2294_v16 = vpop.permute.xlu1 %1722  ;;  %v482_v51 = vsel %vm296_vm1, %v1714_v7, %v1715_v5 }
  0xcf   : > { %871 = vrot.lane.b32.xlu1 %v648_v12, %s1967_s6  ;;  %865 = vrot.lane.b32.xlu0 %v645_v13, %s1967_s6  ;;  %v660_v50 = vpack.c.bf16 %v1720_v43, %v1715_v5  ;;  %v484_v54 = vsel %vm296_vm1, %v1719_v45, %v1720_v43  ;;  %v1725_v60 = vunpack.i.h.bf16 %v2294_v16  ;;  %v1724_v61 = vunpack.i.l.bf16 %v2294_v16 }
  0xd0   : > { %v2308_v38 = vpop.permute.xlu0 %1727  ;;  %v659_v31 = vpack.c.bf16 %v484_v54, %v482_v51 }
  0xd1   : > { %v1730_v3 = vunpack.i.h.bf16 %v2308_v38  ;;  %v1729_v6 = vunpack.i.l.bf16 %v2308_v38  ;;  %v481_v8 = vsel %vm296_vm1, %v1724_v61, %v1714_v7  ;;  %v483_v10 = vsel %vm296_vm1, %v1725_v60, %v1719_v45 }
  0xd2   : > { %v2306_v24 = vpop.permute.xlu1 %1732  ;;  %v658_v15 = vpack.c.bf16 %v483_v10, %v481_v8 }
  0xd3   : > { %875 = vrot.lane.b32.xlu1 %v650_v20, %s1967_s6  ;;  %869 = vrot.lane.b32.xlu0 %v647_v21, %s1967_s6  ;;  %v1735_v42 = vunpack.i.h.bf16 %v2306_v24  ;;  %v1734_v52 = vunpack.i.l.bf16 %v2306_v24  ;;  %v504_v57 = vsel %vm319_vm2, %v1729_v6, %v1730_v3 }
  0xd4   : > { %v1738_v27 = vpop.permute.xlu0 %1737 }
  0xd5   : > { %v1740_v55 = vunpack.i.h.bf16 %v1738_v27  ;;  %v1739_v56 = vunpack.i.l.bf16 %v1738_v27  ;;  %v506_v58 = vsel %vm319_vm2, %v1734_v52, %v1735_v42  ;;  %v663_v18 = vpack.c.bf16 %v1735_v42, %v1730_v3 }
  0xd6   : > { %v2314_v26 = vpop.permute.xlu1 %1742  ;;  %v662_v30 = vpack.c.bf16 %v506_v58, %v504_v57 }
  0xd7   : > { %873 = vrot.lane.b32.xlu1 %v649_v25, %s1967_s6  ;;  %867 = vrot.lane.b32.xlu0 %v646_v40, %s1967_s6  ;;  %v505_v63 = vsel %vm319_vm2, %v1740_v55, %v1734_v52  ;;  %v1745_v1 = vunpack.i.h.bf16 %v2314_v26  ;;  %v1744_v39 = vunpack.i.l.bf16 %v2314_v26 }
  0xd8   : > { %v2322_v34 = vpop.permute.xlu0 %1747 }
  0xd9   : > { %v1750_v47 = vunpack.i.h.bf16 %v2322_v34  ;;  %v1749_v13 = vunpack.i.l.bf16 %v2322_v34  ;;  %v521_v22 = vsel %vm338_vm3, %v1744_v39, %v1745_v1 }
  0xda   : > { %v2320_v32 = vpop.permute.xlu1 %1752 }
  0xdb   : > { %883 = vrot.lane.b32.xlu1 %v654_v28, %s1967_s6  ;;  %877 = vrot.lane.b32.xlu0 %v651_v29, %s1967_s6  ;;  %v1754_v2 = vunpack.i.l.bf16 %v2320_v32  ;;  %v666_v9 = vpack.c.bf16 %v1750_v47, %v1745_v1  ;;  %v522_v23 = vsel %vm338_vm3, %v1749_v13, %v1750_v47  ;;  %v664_v45 = vpack.c.bf16 %v1749_v13, %v1744_v39 }
  0xdc   : > { %v2332_v41 = vpop.permute.xlu0 %1757  ;;  %v665_v48 = vpack.c.bf16 %v522_v23, %v521_v22 }
  0xdd   : > { %v1760_v14 = vunpack.i.h.bf16 %v2332_v41  ;;  %v1759_v28 = vunpack.i.l.bf16 %v2332_v41 }
  0xde   : > { %v2330_v37 = vpop.permute.xlu1 %1762 }
  0xdf   : > { %887 = vrot.lane.b32.xlu1 %v656_v36, %s1967_s6  ;;  %881 = vrot.lane.b32.xlu0 %v653_v35, %s1967_s6  ;;  %v1764_v4 = vunpack.i.l.bf16 %v2330_v37  ;;  %v667_v29 = vpack.c.bf16 %v1760_v14, %v1754_v2 }
  0xe0   : > { %v2346_v49 = vpop.permute.xlu0 %1767 }
  0xe1   : > { %v545_v21 = vsel %vm361_vm4, %v1760_v14, %v1764_v4  ;;  %v1770_v40 = vunpack.i.h.bf16 %v2346_v49  ;;  %v1769_v34 = vunpack.i.l.bf16 %v2346_v49 }
  0xe2   : > { %v2344_v46 = vpop.permute.xlu1 %1772 }
  0xe3   : > { %885 = vrot.lane.b32.xlu1 %v655_v19, %s1967_s6  ;;  %879 = vrot.lane.b32.xlu0 %v652_v33, %s1967_s6  ;;  %v503_v33 = vsel %vm319_vm2, %v1739_v56, %v1729_v6  ;;  %v1774_v25 = vunpack.i.l.bf16 %v2344_v46  ;;  %v1775_v35 = vunpack.i.h.bf16 %v2344_v46  ;;  %v605_v49 = vsel %vm407_vm6, %v1769_v34, %v1770_v40 }
  0xe4   : > { %v2361_v62 = vpop.permute.xlu0 %1777  ;;  %v661_v12 = vpack.c.bf16 %v505_v63, %v503_v33 }
  0xe5   : > { %v1780_v26 = vunpack.i.h.bf16 %v2361_v62  ;;  %v1779_v27 = vunpack.i.l.bf16 %v2361_v62  ;;  %v606_v5 = vsel %vm407_vm6, %v1770_v40, %v1774_v25 }
  0xe6   : > { %v2357_v59 = vpop.permute.xlu1 %1782 }
  0xe7   : > { %895 = vrot.lane.b32.xlu1 %v660_v50, %s1967_s6  ;;  %889 = vrot.lane.b32.xlu0 %v657_v53, %s1967_s6  ;;  %v1755_v53 = vunpack.i.h.bf16 %v2320_v32  ;;  %v1765_v32 = vunpack.i.h.bf16 %v2330_v37  ;;  %v1785_v36 = vunpack.i.h.bf16 %v2357_v59  ;;  %v1784_v7 = vunpack.i.l.bf16 %v2357_v59 }
  0xe8   : > { %v2375_v11 = vpop.permute.xlu0 %1787  ;;  %v608_v37 = vsel %vm407_vm6, %v1779_v27, %v1780_v26  ;;  %v607_v50 = vsel %vm407_vm6, %v1775_v35, %v1779_v27  ;;  %v673_v59 = vpack.c.bf16 %v1775_v35, %v1769_v34 }
  0xe9   : > { %v543_v20 = vsel %vm361_vm4, %v1754_v2, %v1755_v53  ;;  %v1790_v43 = vunpack.i.h.bf16 %v2375_v11  ;;  %v544_v3 = vsel %vm361_vm4, %v1755_v53, %v1759_v28  ;;  %v546_v6 = vsel %vm361_vm4, %v1764_v4, %v1765_v32 }
  0xea   : > { %v2370_v0 = vpop.permute.xlu1 %1792  ;;  %v668_v44 = vpack.c.bf16 %v545_v21, %v543_v20  ;;  %v675_v42 = vpack.c.bf16 %v608_v37, %v606_v5  ;;  %v565_v52 = vsel %vm384_vm5, %v1784_v7, %v1785_v36  ;;  %v669_v51 = vpack.c.bf16 %v546_v6, %v544_v3 }
  0xeb   : > { %899 = vrot.lane.b32.xlu1 %v662_v30, %s1967_s6  ;;  %893 = vrot.lane.b32.xlu0 %v659_v31, %s1967_s6  ;;  %v1794_v41 = vunpack.i.l.bf16 %v2370_v0  ;;  %v674_v55 = vpack.c.bf16 %v607_v50, %v605_v49  ;;  %v1789_v56 = vunpack.i.l.bf16 %v2375_v11  ;;  %v1795_v57 = vunpack.i.h.bf16 %v2370_v0  ;;  %v1816_v30 = vld [vmem:[%s2723_s1 + $0x4] ss:$12 sps:$4 sm:$0xff]  }
  0xec   : > { %v828_v17 = vpop.permute.xlu0 %827  ;;  %v670_v58 = vpack.c.bf16 %v1790_v43, %v1784_v7  ;;  %1051 = vmatprep.mubr.bf16.mxu1 %v1816_v30  ;;  %v1968_v0 = vmov 0  }
  0xed   : > { %v567_v46 = vsel %vm384_vm5, %v1790_v43, %v1794_v41  ;;  %v566_v60 = vsel %vm384_vm5, %v1785_v36, %v1789_v56  ;;  %v568_v61 = vsel %vm384_vm5, %v1794_v41, %v1795_v57  ;;  %1124 = vmatprep.mubr.bf16.mxu0 %v1968_v0 }
  0xee   : > { %v830_v16 = vpop.permute.xlu1 %829  ;;  %v671_v54 = vpack.c.bf16 %v567_v46, %v565_v52  ;;  %v672_v62 = vpack.c.bf16 %v568_v61, %v566_v60 }
  0xef   : > { %897 = vrot.lane.b32.xlu1 %v661_v12, %s1967_s6  ;;  %891 = vrot.lane.b32.xlu0 %v658_v15, %s1967_s6  ;;  %v935_v19 = vsel %vm933_vm8, %v828_v17, %v830_v16 }
  0xf0   : > { %1019 = vmatprep.subr.bf16.mxu1 %v935_v19 }
  0xf2   : > { %v826_v24 = vpop.permute.xlu1 %825 }
  0xf3   : > { %v934_v38 = vsel %vm933_vm8, %v826_v24, %v828_v17  ;;  %907 = vrot.lane.b32.xlu1 %v666_v9, %s1967_s6  ;;  %901 = vrot.lane.b32.xlu0 %v663_v18, %s1967_s6 }
  0xf4   : > { %1020 = vmatpush1.bf16.msra.mxu1 %v934_v38 }
  0xf7   : > { %911 = vrot.lane.b32.xlu1 %v668_v44, %s1967_s6  ;;  %905 = vrot.lane.b32.xlu0 %v665_v48, %s1967_s6 }
  0xfb   : > { %909 = vrot.lane.b32.xlu1 %v667_v29, %s1967_s6  ;;  %903 = vrot.lane.b32.xlu0 %v664_v45, %s1967_s6 }
  0xff   : > { %925 = vrot.lane.b32.xlu1 %v675_v42, %s1967_s6  ;;  %913 = vrot.lane.b32.xlu0 %v669_v51, %s1967_s6 }
 0x103   : > { %917 = vrot.lane.b32.xlu1 %v671_v54, %s1967_s6  ;;  %923 = vrot.lane.b32.xlu0 %v674_v55, %s1967_s6 }
 0x107   : > { %915 = vrot.lane.b32.xlu1 %v670_v58, %s1967_s6  ;;  %921 = vrot.lane.b32.xlu0 %v673_v59, %s1967_s6 }
 0x10b   : > { %919 = vrot.lane.b32.xlu0 %v672_v62, %s1967_s6 }
 0x10e   : > { %v1798_v31 = vpop.permute.xlu0 %1797 }
 0x10f   : > { %v1800_v33 = vunpack.i.h.bf16 %v1798_v31  ;;  %v1799_v63 = vunpack.i.l.bf16 %v1798_v31 }
 0x110   : > { %v1803_v8 = vpop.permute.xlu1 %1802 }
 0x111   : > { %v1805_v39 = vunpack.i.h.bf16 %v1803_v8  ;;  %v1804_v47 = vunpack.i.l.bf16 %v1803_v8  ;;  %v609_v53 = vsel %vm407_vm6, %v1799_v63, %v1800_v33 }
 0x112   : > { %v1808_v1 = vpop.permute.xlu0 %1807 }
 0x113   : > { %v1810_v10 = vunpack.i.h.bf16 %v1808_v1  ;;  %v1809_v11 = vunpack.i.l.bf16 %v1808_v1  ;;  %v610_v2 = vsel %vm407_vm6, %v1800_v33, %v1804_v47  ;;  %v676_v15 = vpack.c.bf16 %v1805_v39, %v1799_v63 }
 0x114   : > { %v836_v16 = vpop.permute.xlu1 %835 }
 0x115   : > { %v612_v12 = vsel %vm407_vm6, %v1809_v11, %v1810_v10  ;;  %v611_v13 = vsel %vm407_vm6, %v1805_v39, %v1809_v11 }
 0x116   : > { %v677_v14 = vpack.c.bf16 %v611_v13, %v609_v53  ;;  %v678_v4 = vpack.c.bf16 %v612_v12, %v610_v2 }
 0x118   : > { %931 = vrot.lane.b32.xlu1 %v678_v4, %s1967_s6  ;;  %929 = vrot.lane.b32.xlu0 %v677_v14, %s1967_s6 }
 0x119   : > { %v842_v17 = vpop.permute.xlu0 %841 }
 0x11c   : > { %927 = vrot.lane.b32.xlu0 %v676_v15, %s1967_s6 }
 0x11f   : > { %v848_v18 = vpop.permute.xlu1 %847 }
 0x125   : > { %v850_v9 = vpop.permute.xlu1 %849  ;;  %v854_v19 = vpop.permute.xlu0 %853 }
 0x129   : > { %v834_v20 = vpop.permute.xlu0 %833  ;;  %v840_v21 = vpop.permute.xlu1 %839 }
 0x12a   : > { %v937_v22 = vsel %vm933_vm8, %v834_v20, %v836_v16  ;;  %v939_v40 = vsel %vm933_vm8, %v840_v21, %v842_v17 }
 0x12b   : > { %1021 = vmatprep.subr.bf16.mxu1 %v937_v22 }
 0x12d   : > { %v838_v23 = vpop.permute.xlu1 %837  ;;  %v832_v24 = vpop.permute.xlu0 %831 }
 0x12e   : > { %v936_v38 = vsel %vm933_vm8, %v832_v24, %v834_v20  ;;  %v938_v48 = vsel %vm933_vm8, %v838_v23, %v840_v21 }
 0x12f   : > { %1022 = vmatpush1.bf16.msra.mxu1 %v936_v38 }
 0x130   : > { %1023 = vmatprep.subr.bf16.mxu1 %v939_v40 }
 0x131   : > { %v852_v25 = vpop.permute.xlu1 %851  ;;  %v846_v44 = vpop.permute.xlu0 %845 }
 0x132   : > { %v941_v26 = vsel %vm933_vm8, %v846_v44, %v848_v18  ;;  %v943_v32 = vsel %vm933_vm8, %v852_v25, %v854_v19  ;;  %v942_v36 = vsel %vm933_vm8, %v850_v9, %v852_v25 }
 0x133   : > { %1024 = vmatpush1.bf16.msra.mxu1 %v938_v48 }
 0x134   : > { %1025 = vmatprep.subr.bf16.mxu1 %v941_v26 }
 0x135   : > { %v860_v27 = vpop.permute.xlu1 %859  ;;  %v844_v28 = vpop.permute.xlu0 %843 }
 0x136   : > { %v940_v29 = vsel %vm933_vm8, %v844_v28, %v846_v44  ;;  %v1814_v28 = vld [vmem:[%s2723_s1] ss:$12 sps:$4 sm:$0xff]  }
 0x137   : > { %1026 = vmatpush1.bf16.msra.mxu1 %v940_v29  ;;  %v1818_v29 = vld [vmem:[%s2723_s1 + $0x1c] ss:$12 sps:$4 sm:$0xff]  }
 0x138   : > { %1027 = vmatprep.subr.bf16.mxu1 %v943_v32  ;;  %v1820_v32 = vld [vmem:[%s2723_s1 + $0x18] ss:$12 sps:$4 sm:$0xff]  }
 0x139   : > { %v864_v34 = vpop.permute.xlu1 %863  ;;  %v858_v35 = vpop.permute.xlu0 %857 }
 0x13a   : > { %v945_v5 = vsel %vm933_vm8, %v858_v35, %v860_v27 }
 0x13b   : > { %1028 = vmatpush1.bf16.msra.mxu1 %v942_v36 }
 0x13c   : > { %1029 = vmatprep.subr.bf16.mxu1 %v945_v5 }
 0x13d   : > { %v862_v7 = vpop.permute.xlu1 %861  ;;  %v856_v43 = vpop.permute.xlu0 %855 }
 0x13e   : > { %v944_v41 = vsel %vm933_vm8, %v856_v43, %v858_v35  ;;  %v946_v3 = vsel %vm933_vm8, %v862_v7, %v864_v34 }
 0x13f   : > { %1030 = vmatpush1.bf16.msra.mxu1 %v944_v41  ;;  %v1817_v41 = vld [vmem:[%s2723_s1 + $0x8] ss:$12 sps:$4 sm:$0xff]  }
 0x141   : > { %v872_v37 = vpop.permute.xlu1 %871  ;;  %v866_v45 = vpop.permute.xlu0 %865 }
 0x142   : > { %v947_v6 = vsel %vm933_vm8, %v864_v34, %v866_v45  ;;  %v1822_v34 = vld [vmem:[%s2723_s1 + $0x34] ss:$12 sps:$4 sm:$0xff]   ;;  %v1826_v45 = vld [vmem:[%s2723_s1 + $0x4c] ss:$12 sps:$4 sm:$0xff]  }
 0x143   : > { %1031 = vmatprep.subr.bf16.mxu1 %v947_v6  ;;  %v1828_v6 = vld [vmem:[%s2723_s1 + $0x48] ss:$12 sps:$4 sm:$0xff]  }
 0x144   : > { %1032 = vmatpush1.bf16.msra.mxu1 %v946_v3  ;;  %v1821_v3 = vld [vmem:[%s2723_s1 + $0x20] ss:$12 sps:$4 sm:$0xff]  }
 0x145   : > { %v876_v42 = vpop.permute.xlu1 %875  ;;  %v870_v52 = vpop.permute.xlu0 %869 }
 0x146   : > { %v949_v46 = vsel %vm933_vm8, %v870_v52, %v872_v37  ;;  %v1824_v37 = vld [vmem:[%s2723_s1 + $0x30] ss:$12 sps:$4 sm:$0xff]  }
 0x147   : > { %1033 = vmatprep.subr.bf16.mxu1 %v949_v46 }
 0x149   : > { %v874_v49 = vpop.permute.xlu1 %873  ;;  %v868_v50 = vpop.permute.xlu0 %867 }
 0x14a   : > { %v948_v51 = vsel %vm933_vm8, %v868_v50, %v870_v52  ;;  %v950_v56 = vsel %vm933_vm8, %v874_v49, %v876_v42  ;;  %v1829_v52 = vld [vmem:[%s2723_s1 + $0x50] ss:$12 sps:$4 sm:$0xff]  }
 0x14b   : > { %1034 = vmatpush1.bf16.msra.mxu1 %v948_v51 }
 0x14d   : > { %v884_v54 = vpop.permute.xlu1 %883  ;;  %v878_v55 = vpop.permute.xlu0 %877 }
 0x14e   : > { %v951_v57 = vsel %vm933_vm8, %v876_v42, %v878_v55  ;;  %v1825_v42 = vld [vmem:[%s2723_s1 + $0x38] ss:$12 sps:$4 sm:$0xff]  }
 0x14f   : > { %1035 = vmatprep.subr.bf16.mxu1 %v951_v57 }
 0x150   : > { %1036 = vmatpush1.bf16.msra.mxu1 %v950_v56  ;;  %v695_v56 = vld [vmem:[%s2724_s2] sm:$0xff] }
 0x151   : > { %v888_v58 = vpop.permute.xlu1 %887  ;;  %v882_v59 = vpop.permute.xlu0 %881 }
 0x152   : > { %v953_v60 = vsel %vm933_vm8, %v882_v59, %v884_v54 }
 0x153   : > { %1037 = vmatprep.subr.bf16.mxu1 %v953_v60  ;;  %v1169_v60 = vld [vmem:[%s2724_s2 + $0x80] sm:$0xff] }
 0x155   : > { %v886_v61 = vpop.permute.xlu1 %885  ;;  %v880_v62 = vpop.permute.xlu0 %879 }
 0x156   : > { %v952_v30 = vsel %vm933_vm8, %v880_v62, %v882_v59  ;;  %v954_v1 = vsel %vm933_vm8, %v886_v61, %v888_v58  ;;  %v2518_v59 = vld [vmem:[#allocation3] sm:$0xff]  ;;  %v2523_v62 = vld [vmem:[#allocation3 + $0x8] sm:$0xff] }
 0x157   : > { %1038 = vmatpush1.bf16.msra.mxu1 %v952_v30  ;;  %v1170_v30 = vld [vmem:[%s2724_s2 + $0x88] sm:$0xff] }
 0x159   : > { %v896_v31 = vpop.permute.xlu1 %895  ;;  %v890_v33 = vpop.permute.xlu0 %889 }
 0x15a   : > { %v955_v63 = vsel %vm933_vm8, %v888_v58, %v890_v33  ;;  %v697_v33 = vld [vmem:[%s2724_s2 + $0x10] sm:$0xff] }
 0x15b   : > { %1039 = vmatprep.subr.bf16.mxu1 %v955_v63  ;;  %v2531_v63 = vld [vmem:[#allocation3 + $0x10] sm:$0xff] }
 0x15c   : > { %1040 = vmatpush1.bf16.msra.mxu1 %v954_v1  ;;  %v1171_v1 = vld [vmem:[%s2724_s2 + $0x90] sm:$0xff] }
 0x15d   : > { %v900_v8 = vpop.permute.xlu1 %899  ;;  %v894_v10 = vpop.permute.xlu0 %893 }
 0x15e   : > { %v957_v11 = vsel %vm933_vm8, %v894_v10, %v896_v31 }
 0x15f   : > { %1041 = vmatprep.subr.bf16.mxu1 %v957_v11  ;;  %v2540_v11 = vld [vmem:[#allocation3 + $0x18] sm:$0xff] }
 0x161   : > { %v898_v39 = vpop.permute.xlu1 %897  ;;  %v892_v47 = vpop.permute.xlu0 %891 }
 0x162   : > { %v956_v53 = vsel %vm933_vm8, %v892_v47, %v894_v10  ;;  %v958_v2 = vsel %vm933_vm8, %v898_v39, %v900_v8  ;;  %v1183_v10 = vmul.f32 %v1169_v60, %v2518_v59  ;;  %v1172_v39 = vld [vmem:[%s2724_s2 + $0x98] sm:$0xff] }
 0x163   : > { %1042 = vmatpush1.bf16.msra.mxu1 %v956_v53  ;;  %v1184_v53 = vmul.f32 %v1170_v30, %v2523_v62 }
 0x165   : > { %v908_v12 = vpop.permute.xlu1 %907  ;;  %v902_v13 = vpop.permute.xlu0 %901 }
 0x166   : > { %v959_v14 = vsel %vm933_vm8, %v900_v8, %v902_v13  ;;  %v698_v8 = vld [vmem:[%s2724_s2 + $0x18] sm:$0xff] }
 0x167   : > { %1043 = vmatprep.subr.bf16.mxu1 %v959_v14 }
 0x168   : > { %1044 = vmatpush1.bf16.msra.mxu1 %v958_v2 }
 0x169   : > { %v912_v4 = vpop.permute.xlu1 %911  ;;  %v906_v15 = vpop.permute.xlu0 %905 }
 0x16a   : > { %v961_v16 = vsel %vm933_vm8, %v906_v15, %v908_v12 }
 0x16b   : > { %1045 = vmatprep.subr.bf16.mxu1 %v961_v16 }
 0x16d   : > { %v910_v17 = vpop.permute.xlu1 %909  ;;  %v904_v18 = vpop.permute.xlu0 %903 }
 0x16e   : > { %v960_v9 = vsel %vm933_vm8, %v904_v18, %v906_v15  ;;  %v962_v22 = vsel %vm933_vm8, %v910_v17, %v912_v4 }
 0x16f   : > { %1046 = vmatpush1.bf16.msra.mxu1 %v960_v9  ;;  %v699_v9 = vld [vmem:[%s2724_s2 + $0x20] sm:$0xff] }
 0x171   : > { %v926_v19 = vpop.permute.xlu1 %925  ;;  %v914_v20 = vpop.permute.xlu0 %913 }
 0x172   : > { %v963_v21 = vsel %vm933_vm8, %v912_v4, %v914_v20  ;;  %v1185_v4 = vmul.f32 %v1171_v1, %v2531_v63 }
 0x173   : > { %1047 = vmatprep.subr.bf16.mxu1 %v963_v21 }
 0x174   : > { %1048 = vmatpush1.bf16.msra.mxu1 %v962_v22 }
 0x175   : > { %v924_v23 = vpop.permute.xlu0 %923  ;;  %v918_v24 = vpop.permute.xlu1 %917 }
 0x176   : > { %v967_v38 = vsel %vm933_vm8, %v924_v23, %v926_v19  ;;  %v1186_v19 = vmul.f32 %v1172_v39, %v2540_v11 }
 0x177   : > { %1092 = vmatprep.subr.bf16.mxu0 %v967_v38 }
 0x179   : > { %v922_v40 = vpop.permute.xlu0 %921  ;;  %v916_v44 = vpop.permute.xlu1 %915 }
 0x17a   : > { %v966_v25 = vsel %vm933_vm8, %v922_v40, %v924_v23  ;;  %v964_v27 = vsel %vm933_vm8, %v916_v44, %v918_v24  ;;  %v1173_v44 = vld [vmem:[%s2724_s2 + $0xa0] sm:$0xff] }
 0x17b   : > { %1093 = vmatpush1.bf16.msra.mxu0 %v966_v25 }
 0x17d   : > { %v920_v48 = vpop.permute.xlu0 %919 }
 0x17e   : > { %v965_v26 = vsel %vm933_vm8, %v918_v24, %v920_v48  ;;  %v700_v24 = vld [vmem:[%s2724_s2 + $0x28] sm:$0xff] }
 0x17f   : > { %1049 = vmatprep.subr.bf16.mxu1 %v965_v26 }
 0x180   : > { %1050 = vmatpush1.bf16.msra.mxu1 %v964_v27 }
 0x183   : > { %1052 = vmatmul.mubr.bf16.vlgmr.msra.gmra.mrb[0].mxu1 %v1814_v28  ;;  %v1174_v28 = vld [vmem:[%s2724_s2 + $0xa8] sm:$0xff] }
 0x184   : > { %1061 = vmatprep.mubr.bf16.mxu1 %v1818_v29 }
 0x18a   : > { %v932_v35 = vpop.permute.xlu1 %931  ;;  %v930_v36 = vpop.permute.xlu0 %929 }
 0x18b   : > { %v969_v5 = vsel %vm933_vm8, %v930_v36, %v932_v35  ;;  %1062 = vmatmul.mubr.bf16.gmra.mrb[4].mxu1 %v1820_v32  ;;  %v701_v35 = vld [vmem:[%s2724_s2 + $0x30] sm:$0xff] }
 0x18c   : > { %1094 = vmatprep.subr.bf16.mxu0 %v969_v5  ;;  %1071 = vmatprep.mubr.bf16.mxu1 %v1822_v34 }
 0x18e   : > { %v928_v7 = vpop.permute.xlu0 %927 }
 0x18f   : > { %v968_v43 = vsel %vm933_vm8, %v928_v7, %v930_v36  ;;  %v1175_v36 = vld [vmem:[%s2724_s2 + $0xb0] sm:$0xff]  ;;  %v702_v7 = vld [vmem:[%s2724_s2 + $0x38] sm:$0xff] }
 0x190   : > { %1095 = vmatpush1.bf16.msra.mxu0 %v968_v43  ;;  %v1215_v43 = vmul.f32 %v1173_v44, %v2518_v59 }
 0x193   : > { %1463 = vmatmul.mubr.msk.bf16.vlgmr.msra.gmra.mrb[0].mxu0 %vm1006_vm9, %v1817_v41  ;;  %1072 = vmatmul.mubr.bf16.gmra.mrb[8].mxu1 %v1824_v37  ;;  %v1176_v41 = vld [vmem:[%s2724_s2 + $0xb8] sm:$0xff] }
 0x194   : > { %1134 = vmatprep.mubr.bf16.mxu0 %v1968_v0  ;;  %1081 = vmatprep.mubr.bf16.mxu1 %v1826_v45 }
 0x19b   : > { %1464 = vmatmul.mubr.msk.bf16.gmra.mrb[4].mxu0 %vm1006_vm9, %v1821_v3  ;;  %1082 = vmatmul.mubr.bf16.gmra.mrb[12].mxu1 %v1828_v6  ;;  %v1216_v3 = vmul.f32 %v1174_v28, %v2523_v62 }
 0x19c   : > { %1144 = vmatprep.mubr.bf16.mxu0 %v1968_v0 }
 0x1a3   : > { %1465 = vmatmul.mubr.msk.bf16.gmra.mrb[8].mxu0 %vm1006_vm9, %v1825_v42 }
 0x1a4   : > { %1154 = vmatprep.mubr.bf16.mxu0 %v1968_v0  ;;  %v696_v0 = vld [vmem:[%s2724_s2 + $0x8] sm:$0xff] }
 0x1ab   : > { %1466 = vmatmul.mubr.msk.bf16.gmra.mrb[12].mxu0 %vm1006_vm9, %v1829_v52 }
 0x256   : > { %v1053_v46 = vpop.f32.mrb[0].mxu1 }
 0x257   : > { %v1055_v49 = vpop.f32.mrb[1].mxu1  ;;  %v1054_v61 = vadd.f32 %v1053_v46, %v695_v56  ;;  %v1218_v56 = vmul.f32 %v1176_v41, %v2540_v11 }
 0x258   : > { %v1057_v50 = vpop.f32.mrb[2].mxu1  ;;  %v1056_v31 = vadd.f32 %v1055_v49, %v696_v0  ;;  %v1217_v49 = vmul.f32 %v1175_v36, %v2531_v63  ;;  %v703_v0 = vld [vmem:[%s2724_s2 + $0x40] sm:$0xff] }
 0x259   : > { %v1059_v51 = vpop.f32.mrb[3].mxu1  ;;  %v1058_v13 = vadd.f32 %v1057_v50, %v697_v33 }
 0x25a   : > { %v1060_v16 = vadd.f32 %v1059_v51, %v698_v8 }
 0x25e   : > { %v1063_v54 = vpop.f32.mrb[4].mxu1 }
 0x25f   : > { %v1065_v55 = vpop.f32.mrb[5].mxu1  ;;  %v1064_v27 = vadd.f32 %v1063_v54, %v699_v9 }
 0x260   : > { %v1067_v57 = vpop.f32.mrb[6].mxu1  ;;  %v1066_v34 = vadd.f32 %v1065_v55, %v700_v24 }
 0x261   : > { %v1069_v58 = vpop.f32.mrb[7].mxu1  ;;  %v1068_v42 = vadd.f32 %v1067_v57, %v701_v35  ;;  %v704_v57 = vld [vmem:[%s2724_s2 + $0x48] sm:$0xff]  ;;  %v710_v35 = vld [vmem:[%s2724_s2 + $0x78] sm:$0xff] }
 0x262   : > { %v1070_v51 = vadd.f32 %v1069_v58, %v702_v7  ;;  %v705_v58 = vld [vmem:[%s2724_s2 + $0x50] sm:$0xff] }
 0x266   : > { %v1126_v47 = vpop.f32.mrb[0].mxu0  ;;  %v1073_v12 = vpop.f32.mrb[8].mxu1 }
 0x267   : > { %v1127_v2 = vadd.f32 %v1126_v47, %v1054_v61  ;;  %v1128_v14 = vpop.f32.mrb[1].mxu0  ;;  %v1075_v15 = vpop.f32.mrb[9].mxu1  ;;  %v1074_v47 = vadd.f32 %v1073_v12, %v703_v0 }
 0x268   : > { %v1129_v17 = vadd.f32 %v1128_v14, %v1056_v31  ;;  %v1130_v18 = vpop.f32.mrb[2].mxu0  ;;  %v1077_v20 = vpop.f32.mrb[10].mxu1  ;;  %v1076_v14 = vadd.f32 %v1075_v15, %v704_v57  ;;  %v707_v15 = vld [vmem:[%s2724_s2 + $0x60] sm:$0xff] }
 0x269   : > { %v1187_v21 = vadd.f32 %v1183_v10, %v1127_v2  ;;  %v1131_v22 = vadd.f32 %v1130_v18, %v1058_v13  ;;  %v1132_v23 = vpop.f32.mrb[3].mxu0  ;;  %v1079_v38 = vpop.f32.mrb[11].mxu1 }
 0x26a   : > { %v1188_v40 = vadd.f32 %v1184_v53, %v1129_v17  ;;  %v1133_v25 = vadd.f32 %v1132_v23, %v1060_v16  ;;  %v706_v53 = vld [vmem:[%s2724_s2 + $0x58] sm:$0xff]  ;;  %v1078_v16 = vadd.f32 %v1077_v20, %v705_v58 }
 0x26b   : > { %v1468_v48 = vmul.f32 -1.442695, %v1187_v21  ;;  %v1189_v26 = vadd.f32 %v1185_v4, %v1131_v22  ;;  %v1080_v9 = vadd.f32 %v1079_v38, %v706_v53  ;;  %v708_v38 = vld [vmem:[%s2724_s2 + $0x68] sm:$0xff] }
 0x26c   : > { %v1469_v29 = vmul.f32 -1.442695, %v1188_v40  ;;  %v1190_v32 = vadd.f32 %v1186_v19, %v1133_v25 }
 0x26d   : > { %1830 = vpow2.f32 %v1468_v48  ;;  %v1470_v5 = vmul.f32 -1.442695, %v1189_v26 }
 0x26e   : > { %1832 = vpow2.f32 %v1469_v29  ;;  %v1471_v37 = vmul.f32 -1.442695, %v1190_v32  ;;  %v1136_v45 = vpop.f32.mrb[4].mxu0  ;;  %v1083_v6 = vpop.f32.mrb[12].mxu1  ;;  %v709_v29 = vld [vmem:[%s2724_s2 + $0x70] sm:$0xff] }
 0x26f   : > { %1834 = vpow2.f32 %v1470_v5  ;;  %v1137_v52 = vadd.f32 %v1136_v45, %v1064_v27  ;;  %v1138_v46 = vpop.f32.mrb[5].mxu0  ;;  %v1085_v50 = vpop.f32.mrb[13].mxu1 }
 0x270   : > { %1836 = vpow2.f32 %v1471_v37  ;;  %v1139_v54 = vadd.f32 %v1138_v46, %v1066_v34  ;;  %v1140_v55 = vpop.f32.mrb[6].mxu0  ;;  %v1087_v60 = vpop.f32.mrb[14].mxu1  ;;  %v1084_v34 = vadd.f32 %v1083_v6, %v707_v15  ;;  %v1086_v36 = vadd.f32 %v1085_v50, %v708_v38 }
 0x271   : > { %v1219_v61 = vadd.f32 %v1215_v43, %v1137_v52  ;;  %v1141_v30 = vadd.f32 %v1140_v55, %v1068_v42  ;;  %v1142_v31 = vpop.f32.mrb[7].mxu0  ;;  %v1089_v33 = vpop.f32.mrb[15].mxu1  ;;  %v1088_v5 = vadd.f32 %v1087_v60, %v709_v29  ;;  %v1304_v29 = vlaneseq }
 0x272   : > { %v1220_v1 = vadd.f32 %v1216_v3, %v1139_v54  ;;  %v1143_v8 = vadd.f32 %v1142_v31, %v1070_v51  ;;  %v1090_v43 = vadd.f32 %v1089_v33, %v710_v35 }
 0x273   : > { %v1472_v10 = vmul.f32 -1.442695, %v1219_v61  ;;  %v1221_v39 = vadd.f32 %v1217_v49, %v1141_v30 }
 0x274   : > { %v1473_v13 = vmul.f32 -1.442695, %v1220_v1  ;;  %v1222_v2 = vadd.f32 %v1218_v56, %v1143_v8 }
 0x275   : > { %1838 = vpow2.f32 %v1472_v10  ;;  %v1474_v4 = vmul.f32 -1.442695, %v1221_v39 }
 0x276   : > { %1840 = vpow2.f32 %v1473_v13  ;;  %v1475_v17 = vmul.f32 -1.442695, %v1222_v2  ;;  %v1146_v18 = vpop.f32.mrb[8].mxu0 }
 0x277   : > { %v1831_v19 = vpop.eup %1830  ;;  %1842 = vpow2.f32 %v1474_v4  ;;  %v1147_v21 = vadd.f32 %v1146_v18, %v1074_v47  ;;  %v1148_v22 = vpop.f32.mrb[9].mxu0  ;;  %v1177_v4 = vld [vmem:[%s2724_s2 + $0xc0] sm:$0xff] }
 0x278   : > { %v1833_v23 = vpop.eup %1832  ;;  %v1203_v12 = vadd.f32 1.0, %v1831_v19  ;;  %1844 = vpow2.f32 %v1475_v17  ;;  %v1149_v24 = vadd.f32 %v1148_v22, %v1076_v14  ;;  %v1150_v40 = vpop.f32.mrb[10].mxu0 }
 0x279   : > { %v1835_v25 = vpop.eup %1834  ;;  %v1204_v44 = vadd.f32 1.0, %v1833_v23  ;;  %1846 = vtanh.f32 %v1147_v21  ;;  %v1151_v20 = vadd.f32 %v1150_v40, %v1078_v16  ;;  %v1152_v48 = vpop.f32.mrb[11].mxu0 }
 0x27a   : > { %v1837_v26 = vpop.eup %1836  ;;  %1848 = vrcp.f32 %v1203_v12  ;;  %v1205_v27 = vadd.f32 1.0, %v1835_v25  ;;  %v1153_v28 = vadd.f32 %v1152_v48, %v1080_v9  ;;  %v1178_v9 = vld [vmem:[%s2724_s2 + $0xc8] sm:$0xff]  ;;  %v1180_v12 = vld [vmem:[%s2724_s2 + $0xd8] sm:$0xff] }
 0x27b   : > { %1850 = vrcp.f32 %v1204_v44  ;;  %v1206_v32 = vadd.f32 1.0, %v1837_v26 }
 0x27c   : > { %1852 = vrcp.f32 %v1205_v27 }
 0x27d   : > { %1854 = vrcp.f32 %v1206_v32 }
 0x27e   : > { %1856 = vtanh.f32 %v1149_v24  ;;  %v1156_v7 = vpop.f32.mrb[12].mxu0 }
 0x27f   : > { %v1839_v41 = vpop.eup %1838  ;;  %1858 = vtanh.f32 %v1151_v20  ;;  %v1157_v37 = vadd.f32 %v1156_v7, %v1084_v34  ;;  %v1158_v45 = vpop.f32.mrb[13].mxu0 }
 0x280   : > { %v1841_v3 = vpop.eup %1840  ;;  %v1235_v42 = vadd.f32 1.0, %v1839_v41  ;;  %1860 = vtanh.f32 %v1153_v28  ;;  %v1159_v52 = vadd.f32 %v1158_v45, %v1086_v36  ;;  %v1160_v6 = vpop.f32.mrb[14].mxu0 }
 0x281   : > { %v1843_v46 = vpop.eup %1842  ;;  %v1236_v49 = vadd.f32 1.0, %v1841_v3  ;;  %v1161_v51 = vadd.f32 %v1160_v6, %v1088_v5  ;;  %v1162_v54 = vpop.f32.mrb[15].mxu0  ;;  %v1467_v3 = vld [vmem:[%s2724_s2 + $0xe0] ss:$8 sm:$0x3] }
 0x282   : > { %v1845_v55 = vpop.eup %1844  ;;  %1862 = vrcp.f32 %v1235_v42  ;;  %v1237_v50 = vadd.f32 1.0, %v1843_v46  ;;  %v1163_v56 = vadd.f32 %v1162_v54, %v1090_v43  ;;  %v1305_v43 = vshrl.u32 %v1304_v29, 7 }
 0x283   : > { %v1847_v0 = vpop.eup %1846  ;;  %1864 = vrcp.f32 %v1236_v49  ;;  %v1238_v60 = vadd.f32 1.0, %v1845_v55 }
 0x284   : > { %v1849_v61 = vpop.eup %1848  ;;  %1866 = vrcp.f32 %v1237_v50  ;;  %v1310_v42 = vsub.s32 1, %v1305_v43 }
 0x285   : > { %v1851_v30 = vpop.eup %1850  ;;  %1868 = vrcp.f32 %v1238_v60  ;;  %v1255_v31 = vmul.f32 %v1849_v61, %v1847_v0 }
 0x286   : > { %v1853_v57 = vpop.eup %1852  ;;  %v1311_v54 = vrot.slane %v1467_v3, %v1310_v42 }
 0x287   : > { %v1855_v33 = vpop.eup %1854 }
 0x288   : > { %v1857_v1 = vpop.eup %1856 }
 0x289   : > { %v1859_v8 = vpop.eup %1858  ;;  %v1256_v58 = vmul.f32 %v1857_v1, %v1851_v30 }
 0x28a   : > { %v1861_v10 = vpop.eup %1860  ;;  %v1257_v39 = vmul.f32 %v1859_v8, %v1853_v57 }
 0x28b   : > { %v1258_v47 = vmul.f32 %v1861_v10, %v1855_v33 }
 0x28c   : > { %v1863_v53 = vpop.eup %1862 }
 0x28d   : > { %v1865_v13 = vpop.eup %1864  ;;  %v1247_v2 = vmul.f32 %v1863_v53, %v2518_v59  ;;  %v1179_v59 = vld [vmem:[%s2724_s2 + $0xd0] sm:$0xff] }
 0x28e   : > { %v1867_v14 = vpop.eup %1866  ;;  %v1248_v16 = vmul.f32 %v1865_v13, %v2523_v62 }
 0x28f   : > { %v1869_v17 = vpop.eup %1868  ;;  %v2605_v18 = vadd.f32 %v1255_v31, %v1247_v2  ;;  %v1249_v19 = vmul.f32 %v1867_v14, %v2531_v63 }
 0x290   : > { %v2611_v21 = vadd.f32 %v1256_v58, %v1248_v16  ;;  %v1250_v22 = vmul.f32 %v1869_v17, %v2540_v11 }
 0x291   : > { %v1263_v23 = vmul.f32 %v2605_v18, %v1177_v4  ;;  %1322 = vst [vmem:[#allocation3] sm:$0xff] %v2605_v18  ;;  %v2619_v62 = vadd.f32 %v1257_v39, %v1249_v19  ;;  %1348 = vst [vmem:[%s2727_s5] sm:$0xff] (!%p1482_p12), %v2605_v18 }
 0x292   : > { %v1264_v63 = vmul.f32 %v2611_v21, %v1178_v9  ;;  %1323 = vst [vmem:[#allocation3 + $0x8] sm:$0xff] %v2611_v21  ;;  %v2626_v24 = vadd.f32 %v1258_v47, %v1250_v22  ;;  %1349 = vst [vmem:[%s2727_s5 + $0x8] sm:$0xff] (!%p1482_p12), %v2611_v21 }
 0x293   : > { %v1267_v40 = vadd.f32 %v1263_v23, %v1157_v37  ;;  %v1265_v15 = vmul.f32 %v2619_v62, %v1179_v59  ;;  %1324 = vst [vmem:[#allocation3 + $0x10] sm:$0xff] %v2619_v62  ;;  %v1306_v37 = vsub.s32 0, %v1305_v43  ;;  %1350 = vst [vmem:[%s2727_s5 + $0x10] sm:$0xff] (!%p1482_p12), %v2619_v62 }
 0x294   : > { %v1268_v11 = vadd.f32 %v1264_v63, %v1159_v52  ;;  %v1266_v25 = vmul.f32 %v2626_v24, %v1180_v12  ;;  %1325 = vst [vmem:[#allocation3 + $0x18] sm:$0xff] %v2626_v24  ;;  %1351 = vst [vmem:[%s2727_s5 + $0x18] sm:$0xff] (!%p1482_p12), %v2626_v24 }
 0x295   : > { %v1476_v44 = vmul.f32 -1.442695, %v1267_v40  ;;  %v1269_v20 = vadd.f32 %v1265_v15, %v1161_v51  ;;  %v1307_v49 = vrot.slane %v1467_v3, %v1306_v37 }
 0x296   : > { %v1477_v48 = vmul.f32 -1.442695, %v1268_v11  ;;  %v1270_v38 = vadd.f32 %v1266_v25, %v1163_v56 }
 0x297   : > { %1870 = vpow2.f32 %v1476_v44  ;;  %v1478_v26 = vmul.f32 -1.442695, %v1269_v20 }
 0x298   : > { %1872 = vpow2.f32 %v1477_v48  ;;  %v1479_v27 = vmul.f32 -1.442695, %v1270_v38 }
 0x299   : > { %1874 = vpow2.f32 %v1478_v26 }
 0x29a   : > { %1876 = vpow2.f32 %v1479_v27 }
 0x29b   : > { %1878 = vtanh.f32 %v2605_v18 }
 0x29c   : > { %1880 = vtanh.f32 %v2611_v21 }
 0x29d   : > { %1882 = vtanh.f32 %v2619_v62 }
 0x29e   : > { %1884 = vtanh.f32 %v2626_v24 }
 0x2a1   : > { %v1871_v28 = vpop.eup %1870 }
 0x2a2   : > { %v1873_v32 = vpop.eup %1872  ;;  %v1283_v34 = vadd.f32 1.0, %v1871_v28 }
 0x2a3   : > { %v1875_v35 = vpop.eup %1874  ;;  %v1284_v36 = vadd.f32 1.0, %v1873_v32 }
 0x2a4   : > { %v1877_v5 = vpop.eup %1876  ;;  %1886 = vrcp.f32 %v1283_v34  ;;  %v1285_v7 = vadd.f32 1.0, %v1875_v35 }
 0x2a5   : > { %1888 = vrcp.f32 %v1284_v36  ;;  %v1286_v41 = vadd.f32 1.0, %v1877_v5  ;;  %v1879_v45 = vpop.eup %1878 }
 0x2a6   : > { %1890 = vrcp.f32 %v1285_v7  ;;  %v1881_v52 = vpop.eup %1880 }
 0x2a7   : > { %1892 = vrcp.f32 %v1286_v41  ;;  %v1883_v6 = vpop.eup %1882 }
 0x2a8   : > { %v1885_v46 = vpop.eup %1884 }
 0x2ae   : > { %v1887_v51 = vpop.eup %1886 }
 0x2af   : > { %v1889_v55 = vpop.eup %1888  ;;  %v1299_v50 = vmul.f32 %v1887_v51, %v1879_v45 }
 0x2b0   : > { %v1891_v56 = vpop.eup %1890  ;;  %v1300_v0 = vmul.f32 %v1889_v55, %v1881_v52 }
 0x2b1   : > { %v1893_v60 = vpop.eup %1892  ;;  %v1314_v61 = vmul.f32 %v1307_v49, %v1299_v50  ;;  %v1301_v30 = vmul.f32 %v1891_v56, %v1883_v6 }
 0x2b2   : > { %v1315_v31 = vmul.f32 %v1311_v54, %v1300_v0  ;;  %v1302_v57 = vmul.f32 %v1893_v60, %v1885_v46  ;;  %1343 = sbr.rel (%p1482_p12) target bundleno = 697 (0x2b9), region = 40 }
 0x2b3   : > { %1318 = vst [vmem:[#allocation2 + $0x8] sm:$0xff] %v1314_v61  ;;  %v1316_v33 = vmul.f32 %v1307_v49, %v1301_v30  ;;  %1344 = vst [vmem:[%s2726_s4] sm:$0xff] (!%p1482_p12), %v1314_v61 }
 0x2b4   : > { %1319 = vst [vmem:[#allocation2 + $0x10] sm:$0xff] %v1315_v31  ;;  %v1489_v1 = vpack.c.bf16 %v1315_v31, %v1314_v61  ;;  %v1317_v8 = vmul.f32 %v1311_v54, %v1302_v57  ;;  %1345 = vst [vmem:[%s2726_s4 + $0x8] sm:$0xff] (!%p1482_p12), %v1315_v31 }
 0x2b5   : > { %1320 = vst [vmem:[#allocation2 + $0x28] sm:$0xff] %v1316_v33  ;;  %1346 = vst [vmem:[%s2726_s4 + $0x10] sm:$0xff] (!%p1482_p12), %v1316_v33 }
 0x2b6   : > { %1338 = vst [vmem:[%s2060_s12] sm:$0xff] %v1489_v1  ;;  %1321 = vst [vmem:[#allocation2 + $0x30] sm:$0xff] %v1317_v8  ;;  %v1490_v58 = vpack.c.bf16 %v1317_v8, %v1316_v33 }
 0x2b7   : > { %1347 = vst [vmem:[%s2726_s4 + $0x18] sm:$0xff] (!%p1482_p12), %v1317_v8 }
 0x2b8   : > { %1339 = vst [vmem:[%s2060_s12 + $0x8] sm:$0xff] %v1490_v58 }
 0x2b9 PF: > { %s1491_s7 = sshll.u32 %s2023_s22, 8  ;;  %s1366_s11 = sshll.u32 %s2060_s12, 4  ;;  %s2677_s11 = int_to_ptr.vmem [resolvable:$true] %s1366_s11 }
 0x2ba   : > { %s2674_s10 = scalar_lea.hbm %s2725_s3, %s1491_s7  ;;  %s2681_s13 = scalar_lea.sflag [#allocation5], %s206_s30 }
 0x2bb   : > { %s1894_s14 = scalar_lea.vmem %s2677_s11, 256  ;;  %s1969_s22 = smov [#allocation4]  }
 0x2bc   : > { %p1895_p13 = scmp.ne.s32.totalorder %s2677_s11, %s1894_s14  ;;  %s1898_s15 = sshll.u32 %s1969_s22, 4  ;;  %s1899_s15 = int_to_ptr.vmem [resolvable:$false] %s1898_s15 }
 0x2bd   : > { %s1900_s16 = scalar_lea.vmem %s1899_s15, 512  ;;  %p1901_p2 = scmp.lt.s32.totalorder %s2677_s11, %s1899_s15 }
 0x2be   : > { %p1896_p0 = pnand %p1895_p13, %p2040_p5  ;;  %p1902_p3 = scmp.lt.s32.totalorder %s1900_s16, %s1894_s14 }
 0x2c0   : > { %p1897_p1 = pneg %p1896_p0  ;;  %p1903_p4 = por %p1902_p3, %p1901_p2 }
 0x2c2   : > { %p1904_p7 = pnand %p1903_p4, %p1897_p1 }
 0x2c4   : > { %1907 = shalt.err (!%p1904_p7)
}
 0x2c5   : > { %s1908_s30 = scalar_lea.hbm %s2674_s10, 256  ;;  %s1912_s23 = scalar_lea.hbm %s2725_s3, 2048 }
 0x2c6   : > { %p1909_p8 = scmp.ne.s32.totalorder %s2674_s10, %s1908_s30  ;;  %p1913_p11 = scmp.lt.u32.totalorder %s2674_s10, %s2725_s3 }
 0x2c7   : > { %p1914_p12 = scmp.lt.u32.totalorder %s1912_s23, %s1908_s30  ;;  %p1916_p0 = scmp.lt.u32.totalorder %s1908_s30, %s2674_s10 }
 0x2c8   : > { %p1910_p9 = pnand %p1909_p8, %p2040_p5 }
 0x2c9   : > { %p1915_p13 = por %p1914_p12, %p1913_p11 }
 0x2ca   : > { %p1911_p10 = pneg %p1910_p9 }
 0x2cb   : > { %p1917_p1 = por %p1916_p0, %p1915_p13 }
 0x2cd   : > { %p1918_p2 = pnand %p1917_p1, %p1911_p10 }
 0x2cf   : > { %1921 = shalt.err (!%p1918_p2)
}
 0x2d0   : > { %s1970_s6 = smov 128   ;;  %s1971_s7 = smov 8  }
 0x2d1   : > { %1524 = dma.vmem_to_hbm [thread:$0]  (%p2040_p5), %s2677_s11, 256, %s2674_s10, %s2681_s13, %s1970_s6, %s1970_s6, %s1971_s7  }
 0x2d2 PF: > { %p1530_p3 = scmp.ge.s32.totalorder %s1956_s21, 2  ;;  %s1393_s8 = sand.u32 1, %s1944_s18  }
 0x2d3   : > { %s1394_s9 = scalar_lea.sflag [#allocation5], %s1393_s8 }
 0x2d4   : > { %p1527_p4 = pnand %p1530_p3, %p2044_p6 }
 0x2d6   : > { %1939 = dma.done.wait (!%p1527_p4), %s1394_s9, 256  }
 0x2d7   : > { %1941 = vsyncadd (!%p1527_p4), %s1394_s9, 4294967040  ;;  %p16_p7 = scmp.ge.s32.totalorder %s2027_s24, 10   ;;  %s2730_s18 = smov %s1948_s19 }
 0x2d8   : > { %s2731_s19 = smov %s1952_s20  ;;  %s2732_s20 = smov %s2038_s27 }
 0x2d9   : > { %s2733_s21 = smov %s2027_s24  ;;  %18 = sbr.rel (!%p16_p7) target bundleno = 3 (0x3), region = 92 }
 0x2e0   :  { %1399 = vsyncpa [#allocation5], 1 }
 0x2e1   :  { %1401 = vsyncpa [#allocation5 + $0x1], 1 }

</bundles_post_ra>
